<compile_context>
chip_gen: v6e
topology: v6e:2x2x1
jax: 0.10.0
libtpu: 0.0.40
codegen_flags: <defaults>
</compile_context>

<pallas_src>
import functools

import jax
import jax.numpy as jnp
from jax.experimental import pallas as pl
from jax.experimental.pallas import tpu as pltpu

N_HIDDEN = 16          # scaled-down n_hidden (original file uses 128)
KSIZE = 3
BN_EPS = 1e-5

# Non-zero taps of a mask-'B' 3x3 kernel: (ki, kj)
ACTIVE_TAPS = ((0, 0), (0, 1), (0, 2), (1, 0), (1, 1))


def _round_up(v, m):
    return (v + m - 1) // m * m


# ----------------------------- in-kernel helpers -----------------------------

def _zero_halo(pad_ref, w):
    """Zero only the halo cells the masked conv reads.

    Interior [:, 1:, 1:w+1, :] is overwritten every stage; columns past w+1
    (sublane tile-alignment padding) and the bottom row are never read by the
    5 active mask-'B' taps, so they are left untouched.
    """
    n, hp1, wpad, c = pad_ref.shape
    dt = pad_ref.dtype
    pad_ref[:, 0:1, :, :] = jnp.zeros((n, 1, wpad, c), dt)            # top row
    pad_ref[:, :, 0:1, :] = jnp.zeros((n, hp1, 1, c), dt)             # left col
    pad_ref[:, :, w + 1:w + 2, :] = jnp.zeros((n, hp1, 1, c), dt)     # right col


def _conv_bn_relu(pad_ref, col_ref, w_ref, b_ref, h, w):
    """Masked 3x3 'same' conv + training-mode BatchNorm + ReLU, fully in-kernel.

    pad_ref : (N, h+1, WPAD, Cin) zero-haloed activations (VMEM ref)
    col_ref : (N*h*w, 5*Cin)      im2col scratch (VMEM ref, matmul dtype)
    w_ref   : (5*Cin, Cout)       mask-'B'-packed weights (active taps only)
    b_ref   : (1, Cout)           conv bias (f32)
    returns (N, h, w, Cout) f32
    """
    n = pad_ref.shape[0]
    cin = pad_ref.shape[-1]
    cout = w_ref.shape[-1]
    m = n * h * w
    mm_dtype = col_ref.dtype

    # Build the im2col operand: one lane block per active mask-'B' tap,
    # ref-sliced loads straight from the padded scratch.
    for t, (ki, kj) in enumerate(ACTIVE_TAPS):
        xs = pad_ref[:, ki:ki + h, kj:kj + w, :]                   # (n,h,w,cin)
        col_ref[:, t * cin:(t + 1) * cin] = xs.reshape(m, cin).astype(mm_dtype)

    # One K = 5*Cin MXU matmul (instead of 5 K = Cin matmuls), f32 accumulate.
    y = jnp.dot(col_ref[...], w_ref[...], preferred_element_type=jnp.float32)
    y = y + b_ref[...]                                             # bias, f32

    # BatchNorm2d (training mode): batch stats per channel, gamma=1, beta=0.
    # Single pass: var = E[y^2] - mean^2.  Column (sublane) sums are done on
    # the MXU via ones-row matmuls instead of two XLU reductions.
    ones_row = jnp.ones((1, m), jnp.float32)
    s1 = jnp.dot(ones_row, y, preferred_element_type=jnp.float32)        # (1,cout)
    s2 = jnp.dot(ones_row, y * y, preferred_element_type=jnp.float32)    # (1,cout)
    inv_m = 1.0 / m
    mean = s1 * inv_m
    var = s2 * inv_m - mean * mean
    y = (y - mean) * jax.lax.rsqrt(var + BN_EPS)
    y = jnp.maximum(y, 0.0)                                        # ReLU
    return y.reshape(n, h, w, cout)


def resblock_kernel(x_ref, w1_ref, b1_ref, w2_ref, b2_ref, w3_ref, b3_ref,
                    o_ref, pad_a, pad_b, col_a, col_b):
    n, h, w, c = x_ref.shape           # c = 2 * n_hidden
    # Halo ring zeroed once; interiors are overwritten between stages.
    _zero_halo(pad_a, w)
    _zero_halo(pad_b, w)

    # stage 1: 2*nh -> nh   (input cast to matmul dtype when staged into pad_a)
    pad_a[:, 1:h + 1, 1:w + 1, :] = x_ref[...].astype(pad_a.dtype)
    h1 = _conv_bn_relu(pad_a, col_a, w1_ref, b1_ref, h, w)

    # stage 2: nh -> nh     (separate nh-wide scratch -> lane-dense writes)
    pad_b[:, 1:h + 1, 1:w + 1, :] = h1.astype(pad_b.dtype)
    h2 = _conv_bn_relu(pad_b, col_b, w2_ref, b2_ref, h, w)

    # stage 3: nh -> 2*nh
    pad_b[:, 1:h + 1, 1:w + 1, :] = h2.astype(pad_b.dtype)
    h3 = _conv_bn_relu(pad_b, col_b, w3_ref, b3_ref, h, w)

    # residual add: re-read x_ref here instead of keeping x live across stages
    o_ref[...] = x_ref[...] + h3


# --------------------------------- wrappers -----------------------------------

def _pack_mask_b(wk, dtype):
    """(3,3,Cin,Cout) -> (5*Cin, Cout): keep only the 5 active mask-'B' taps.

    Packing only the active taps applies the mask unconditionally, so results
    are correct even if un-masked weights are passed in.
    """
    return jnp.concatenate([wk[ki, kj] for ki, kj in ACTIVE_TAPS],
                           axis=0).astype(dtype)


def resblock_forward_nhwc(x_nhwc, params, *, matmul_dtype=jnp.bfloat16):
    """Primary entry point. x_nhwc: (N, H, W, 2*n_hidden) f32. Returns NHWC."""
    x = x_nhwc.astype(jnp.float32)
    n, h, w, c = x.shape
    nh = c // 2
    wpad = _round_up(w + 2, 8)      # tile-align the padded (sublane) width
    m = n * h * w

    (w1, b1), (w2, b2), (w3, b3) = [
        (_pack_mask_b(wk, matmul_dtype), bk.astype(jnp.float32))
        for (wk, bk) in params
    ]

    return pl.pallas_call(
        resblock_kernel,
        out_shape=jax.ShapeDtypeStruct((n, h, w, c), jnp.float32),
        in_specs=[pl.BlockSpec(memory_space=pltpu.MemorySpace.VMEM)] * 7,
        out_specs=pl.BlockSpec(memory_space=pltpu.MemorySpace.VMEM),
        scratch_shapes=[
            pltpu.VMEM((n, h + 1, wpad, c), matmul_dtype),    # pad_a (2*nh wide)
            pltpu.VMEM((n, h + 1, wpad, nh), matmul_dtype),   # pad_b (nh wide)
            pltpu.VMEM((m, 5 * c), matmul_dtype),             # im2col stage 1
            pltpu.VMEM((m, 5 * nh), matmul_dtype),            # im2col stages 2/3
        ],
        compiler_params=pltpu.CompilerParams(vmem_limit_bytes=48 * 1024 * 1024),
    )(x, w1, b1, w2, b2, w3, b3)


def resblock_forward(x_nchw, params, *, matmul_dtype=jnp.bfloat16):
    """PyTorch-layout shim: (N, 2*n_hidden, H, W) -> same layout.

    In a real stacked-ResBlock model keep activations NHWC end-to-end and call
    resblock_forward_nhwc directly (no per-block HBM transposes).
    """
    x = jnp.transpose(x_nchw, (0, 2, 3, 1))                       # NCHW -> NHWC
    y = resblock_forward_nhwc(x, params, matmul_dtype=matmul_dtype)
    return jnp.transpose(y, (0, 3, 1, 2))                         # NHWC -> NCHW


# ----------------------------- pure-JAX reference ----------------------------

def mask_b_2d(kh=3, kw=3):
    m = jnp.ones((kh, kw), jnp.float32)
    m = m.at[kh // 2, kw // 2 + 1:].set(0.0)   # mask type 'B'
    m = m.at[kh // 2 + 1:, :].set(0.0)
    return m


def resblock_reference(x_nchw, params):
    h = x_nchw.astype(jnp.float32)
    x = h
    for w, b in params:      # w: (kH, kW, Cin, Cout) already masked, b: (1, Cout)
        h = jax.lax.conv_general_dilated(
            h, w, window_strides=(1, 1), padding="SAME",
            dimension_numbers=("NCHW", "HWIO", "NCHW"))
        h = h + b.reshape(1, -1, 1, 1)
        mean = jnp.mean(h, axis=(0, 2, 3), keepdims=True)
        var = jnp.mean((h - mean) ** 2, axis=(0, 2, 3), keepdims=True)
        h = (h - mean) * jax.lax.rsqrt(var + BN_EPS)
        h = jnp.maximum(h, 0.0)
    return x + h


# ----------------------------------- main ------------------------------------

if __name__ == "__main__":
    key = jax.random.PRNGKey(0)
    n_hidden = N_HIDDEN
    C = 2 * n_hidden
    N, H, W = 2, 8, 8

    kx, kw1, kb1, kw2, kb2, kw3, kb3 = jax.random.split(key, 7)
    mask2d = mask_b_2d(KSIZE, KSIZE)

    def init_conv(kw_key, kb_key, cin, cout):
        # deterministic synthetic init; weights stored as (kH, kW, Cin, Cout)
        w = 0.1 * jax.random.normal(kw_key, (KSIZE, KSIZE, cin, cout), jnp.float32)
        w = w * mask2d[:, :, None, None]   # apply mask 'B' (weight.data *= mask)
        b = 0.1 * jax.random.normal(kb_key, (1, cout), jnp.float32)
        return w, b

    params = (
        init_conv(kw1, kb1, 2 * n_hidden, n_hidden),
        init_conv(kw2, kb2, n_hidden, n_hidden),
        init_conv(kw3, kb3, n_hidden, 2 * n_hidden),
    )

    x = jax.random.normal(kx, (N, C, H, W), jnp.float32)   # PyTorch NCHW input
    ref = resblock_reference(x, params)

    # 1) structural correctness check with f32 MXU operands (tight tolerance)
    fwd_f32 = jax.jit(functools.partial(resblock_forward, matmul_dtype=jnp.float32))
    out_f32 = jax.block_until_ready(fwd_f32(x, params))
    assert out_f32.shape == (N, C, H, W)
    assert jnp.allclose(out_f32, ref, atol=5e-3, rtol=5e-3), (
        f"f32 max abs diff {jnp.max(jnp.abs(out_f32 - ref))}")

    # 2) performance default: bf16 MXU operands (native MXU rate on v5e/v6e/v7x)
    fwd_bf16 = jax.jit(resblock_forward)
    out_bf16 = jax.block_until_ready(fwd_bf16(x, params))
    assert out_bf16.shape == (N, C, H, W)
    assert jnp.allclose(out_bf16, ref, atol=5e-2, rtol=5e-2), (
        f"bf16 max abs diff {jnp.max(jnp.abs(out_bf16 - ref))}")

    print("KERNEL_OK")
</pallas_src>

<mosaic_0001>
module attributes {stable_mosaic.version = 11 : i64} {
  func.func @resblock_kernel(%arg0: memref<2x8x8x32xf32, #tpu.memory_space<vmem>>, %arg1: memref<160x16xf32, #tpu.memory_space<vmem>>, %arg2: memref<1x16xf32, #tpu.memory_space<vmem>>, %arg3: memref<80x16xf32, #tpu.memory_space<vmem>>, %arg4: memref<1x16xf32, #tpu.memory_space<vmem>>, %arg5: memref<80x32xf32, #tpu.memory_space<vmem>>, %arg6: memref<1x32xf32, #tpu.memory_space<vmem>>, %arg7: memref<2x8x8x32xf32, #tpu.memory_space<vmem>>, %arg8: memref<2x9x16x32xf32, #tpu.memory_space<vmem>>, %arg9: memref<2x9x16x16xf32, #tpu.memory_space<vmem>>, %arg10: memref<128x160xf32, #tpu.memory_space<vmem>>, %arg11: memref<128x80xf32, #tpu.memory_space<vmem>>) attributes {dimension_semantics = [], scalar_prefetch = 0 : i64, scratch_operands = 4 : i64, tpu.core_type = #tpu.core_type<tc>} {
    %cst = arith.constant 0.000000e+00 : f32
    %0 = vector.broadcast %cst : f32 to vector<2x1x16x32xf32>
    %c0 = arith.constant 0 : index
    %c0_0 = arith.constant 0 : index
    %c0_1 = arith.constant 0 : index
    %c0_2 = arith.constant 0 : index
    %1 = vector.load %arg8[%c0, %c0_0, %c0_1, %c0_2] : memref<2x9x16x32xf32, #tpu.memory_space<vmem>>, vector<2x1x16x32xf32>
    tpu.vector_store %arg8[%c0, %c0_0, %c0_1, %c0_2], %0 {strides = array<i32>} : memref<2x9x16x32xf32, #tpu.memory_space<vmem>>, vector<2x1x16x32xf32>,
    %cst_3 = arith.constant 0.000000e+00 : f32
    %2 = vector.broadcast %cst_3 : f32 to vector<2x9x1x32xf32>
    %c0_4 = arith.constant 0 : index
    %c0_5 = arith.constant 0 : index
    %c0_6 = arith.constant 0 : index
    %c0_7 = arith.constant 0 : index
    %3 = vector.load %arg8[%c0_4, %c0_5, %c0_6, %c0_7] : memref<2x9x16x32xf32, #tpu.memory_space<vmem>>, vector<2x9x1x32xf32>
    tpu.vector_store %arg8[%c0_4, %c0_5, %c0_6, %c0_7], %2 {strides = array<i32>} : memref<2x9x16x32xf32, #tpu.memory_space<vmem>>, vector<2x9x1x32xf32>,
    %cst_8 = arith.constant 0.000000e+00 : f32
    %4 = vector.broadcast %cst_8 : f32 to vector<2x9x1x32xf32>
    %c0_9 = arith.constant 0 : index
    %c0_10 = arith.constant 0 : index
    %c9 = arith.constant 9 : index
    %c0_11 = arith.constant 0 : index
    %5 = vector.load %arg8[%c0_9, %c0_10, %c9, %c0_11] : memref<2x9x16x32xf32, #tpu.memory_space<vmem>>, vector<2x9x1x32xf32>
    tpu.vector_store %arg8[%c0_9, %c0_10, %c9, %c0_11], %4 {strides = array<i32>} : memref<2x9x16x32xf32, #tpu.memory_space<vmem>>, vector<2x9x1x32xf32>,
    %cst_12 = arith.constant 0.000000e+00 : f32
    %6 = vector.broadcast %cst_12 : f32 to vector<2x1x16x16xf32>
    %c0_13 = arith.constant 0 : index
    %c0_14 = arith.constant 0 : index
    %c0_15 = arith.constant 0 : index
    %c0_16 = arith.constant 0 : index
    %7 = vector.load %arg9[%c0_13, %c0_14, %c0_15, %c0_16] : memref<2x9x16x16xf32, #tpu.memory_space<vmem>>, vector<2x1x16x16xf32>
    tpu.vector_store %arg9[%c0_13, %c0_14, %c0_15, %c0_16], %6 {strides = array<i32>} : memref<2x9x16x16xf32, #tpu.memory_space<vmem>>, vector<2x1x16x16xf32>,
    %cst_17 = arith.constant 0.000000e+00 : f32
    %8 = vector.broadcast %cst_17 : f32 to vector<2x9x1x16xf32>
    %c0_18 = arith.constant 0 : index
    %c0_19 = arith.constant 0 : index
    %c0_20 = arith.constant 0 : index
    %c0_21 = arith.constant 0 : index
    %9 = vector.load %arg9[%c0_18, %c0_19, %c0_20, %c0_21] : memref<2x9x16x16xf32, #tpu.memory_space<vmem>>, vector<2x9x1x16xf32>
    tpu.vector_store %arg9[%c0_18, %c0_19, %c0_20, %c0_21], %8 {strides = array<i32>} : memref<2x9x16x16xf32, #tpu.memory_space<vmem>>, vector<2x9x1x16xf32>,
    %cst_22 = arith.constant 0.000000e+00 : f32
    %10 = vector.broadcast %cst_22 : f32 to vector<2x9x1x16xf32>
    %c0_23 = arith.constant 0 : index
    %c0_24 = arith.constant 0 : index
    %c9_25 = arith.constant 9 : index
    %c0_26 = arith.constant 0 : index
    %11 = vector.load %arg9[%c0_23, %c0_24, %c9_25, %c0_26] : memref<2x9x16x16xf32, #tpu.memory_space<vmem>>, vector<2x9x1x16xf32>
    tpu.vector_store %arg9[%c0_23, %c0_24, %c9_25, %c0_26], %10 {strides = array<i32>} : memref<2x9x16x16xf32, #tpu.memory_space<vmem>>, vector<2x9x1x16xf32>,
    %c0_27 = arith.constant 0 : index
    %c0_28 = arith.constant 0 : index
    %c0_29 = arith.constant 0 : index
    %c0_30 = arith.constant 0 : index
    %12 = vector.load %arg0[%c0_27, %c0_28, %c0_29, %c0_30] : memref<2x8x8x32xf32, #tpu.memory_space<vmem>>, vector<2x8x8x32xf32>
    %c0_31 = arith.constant 0 : index
    %c1 = arith.constant 1 : index
    %c1_32 = arith.constant 1 : index
    %c0_33 = arith.constant 0 : index
    %13 = vector.load %arg8[%c0_31, %c1, %c1_32, %c0_33] : memref<2x9x16x32xf32, #tpu.memory_space<vmem>>, vector<2x8x8x32xf32>
    tpu.vector_store %arg8[%c0_31, %c1, %c1_32, %c0_33], %12 {strides = array<i32>} : memref<2x9x16x32xf32, #tpu.memory_space<vmem>>, vector<2x8x8x32xf32>,
    %c0_34 = arith.constant 0 : index
    %c0_35 = arith.constant 0 : index
    %c0_36 = arith.constant 0 : index
    %c0_37 = arith.constant 0 : index
    %14 = vector.load %arg8[%c0_34, %c0_35, %c0_36, %c0_37] : memref<2x9x16x32xf32, #tpu.memory_space<vmem>>, vector<2x8x8x32xf32>
    %15 = vector.shape_cast %14 : vector<2x8x8x32xf32> to vector<128x32xf32>
    %c0_38 = arith.constant 0 : index
    %c0_39 = arith.constant 0 : index
    %16 = vector.load %arg10[%c0_38, %c0_39] : memref<128x160xf32, #tpu.memory_space<vmem>>, vector<128x32xf32>
    tpu.vector_store %arg10[%c0_38, %c0_39], %15 {strides = array<i32>} : memref<128x160xf32, #tpu.memory_space<vmem>>, vector<128x32xf32>,
    %c0_40 = arith.constant 0 : index
    %c0_41 = arith.constant 0 : index
    %c1_42 = arith.constant 1 : index
    %c0_43 = arith.constant 0 : index
    %17 = vector.load %arg8[%c0_40, %c0_41, %c1_42, %c0_43] : memref<2x9x16x32xf32, #tpu.memory_space<vmem>>, vector<2x8x8x32xf32>
    %18 = vector.shape_cast %17 : vector<2x8x8x32xf32> to vector<128x32xf32>
    %c0_44 = arith.constant 0 : index
    %c32 = arith.constant 32 : index
    %19 = vector.load %arg10[%c0_44, %c32] : memref<128x160xf32, #tpu.memory_space<vmem>>, vector<128x32xf32>
    tpu.vector_store %arg10[%c0_44, %c32], %18 {strides = array<i32>} : memref<128x160xf32, #tpu.memory_space<vmem>>, vector<128x32xf32>,
    %c0_45 = arith.constant 0 : index
    %c0_46 = arith.constant 0 : index
    %c2 = arith.constant 2 : index
    %c0_47 = arith.constant 0 : index
    %20 = vector.load %arg8[%c0_45, %c0_46, %c2, %c0_47] : memref<2x9x16x32xf32, #tpu.memory_space<vmem>>, vector<2x8x8x32xf32>
    %21 = vector.shape_cast %20 : vector<2x8x8x32xf32> to vector<128x32xf32>
    %c0_48 = arith.constant 0 : index
    %c64 = arith.constant 64 : index
    %22 = vector.load %arg10[%c0_48, %c64] : memref<128x160xf32, #tpu.memory_space<vmem>>, vector<128x32xf32>
    tpu.vector_store %arg10[%c0_48, %c64], %21 {strides = array<i32>} : memref<128x160xf32, #tpu.memory_space<vmem>>, vector<128x32xf32>,
    %c0_49 = arith.constant 0 : index
    %c1_50 = arith.constant 1 : index
    %c0_51 = arith.constant 0 : index
    %c0_52 = arith.constant 0 : index
    %23 = vector.load %arg8[%c0_49, %c1_50, %c0_51, %c0_52] : memref<2x9x16x32xf32, #tpu.memory_space<vmem>>, vector<2x8x8x32xf32>
    %24 = vector.shape_cast %23 : vector<2x8x8x32xf32> to vector<128x32xf32>
    %c0_53 = arith.constant 0 : index
    %c96 = arith.constant 96 : index
    %25 = vector.load %arg10[%c0_53, %c96] : memref<128x160xf32, #tpu.memory_space<vmem>>, vector<128x32xf32>
    tpu.vector_store %arg10[%c0_53, %c96], %24 {strides = array<i32>} : memref<128x160xf32, #tpu.memory_space<vmem>>, vector<128x32xf32>,
    %c0_54 = arith.constant 0 : index
    %c1_55 = arith.constant 1 : index
    %c1_56 = arith.constant 1 : index
    %c0_57 = arith.constant 0 : index
    %26 = vector.load %arg8[%c0_54, %c1_55, %c1_56, %c0_57] : memref<2x9x16x32xf32, #tpu.memory_space<vmem>>, vector<2x8x8x32xf32>
    %27 = vector.shape_cast %26 : vector<2x8x8x32xf32> to vector<128x32xf32>
    %c0_58 = arith.constant 0 : index
    %c128 = arith.constant 128 : index
    %28 = vector.load %arg10[%c0_58, %c128] : memref<128x160xf32, #tpu.memory_space<vmem>>, vector<128x32xf32>
    tpu.vector_store %arg10[%c0_58, %c128], %27 {strides = array<i32>} : memref<128x160xf32, #tpu.memory_space<vmem>>, vector<128x32xf32>,
    %c0_59 = arith.constant 0 : index
    %c0_60 = arith.constant 0 : index
    %29 = vector.load %arg10[%c0_59, %c0_60] : memref<128x160xf32, #tpu.memory_space<vmem>>, vector<128x160xf32>
    %c0_61 = arith.constant 0 : index
    %c0_62 = arith.constant 0 : index
    %30 = vector.load %arg1[%c0_61, %c0_62] : memref<160x16xf32, #tpu.memory_space<vmem>>, vector<160x16xf32>
    %cst_63 = arith.constant dense<0.000000e+00> : vector<128x16xf32>
    %31 = tpu.matmul %29, %30, %cst_63 {dimension_numbers = #tpu.dot_dimension_numbers<[1], [0], [0], [1], [0, 0, 1, 1], [], []>} : vector<128x160xf32>, vector<160x16xf32>, vector<128x16xf32> -> vector<128x16xf32>
    %c0_64 = arith.constant 0 : index
    %c0_65 = arith.constant 0 : index
    %32 = vector.load %arg2[%c0_64, %c0_65] : memref<1x16xf32, #tpu.memory_space<vmem>>, vector<1x16xf32>
    %33 = vector.broadcast %32 : vector<1x16xf32> to vector<128x16xf32>
    %34 = arith.addf %31, %33 : vector<128x16xf32>
    %cst_66 = arith.constant 1.000000e+00 : f32
    %35 = vector.broadcast %cst_66 : f32 to vector<1x128xf32>
    %cst_67 = arith.constant dense<0.000000e+00> : vector<1x16xf32>
    %36 = tpu.matmul %35, %34, %cst_67 {dimension_numbers = #tpu.dot_dimension_numbers<[1], [0], [0], [1], [0, 0, 1, 1], [], []>} : vector<1x128xf32>, vector<128x16xf32>, vector<1x16xf32> -> vector<1x16xf32>
    %37 = arith.mulf %34, %34 : vector<128x16xf32>
    %cst_68 = arith.constant dense<0.000000e+00> : vector<1x16xf32>
    %38 = tpu.matmul %35, %37, %cst_68 {dimension_numbers = #tpu.dot_dimension_numbers<[1], [0], [0], [1], [0, 0, 1, 1], [], []>} : vector<1x128xf32>, vector<128x16xf32>, vector<1x16xf32> -> vector<1x16xf32>
    %cst_69 = arith.constant 7.812500e-03 : f32
    %39 = vector.broadcast %cst_69 : f32 to vector<1x16xf32>
    %40 = arith.mulf %36, %39 : vector<1x16xf32>
    %cst_70 = arith.constant 7.812500e-03 : f32
    %41 = vector.broadcast %cst_70 : f32 to vector<1x16xf32>
    %42 = arith.mulf %38, %41 : vector<1x16xf32>
    %43 = arith.mulf %40, %40 : vector<1x16xf32>
    %44 = arith.subf %42, %43 : vector<1x16xf32>
    %45 = vector.broadcast %40 : vector<1x16xf32> to vector<128x16xf32>
    %46 = arith.subf %34, %45 : vector<128x16xf32>
    %cst_71 = arith.constant 9.99999974E-6 : f32
    %47 = vector.broadcast %cst_71 : f32 to vector<1x16xf32>
    %48 = arith.addf %44, %47 : vector<1x16xf32>
    %49 = math.rsqrt %48 : vector<1x16xf32>
    %50 = vector.broadcast %49 : vector<1x16xf32> to vector<128x16xf32>
    %51 = arith.mulf %46, %50 : vector<128x16xf32>
    %cst_72 = arith.constant 0.000000e+00 : f32
    %52 = vector.broadcast %cst_72 : f32 to vector<128x16xf32>
    %53 = arith.maximumf %51, %52 : vector<128x16xf32>
    %54 = vector.shape_cast %53 : vector<128x16xf32> to vector<2x8x8x16xf32>
    %c0_73 = arith.constant 0 : index
    %c1_74 = arith.constant 1 : index
    %c1_75 = arith.constant 1 : index
    %c0_76 = arith.constant 0 : index
    %55 = vector.load %arg9[%c0_73, %c1_74, %c1_75, %c0_76] : memref<2x9x16x16xf32, #tpu.memory_space<vmem>>, vector<2x8x8x16xf32>
    tpu.vector_store %arg9[%c0_73, %c1_74, %c1_75, %c0_76], %54 {strides = array<i32>} : memref<2x9x16x16xf32, #tpu.memory_space<vmem>>, vector<2x8x8x16xf32>,
    %c0_77 = arith.constant 0 : index
    %c0_78 = arith.constant 0 : index
    %c0_79 = arith.constant 0 : index
    %c0_80 = arith.constant 0 : index
    %56 = vector.load %arg9[%c0_77, %c0_78, %c0_79, %c0_80] : memref<2x9x16x16xf32, #tpu.memory_space<vmem>>, vector<2x8x8x16xf32>
    %57 = vector.shape_cast %56 : vector<2x8x8x16xf32> to vector<128x16xf32>
    %c0_81 = arith.constant 0 : index
    %c0_82 = arith.constant 0 : index
    %58 = vector.load %arg11[%c0_81, %c0_82] : memref<128x80xf32, #tpu.memory_space<vmem>>, vector<128x16xf32>
    tpu.vector_store %arg11[%c0_81, %c0_82], %57 {strides = array<i32>} : memref<128x80xf32, #tpu.memory_space<vmem>>, vector<128x16xf32>,
    %c0_83 = arith.constant 0 : index
    %c0_84 = arith.constant 0 : index
    %c1_85 = arith.constant 1 : index
    %c0_86 = arith.constant 0 : index
    %59 = vector.load %arg9[%c0_83, %c0_84, %c1_85, %c0_86] : memref<2x9x16x16xf32, #tpu.memory_space<vmem>>, vector<2x8x8x16xf32>
    %60 = vector.shape_cast %59 : vector<2x8x8x16xf32> to vector<128x16xf32>
    %c0_87 = arith.constant 0 : index
    %c16 = arith.constant 16 : index
    %61 = vector.load %arg11[%c0_87, %c16] : memref<128x80xf32, #tpu.memory_space<vmem>>, vector<128x16xf32>
    tpu.vector_store %arg11[%c0_87, %c16], %60 {strides = array<i32>} : memref<128x80xf32, #tpu.memory_space<vmem>>, vector<128x16xf32>,
    %c0_88 = arith.constant 0 : index
    %c0_89 = arith.constant 0 : index
    %c2_90 = arith.constant 2 : index
    %c0_91 = arith.constant 0 : index
    %62 = vector.load %arg9[%c0_88, %c0_89, %c2_90, %c0_91] : memref<2x9x16x16xf32, #tpu.memory_space<vmem>>, vector<2x8x8x16xf32>
    %63 = vector.shape_cast %62 : vector<2x8x8x16xf32> to vector<128x16xf32>
    %c0_92 = arith.constant 0 : index
    %c32_93 = arith.constant 32 : index
    %64 = vector.load %arg11[%c0_92, %c32_93] : memref<128x80xf32, #tpu.memory_space<vmem>>, vector<128x16xf32>
    tpu.vector_store %arg11[%c0_92, %c32_93], %63 {strides = array<i32>} : memref<128x80xf32, #tpu.memory_space<vmem>>, vector<128x16xf32>,
    %c0_94 = arith.constant 0 : index
    %c1_95 = arith.constant 1 : index
    %c0_96 = arith.constant 0 : index
    %c0_97 = arith.constant 0 : index
    %65 = vector.load %arg9[%c0_94, %c1_95, %c0_96, %c0_97] : memref<2x9x16x16xf32, #tpu.memory_space<vmem>>, vector<2x8x8x16xf32>
    %66 = vector.shape_cast %65 : vector<2x8x8x16xf32> to vector<128x16xf32>
    %c0_98 = arith.constant 0 : index
    %c48 = arith.constant 48 : index
    %67 = vector.load %arg11[%c0_98, %c48] : memref<128x80xf32, #tpu.memory_space<vmem>>, vector<128x16xf32>
    tpu.vector_store %arg11[%c0_98, %c48], %66 {strides = array<i32>} : memref<128x80xf32, #tpu.memory_space<vmem>>, vector<128x16xf32>,
    %c0_99 = arith.constant 0 : index
    %c1_100 = arith.constant 1 : index
    %c1_101 = arith.constant 1 : index
    %c0_102 = arith.constant 0 : index
    %68 = vector.load %arg9[%c0_99, %c1_100, %c1_101, %c0_102] : memref<2x9x16x16xf32, #tpu.memory_space<vmem>>, vector<2x8x8x16xf32>
    %69 = vector.shape_cast %68 : vector<2x8x8x16xf32> to vector<128x16xf32>
    %c0_103 = arith.constant 0 : index
    %c64_104 = arith.constant 64 : index
    %70 = vector.load %arg11[%c0_103, %c64_104] : memref<128x80xf32, #tpu.memory_space<vmem>>, vector<128x16xf32>
    tpu.vector_store %arg11[%c0_103, %c64_104], %69 {strides = array<i32>} : memref<128x80xf32, #tpu.memory_space<vmem>>, vector<128x16xf32>,
    %c0_105 = arith.constant 0 : index
    %c0_106 = arith.constant 0 : index
    %71 = vector.load %arg11[%c0_105, %c0_106] : memref<128x80xf32, #tpu.memory_space<vmem>>, vector<128x80xf32>
    %c0_107 = arith.constant 0 : index
    %c0_108 = arith.constant 0 : index
    %72 = vector.load %arg3[%c0_107, %c0_108] : memref<80x16xf32, #tpu.memory_space<vmem>>, vector<80x16xf32>
    %cst_109 = arith.constant dense<0.000000e+00> : vector<128x16xf32>
    %73 = tpu.matmul %71, %72, %cst_109 {dimension_numbers = #tpu.dot_dimension_numbers<[1], [0], [0], [1], [0, 0, 1, 1], [], []>} : vector<128x80xf32>, vector<80x16xf32>, vector<128x16xf32> -> vector<128x16xf32>
    %c0_110 = arith.constant 0 : index
    %c0_111 = arith.constant 0 : index
    %74 = vector.load %arg4[%c0_110, %c0_111] : memref<1x16xf32, #tpu.memory_space<vmem>>, vector<1x16xf32>
    %75 = vector.broadcast %74 : vector<1x16xf32> to vector<128x16xf32>
    %76 = arith.addf %73, %75 : vector<128x16xf32>
    %cst_112 = arith.constant 1.000000e+00 : f32
    %77 = vector.broadcast %cst_112 : f32 to vector<1x128xf32>
    %cst_113 = arith.constant dense<0.000000e+00> : vector<1x16xf32>
    %78 = tpu.matmul %77, %76, %cst_113 {dimension_numbers = #tpu.dot_dimension_numbers<[1], [0], [0], [1], [0, 0, 1, 1], [], []>} : vector<1x128xf32>, vector<128x16xf32>, vector<1x16xf32> -> vector<1x16xf32>
    %79 = arith.mulf %76, %76 : vector<128x16xf32>
    %cst_114 = arith.constant dense<0.000000e+00> : vector<1x16xf32>
    %80 = tpu.matmul %77, %79, %cst_114 {dimension_numbers = #tpu.dot_dimension_numbers<[1], [0], [0], [1], [0, 0, 1, 1], [], []>} : vector<1x128xf32>, vector<128x16xf32>, vector<1x16xf32> -> vector<1x16xf32>
    %cst_115 = arith.constant 7.812500e-03 : f32
    %81 = vector.broadcast %cst_115 : f32 to vector<1x16xf32>
    %82 = arith.mulf %78, %81 : vector<1x16xf32>
    %cst_116 = arith.constant 7.812500e-03 : f32
    %83 = vector.broadcast %cst_116 : f32 to vector<1x16xf32>
    %84 = arith.mulf %80, %83 : vector<1x16xf32>
    %85 = arith.mulf %82, %82 : vector<1x16xf32>
    %86 = arith.subf %84, %85 : vector<1x16xf32>
    %87 = vector.broadcast %82 : vector<1x16xf32> to vector<128x16xf32>
    %88 = arith.subf %76, %87 : vector<128x16xf32>
    %cst_117 = arith.constant 9.99999974E-6 : f32
    %89 = vector.broadcast %cst_117 : f32 to vector<1x16xf32>
    %90 = arith.addf %86, %89 : vector<1x16xf32>
    %91 = math.rsqrt %90 : vector<1x16xf32>
    %92 = vector.broadcast %91 : vector<1x16xf32> to vector<128x16xf32>
    %93 = arith.mulf %88, %92 : vector<128x16xf32>
    %cst_118 = arith.constant 0.000000e+00 : f32
    %94 = vector.broadcast %cst_118 : f32 to vector<128x16xf32>
    %95 = arith.maximumf %93, %94 : vector<128x16xf32>
    %96 = vector.shape_cast %95 : vector<128x16xf32> to vector<2x8x8x16xf32>
    %c0_119 = arith.constant 0 : index
    %c1_120 = arith.constant 1 : index
    %c1_121 = arith.constant 1 : index
    %c0_122 = arith.constant 0 : index
    %97 = vector.load %arg9[%c0_119, %c1_120, %c1_121, %c0_122] : memref<2x9x16x16xf32, #tpu.memory_space<vmem>>, vector<2x8x8x16xf32>
    tpu.vector_store %arg9[%c0_119, %c1_120, %c1_121, %c0_122], %96 {strides = array<i32>} : memref<2x9x16x16xf32, #tpu.memory_space<vmem>>, vector<2x8x8x16xf32>,
    %c0_123 = arith.constant 0 : index
    %c0_124 = arith.constant 0 : index
    %c0_125 = arith.constant 0 : index
    %c0_126 = arith.constant 0 : index
    %98 = vector.load %arg9[%c0_123, %c0_124, %c0_125, %c0_126] : memref<2x9x16x16xf32, #tpu.memory_space<vmem>>, vector<2x8x8x16xf32>
    %99 = vector.shape_cast %98 : vector<2x8x8x16xf32> to vector<128x16xf32>
    %c0_127 = arith.constant 0 : index
    %c0_128 = arith.constant 0 : index
    %100 = vector.load %arg11[%c0_127, %c0_128] : memref<128x80xf32, #tpu.memory_space<vmem>>, vector<128x16xf32>
    tpu.vector_store %arg11[%c0_127, %c0_128], %99 {strides = array<i32>} : memref<128x80xf32, #tpu.memory_space<vmem>>, vector<128x16xf32>,
    %c0_129 = arith.constant 0 : index
    %c0_130 = arith.constant 0 : index
    %c1_131 = arith.constant 1 : index
    %c0_132 = arith.constant 0 : index
    %101 = vector.load %arg9[%c0_129, %c0_130, %c1_131, %c0_132] : memref<2x9x16x16xf32, #tpu.memory_space<vmem>>, vector<2x8x8x16xf32>
    %102 = vector.shape_cast %101 : vector<2x8x8x16xf32> to vector<128x16xf32>
    %c0_133 = arith.constant 0 : index
    %c16_134 = arith.constant 16 : index
    %103 = vector.load %arg11[%c0_133, %c16_134] : memref<128x80xf32, #tpu.memory_space<vmem>>, vector<128x16xf32>
    tpu.vector_store %arg11[%c0_133, %c16_134], %102 {strides = array<i32>} : memref<128x80xf32, #tpu.memory_space<vmem>>, vector<128x16xf32>,
    %c0_135 = arith.constant 0 : index
    %c0_136 = arith.constant 0 : index
    %c2_137 = arith.constant 2 : index
    %c0_138 = arith.constant 0 : index
    %104 = vector.load %arg9[%c0_135, %c0_136, %c2_137, %c0_138] : memref<2x9x16x16xf32, #tpu.memory_space<vmem>>, vector<2x8x8x16xf32>
    %105 = vector.shape_cast %104 : vector<2x8x8x16xf32> to vector<128x16xf32>
    %c0_139 = arith.constant 0 : index
    %c32_140 = arith.constant 32 : index
    %106 = vector.load %arg11[%c0_139, %c32_140] : memref<128x80xf32, #tpu.memory_space<vmem>>, vector<128x16xf32>
    tpu.vector_store %arg11[%c0_139, %c32_140], %105 {strides = array<i32>} : memref<128x80xf32, #tpu.memory_space<vmem>>, vector<128x16xf32>,
    %c0_141 = arith.constant 0 : index
    %c1_142 = arith.constant 1 : index
    %c0_143 = arith.constant 0 : index
    %c0_144 = arith.constant 0 : index
    %107 = vector.load %arg9[%c0_141, %c1_142, %c0_143, %c0_144] : memref<2x9x16x16xf32, #tpu.memory_space<vmem>>, vector<2x8x8x16xf32>
    %108 = vector.shape_cast %107 : vector<2x8x8x16xf32> to vector<128x16xf32>
    %c0_145 = arith.constant 0 : index
    %c48_146 = arith.constant 48 : index
    %109 = vector.load %arg11[%c0_145, %c48_146] : memref<128x80xf32, #tpu.memory_space<vmem>>, vector<128x16xf32>
    tpu.vector_store %arg11[%c0_145, %c48_146], %108 {strides = array<i32>} : memref<128x80xf32, #tpu.memory_space<vmem>>, vector<128x16xf32>,
    %c0_147 = arith.constant 0 : index
    %c1_148 = arith.constant 1 : index
    %c1_149 = arith.constant 1 : index
    %c0_150 = arith.constant 0 : index
    %110 = vector.load %arg9[%c0_147, %c1_148, %c1_149, %c0_150] : memref<2x9x16x16xf32, #tpu.memory_space<vmem>>, vector<2x8x8x16xf32>
    %111 = vector.shape_cast %110 : vector<2x8x8x16xf32> to vector<128x16xf32>
    %c0_151 = arith.constant 0 : index
    %c64_152 = arith.constant 64 : index
    %112 = vector.load %arg11[%c0_151, %c64_152] : memref<128x80xf32, #tpu.memory_space<vmem>>, vector<128x16xf32>
    tpu.vector_store %arg11[%c0_151, %c64_152], %111 {strides = array<i32>} : memref<128x80xf32, #tpu.memory_space<vmem>>, vector<128x16xf32>,
    %c0_153 = arith.constant 0 : index
    %c0_154 = arith.constant 0 : index
    %113 = vector.load %arg11[%c0_153, %c0_154] : memref<128x80xf32, #tpu.memory_space<vmem>>, vector<128x80xf32>
    %c0_155 = arith.constant 0 : index
    %c0_156 = arith.constant 0 : index
    %114 = vector.load %arg5[%c0_155, %c0_156] : memref<80x32xf32, #tpu.memory_space<vmem>>, vector<80x32xf32>
    %cst_157 = arith.constant dense<0.000000e+00> : vector<128x32xf32>
    %115 = tpu.matmul %113, %114, %cst_157 {dimension_numbers = #tpu.dot_dimension_numbers<[1], [0], [0], [1], [0, 0, 1, 1], [], []>} : vector<128x80xf32>, vector<80x32xf32>, vector<128x32xf32> -> vector<128x32xf32>
    %c0_158 = arith.constant 0 : index
    %c0_159 = arith.constant 0 : index
    %116 = vector.load %arg6[%c0_158, %c0_159] : memref<1x32xf32, #tpu.memory_space<vmem>>, vector<1x32xf32>
    %117 = vector.broadcast %116 : vector<1x32xf32> to vector<128x32xf32>
    %118 = arith.addf %115, %117 : vector<128x32xf32>
    %cst_160 = arith.constant 1.000000e+00 : f32
    %119 = vector.broadcast %cst_160 : f32 to vector<1x128xf32>
    %cst_161 = arith.constant dense<0.000000e+00> : vector<1x32xf32>
    %120 = tpu.matmul %119, %118, %cst_161 {dimension_numbers = #tpu.dot_dimension_numbers<[1], [0], [0], [1], [0, 0, 1, 1], [], []>} : vector<1x128xf32>, vector<128x32xf32>, vector<1x32xf32> -> vector<1x32xf32>
    %121 = arith.mulf %118, %118 : vector<128x32xf32>
    %cst_162 = arith.constant dense<0.000000e+00> : vector<1x32xf32>
    %122 = tpu.matmul %119, %121, %cst_162 {dimension_numbers = #tpu.dot_dimension_numbers<[1], [0], [0], [1], [0, 0, 1, 1], [], []>} : vector<1x128xf32>, vector<128x32xf32>, vector<1x32xf32> -> vector<1x32xf32>
    %cst_163 = arith.constant 7.812500e-03 : f32
    %123 = vector.broadcast %cst_163 : f32 to vector<1x32xf32>
    %124 = arith.mulf %120, %123 : vector<1x32xf32>
    %cst_164 = arith.constant 7.812500e-03 : f32
    %125 = vector.broadcast %cst_164 : f32 to vector<1x32xf32>
    %126 = arith.mulf %122, %125 : vector<1x32xf32>
    %127 = arith.mulf %124, %124 : vector<1x32xf32>
    %128 = arith.subf %126, %127 : vector<1x32xf32>
    %129 = vector.broadcast %124 : vector<1x32xf32> to vector<128x32xf32>
    %130 = arith.subf %118, %129 : vector<128x32xf32>
    %cst_165 = arith.constant 9.99999974E-6 : f32
    %131 = vector.broadcast %cst_165 : f32 to vector<1x32xf32>
    %132 = arith.addf %128, %131 : vector<1x32xf32>
    %133 = math.rsqrt %132 : vector<1x32xf32>
    %134 = vector.broadcast %133 : vector<1x32xf32> to vector<128x32xf32>
    %135 = arith.mulf %130, %134 : vector<128x32xf32>
    %cst_166 = arith.constant 0.000000e+00 : f32
    %136 = vector.broadcast %cst_166 : f32 to vector<128x32xf32>
    %137 = arith.maximumf %135, %136 : vector<128x32xf32>
    %138 = vector.shape_cast %137 : vector<128x32xf32> to vector<2x8x8x32xf32>
    %c0_167 = arith.constant 0 : index
    %c0_168 = arith.constant 0 : index
    %c0_169 = arith.constant 0 : index
    %c0_170 = arith.constant 0 : index
    %139 = vector.load %arg0[%c0_167, %c0_168, %c0_169, %c0_170] : memref<2x8x8x32xf32, #tpu.memory_space<vmem>>, vector<2x8x8x32xf32>
    %140 = arith.addf %139, %138 : vector<2x8x8x32xf32>
    %c0_171 = arith.constant 0 : index
    %c0_172 = arith.constant 0 : index
    %c0_173 = arith.constant 0 : index
    %c0_174 = arith.constant 0 : index
    %141 = vector.load %arg7[%c0_171, %c0_172, %c0_173, %c0_174] : memref<2x8x8x32xf32, #tpu.memory_space<vmem>>, vector<2x8x8x32xf32>
    tpu.vector_store %arg7[%c0_171, %c0_172, %c0_173, %c0_174], %140 {strides = array<i32>} : memref<2x8x8x32xf32, #tpu.memory_space<vmem>>, vector<2x8x8x32xf32>,
    return
  }
}

</mosaic_0001>

<bundles_post_ra>
// kernel: resblock_forward.1
= control target key start
LH: loop header
LB: loop body
LE: loop exit
PB: predicated region body
PF: predicated region fallthrough
CT: control target
= control target key end

     0   :  { %vm27_vm0 = vcmask 261120   ;;  %vm32_vm1 = vcmask 253952   ;;  %v3333_v1 = vmov 0.0   ;;  %s3334_s16 = smov 96   ;;  %s3335_s17 = smov 32   ;;  %s4959_s0 = inlined_call_operand.vmem [shape: f32[2,8,8,32], index: 0, kind: input, shape index: {}]   ;;  %s4960_s1 = inlined_call_operand.vmem [shape: f32[160,16], index: 1, kind: input, shape index: {}]   ;;  %s4961_s2 = inlined_call_operand.vmem [shape: f32[1,16], index: 2, kind: input, shape index: {}]   ;;  %s4962_s3 = inlined_call_operand.vmem [shape: f32[80,16], index: 3, kind: input, shape index: {}]   ;;  %s4963_s4 = inlined_call_operand.vmem [shape: f32[1,16], index: 4, kind: input, shape index: {}]   ;;  %s4964_s5 = inlined_call_operand.vmem [shape: f32[80,32], index: 5, kind: input, shape index: {}]   ;;  %s4965_s6 = inlined_call_operand.vmem [shape: f32[1,32], index: 6, kind: input, shape index: {}]   ;;  %s4966_s7 = inlined_call_operand.hbm [shape: f32[2,8,8,32], index: 7, kind: output, shape index: {}]  }
   0x1   :  { %v111_v0 = vld [vmem:[%s4959_s0] sm:$0xff]  ;;  %34 = vst.msk [vmem:[#allocation2 + $0x10] sm:$0x1] %vm32_vm1, %v3333_v1  ;;  %35 = vst.msk [vmem:[#allocation2 + $0x20] sm:$0x1] %vm32_vm1, %v3333_v1  ;;  %v112_v2 = vld [vmem:[%s4959_s0 + $0x8] sm:$0xff]  ;;  %606 = vmatprep.subr.mxu0 %v3333_v1  ;;  %2996 = vmatprep.subr.mxu1 %v3333_v1 }
   0x2   :  { %128 = vst.msk [vmem:[#allocation2 + $0x11] sm:$0xff] %vm27_vm0, %v111_v0  ;;  %28 = vst.msk [vmem:[#allocation2] sm:$0xff] %vm27_vm0, %v3333_v1  ;;  %v113_v3 = vld [vmem:[%s4959_s0 + $0x10] sm:$0xff]  ;;  %v114_v4 = vld [vmem:[%s4959_s0 + $0x18] sm:$0xff]  ;;  %s3336_s20 = smov 64  }
   0x3   :  { %29 = vst.msk [vmem:[#allocation2 + $0x8] sm:$0xff] %vm27_vm0, %v3333_v1  ;;  %30 = vst.msk [vmem:[#allocation2 + $0x90] sm:$0xff] %vm27_vm0, %v3333_v1  ;;  %v115_v5 = vld [vmem:[%s4959_s0 + $0x20] sm:$0xff]  ;;  %v116_v6 = vld [vmem:[%s4959_s0 + $0x28] sm:$0xff] }
   0x4   :  { %31 = vst.msk [vmem:[#allocation2 + $0x98] sm:$0xff] %vm27_vm0, %v3333_v1  ;;  %129 = vst.msk [vmem:[#allocation2 + $0x21] sm:$0xff] %vm27_vm0, %v112_v2  ;;  %v117_v7 = vld [vmem:[%s4959_s0 + $0x30] sm:$0xff]  ;;  %v118_v8 = vld [vmem:[%s4959_s0 + $0x38] sm:$0xff] }
   0x5   :  { %36 = vst.msk [vmem:[#allocation2 + $0x30] sm:$0x1] %vm32_vm1, %v3333_v1  ;;  %37 = vst.msk [vmem:[#allocation2 + $0x40] sm:$0x1] %vm32_vm1, %v3333_v1  ;;  %v119_v9 = vld [vmem:[%s4959_s0 + $0x40] sm:$0xff]  ;;  %v120_v10 = vld [vmem:[%s4959_s0 + $0x48] sm:$0xff] }
   0x6   :  { %38 = vst.msk [vmem:[#allocation2 + $0x50] sm:$0x1] %vm32_vm1, %v3333_v1  ;;  %39 = vst.msk [vmem:[#allocation2 + $0x60] sm:$0x1] %vm32_vm1, %v3333_v1  ;;  %v121_v11 = vld [vmem:[%s4959_s0 + $0x50] sm:$0xff]  ;;  %v122_v12 = vld [vmem:[%s4959_s0 + $0x58] sm:$0xff] }
   0x7   :  { %40 = vst.msk [vmem:[#allocation2 + $0x70] sm:$0x1] %vm32_vm1, %v3333_v1  ;;  %41 = vst.msk [vmem:[#allocation2 + $0x80] sm:$0x1] %vm32_vm1, %v3333_v1  ;;  %v123_v13 = vld [vmem:[%s4959_s0 + $0x60] sm:$0xff]  ;;  %v124_v14 = vld [vmem:[%s4959_s0 + $0x68] sm:$0xff] }
   0x8   :  { %43 = vst.msk [vmem:[#allocation2 + $0xa0] sm:$0x1] %vm32_vm1, %v3333_v1  ;;  %44 = vst.msk [vmem:[#allocation2 + $0xb0] sm:$0x1] %vm32_vm1, %v3333_v1  ;;  %v125_v15 = vld [vmem:[%s4959_s0 + $0x70] sm:$0xff]  ;;  %v546_v16 = vld [vmem:[%s4960_s1 + $0x78] sm:$0xff] }
   0x9   :  { %45 = vst.msk [vmem:[#allocation2 + $0xc0] sm:$0x1] %vm32_vm1, %v3333_v1  ;;  %46 = vst.msk [vmem:[#allocation2 + $0xd0] sm:$0x1] %vm32_vm1, %v3333_v1  ;;  %607 = vmatpush1.msra.mxu0 %v546_v16  ;;  %v126_v17 = vld [vmem:[%s4959_s0 + $0x78] sm:$0xff]  ;;  %v545_v18 = vld [vmem:[%s4960_s1 + $0x70] sm:$0xff] }
   0xa   :  { %47 = vst.msk [vmem:[#allocation2 + $0xe0] sm:$0x1] %vm32_vm1, %v3333_v1  ;;  %48 = vst.msk [vmem:[#allocation2 + $0xf0] sm:$0x1] %vm32_vm1, %v3333_v1  ;;  %608 = vmatprep.subr.mxu0 %v3333_v1  ;;  %v544_v19 = vld [vmem:[%s4960_s1 + $0x68] sm:$0xff]  ;;  %v370_v20 = vld [vmem:[#allocation2 + $0x10] sm:$0xff] }
   0xb   :  { %49 = vst.msk [vmem:[#allocation2 + $0x100] sm:$0x1] %vm32_vm1, %v3333_v1  ;;  %50 = vst.msk [vmem:[#allocation2 + $0x110] sm:$0x1] %vm32_vm1, %v3333_v1  ;;  %v176_v21 = vld [vmem:[#allocation2 + $0x1] sm:$0xff]  ;;  %v177_v22 = vld [vmem:[#allocation2 + $0x11] sm:$0xff]  ;;  %609 = vmatpush1.msra.mxu0 %v545_v18  ;;  %402 = vrot.lane.b32.xlu1 %v370_v20, %s3334_s16 }
   0xc   :  { %52 = vst.msk [vmem:[#allocation2 + $0x19] sm:$0x1] %vm32_vm1, %v3333_v1  ;;  %53 = vst.msk [vmem:[#allocation2 + $0x29] sm:$0x1] %vm32_vm1, %v3333_v1  ;;  %208 = vrot.lane.b32.xlu0 %v176_v21, %s3335_s17  ;;  %v371_v23 = vld [vmem:[#allocation2 + $0x20] sm:$0xff]  ;;  %610 = vmatprep.subr.mxu0 %v3333_v1  ;;  %v542_v34 = vld [vmem:[%s4960_s1 + $0x58] sm:$0xff] }
   0xd   :  { %54 = vst.msk [vmem:[#allocation2 + $0x39] sm:$0x1] %vm32_vm1, %v3333_v1  ;;  %55 = vst.msk [vmem:[#allocation2 + $0x49] sm:$0x1] %vm32_vm1, %v3333_v1  ;;  %v178_v25 = vld [vmem:[#allocation2 + $0x21] sm:$0xff]  ;;  %611 = vmatpush1.msra.mxu0 %v544_v19  ;;  %v541_v40 = vld [vmem:[%s4960_s1 + $0x50] sm:$0xff] }
   0xe   :  { %56 = vst.msk [vmem:[#allocation2 + $0x59] sm:$0x1] %vm32_vm1, %v3333_v1  ;;  %57 = vst.msk [vmem:[#allocation2 + $0x69] sm:$0x1] %vm32_vm1, %v3333_v1  ;;  %v543_v29 = vld [vmem:[%s4960_s1 + $0x60] sm:$0xff]  ;;  %612 = vmatprep.subr.mxu0 %v3333_v1  ;;  %v540_v55 = vld [vmem:[%s4960_s1 + $0x48] sm:$0xff] }
   0xf   :  { %58 = vst.msk [vmem:[#allocation2 + $0x79] sm:$0x1] %vm32_vm1, %v3333_v1  ;;  %61 = vst.msk [vmem:[#allocation2 + $0xa9] sm:$0x1] %vm32_vm1, %v3333_v1  ;;  %210 = vrot.lane.b32.xlu1 %v177_v22, %s3335_s17  ;;  %613 = vmatpush1.msra.mxu0 %v543_v29  ;;  %v539_v56 = vld [vmem:[%s4960_s1 + $0x40] sm:$0xff]  ;;  %v538_v59 = vld [vmem:[%s4960_s1 + $0x38] sm:$0xff] }
  0x10   :  { %62 = vst.msk [vmem:[#allocation2 + $0xb9] sm:$0x1] %vm32_vm1, %v3333_v1  ;;  %63 = vst.msk [vmem:[#allocation2 + $0xc9] sm:$0x1] %vm32_vm1, %v3333_v1  ;;  %614 = vmatprep.subr.mxu0 %v3333_v1 }
  0x11   :  { %64 = vst.msk [vmem:[#allocation2 + $0xd9] sm:$0x1] %vm32_vm1, %v3333_v1  ;;  %65 = vst.msk [vmem:[#allocation2 + $0xe9] sm:$0x1] %vm32_vm1, %v3333_v1  ;;  %615 = vmatpush1.msra.mxu0 %v542_v34 }
  0x12   :  { %66 = vst.msk [vmem:[#allocation2 + $0xf9] sm:$0x1] %vm32_vm1, %v3333_v1  ;;  %67 = vst.msk [vmem:[#allocation2 + $0x109] sm:$0x1] %vm32_vm1, %v3333_v1  ;;  %616 = vmatprep.subr.mxu0 %v3333_v1 }
  0x13   :  { %33 = vst.msk [vmem:[#allocation2] sm:$0x1] %vm32_vm1, %v3333_v1  ;;  %42 = vst.msk [vmem:[#allocation2 + $0x90] sm:$0x1] %vm32_vm1, %v3333_v1  ;;  %v274_v24 = vld [vmem:[#allocation2 + $0x12] sm:$0xff]  ;;  %404 = vrot.lane.b32.xlu1 %v371_v23, %s3334_s16  ;;  %v275_v43 = vld [vmem:[#allocation2 + $0x22] sm:$0xff]  ;;  %617 = vmatpush1.msra.mxu0 %v541_v40 }
  0x14   :  { %51 = vst.msk [vmem:[#allocation2 + $0x9] sm:$0x1] %vm32_vm1, %v3333_v1  ;;  %60 = vst.msk [vmem:[#allocation2 + $0x99] sm:$0x1] %vm32_vm1, %v3333_v1  ;;  %307 = vrot.lane.b32.xlu0 %v274_v24, %s3336_s20  ;;  %618 = vmatprep.subr.mxu0 %v3333_v1 }
  0x15   :  { %130 = vst.msk [vmem:[#allocation2 + $0x31] sm:$0xff] %vm27_vm0, %v113_v3  ;;  %131 = vst.msk [vmem:[#allocation2 + $0x41] sm:$0xff] %vm27_vm0, %v114_v4  ;;  %619 = vmatpush1.msra.mxu0 %v540_v55 }
  0x16   :  { %132 = vst.msk [vmem:[#allocation2 + $0x51] sm:$0xff] %vm27_vm0, %v115_v5  ;;  %133 = vst.msk [vmem:[#allocation2 + $0x61] sm:$0xff] %vm27_vm0, %v116_v6  ;;  %620 = vmatprep.subr.mxu0 %v3333_v1 }
  0x17   :  { %134 = vst.msk [vmem:[#allocation2 + $0x71] sm:$0xff] %vm27_vm0, %v117_v7  ;;  %135 = vst.msk [vmem:[#allocation2 + $0x81] sm:$0xff] %vm27_vm0, %v118_v8  ;;  %309 = vrot.lane.b32.xlu1 %v275_v43, %s3336_s20  ;;  %621 = vmatpush1.msra.mxu0 %v539_v56 }
  0x18   :  { %136 = vst.msk [vmem:[#allocation2 + $0xa1] sm:$0xff] %vm27_vm0, %v119_v9  ;;  %137 = vst.msk [vmem:[#allocation2 + $0xb1] sm:$0xff] %vm27_vm0, %v120_v10  ;;  %622 = vmatprep.subr.mxu0 %v3333_v1 }
  0x19   :  { %138 = vst.msk [vmem:[#allocation2 + $0xc1] sm:$0xff] %vm27_vm0, %v121_v11  ;;  %139 = vst.msk [vmem:[#allocation2 + $0xd1] sm:$0xff] %vm27_vm0, %v122_v12 }
  0x1a   :  { %140 = vst.msk [vmem:[#allocation2 + $0xe1] sm:$0xff] %vm27_vm0, %v123_v13  ;;  %141 = vst.msk [vmem:[#allocation2 + $0xf1] sm:$0xff] %vm27_vm0, %v124_v14  ;;  %v144_v57 = vld [vmem:[#allocation2] sm:$0xff] }
  0x1b   :  { %142 = vst.msk [vmem:[#allocation2 + $0x101] sm:$0xff] %vm27_vm0, %v125_v15  ;;  %143 = vst.msk [vmem:[#allocation2 + $0x111] sm:$0xff] %vm27_vm0, %v126_v17  ;;  %v273_v35 = vld [vmem:[#allocation2 + $0x2] sm:$0xff] }
  0x1c   :  { %161 = vst.msk [vmem:[#allocation4 + $0x10] sm:$0xff] %vm27_vm0, %v370_v20  ;;  %483 = vst.msk [vmem:[#allocation4 + $0x8] sm:$0xff] %vm27_vm0, %v177_v22  ;;  %v3540_v26 = vld [vmem:[#allocation2 + $0x30] sm:$0xff]  ;;  %v3546_v28 = vld [vmem:[#allocation2 + $0x40] sm:$0xff]  ;;  %305 = vrot.lane.b32.xlu0 %v273_v35, %s3336_s20 }
  0x1d   :  { %162 = vst.msk [vmem:[#allocation4 + $0x20] sm:$0xff] %vm27_vm0, %v371_v23  ;;  %v3544_v27 = vld [vmem:[#allocation2 + $0x31] sm:$0xff]  ;;  %163 = vst.msk [vmem:[#allocation4 + $0x30] sm:$0xff] %vm27_vm0, %v3540_v26  ;;  %v3554_v30 = vld [vmem:[#allocation2 + $0x41] sm:$0xff] }
  0x1e   :  { %484 = vst.msk [vmem:[#allocation4 + $0x18] sm:$0xff] %vm27_vm0, %v178_v25  ;;  %v3556_v31 = vld [vmem:[#allocation2 + $0x50] sm:$0xff]  ;;  %164 = vst.msk [vmem:[#allocation4 + $0x40] sm:$0xff] %vm27_vm0, %v3546_v28  ;;  %v3567_v33 = vld [vmem:[#allocation2 + $0x60] sm:$0xff]  ;;  %214 = vrot.lane.b32.xlu1 %v3544_v27, %s3335_s17 }
  0x1f   :  { %485 = vst.msk [vmem:[#allocation4 + $0x28] sm:$0xff] %vm27_vm0, %v3544_v27  ;;  %v3565_v32 = vld [vmem:[#allocation2 + $0x51] sm:$0xff]  ;;  %165 = vst.msk [vmem:[#allocation4 + $0x50] sm:$0xff] %vm27_vm0, %v3556_v31  ;;  %v3576_v36 = vld [vmem:[#allocation2 + $0x61] sm:$0xff] }
  0x20   :  { %486 = vst.msk [vmem:[#allocation4 + $0x38] sm:$0xff] %vm27_vm0, %v3554_v30  ;;  %v3578_v37 = vld [vmem:[#allocation2 + $0x70] sm:$0xff]  ;;  %166 = vst.msk [vmem:[#allocation4 + $0x60] sm:$0xff] %vm27_vm0, %v3567_v33  ;;  %v3591_v39 = vld [vmem:[#allocation2 + $0xa0] sm:$0xff]  ;;  %212 = vrot.lane.b32.xlu0 %v178_v25, %s3335_s17 }
  0x21   :  { %487 = vst.msk [vmem:[#allocation4 + $0x48] sm:$0xff] %vm27_vm0, %v3565_v32  ;;  %v3584_v38 = vld [vmem:[#allocation2 + $0x71] sm:$0xff]  ;;  %167 = vst.msk [vmem:[#allocation4 + $0x70] sm:$0xff] %vm27_vm0, %v3578_v37  ;;  %v3600_v41 = vld [vmem:[#allocation2 + $0xa1] sm:$0xff] }
  0x22   :  { %488 = vst.msk [vmem:[#allocation4 + $0x58] sm:$0xff] %vm27_vm0, %v3576_v36  ;;  %489 = vst.msk [vmem:[#allocation4 + $0x68] sm:$0xff] %vm27_vm0, %v3584_v38  ;;  %v3602_v42 = vld [vmem:[#allocation2 + $0xb0] sm:$0xff]  ;;  %v3608_v45 = vld [vmem:[#allocation2 + $0xc0] sm:$0xff]  ;;  %408 = vrot.lane.b32.xlu1 %v3546_v28, %s3334_s16 }
  0x23   :  { %169 = vst.msk [vmem:[#allocation4 + $0x90] sm:$0xff] %vm27_vm0, %v3591_v39  ;;  %v3606_v44 = vld [vmem:[#allocation2 + $0xb1] sm:$0xff]  ;;  %170 = vst.msk [vmem:[#allocation4 + $0xa0] sm:$0xff] %vm27_vm0, %v3602_v42  ;;  %v3615_v46 = vld [vmem:[#allocation2 + $0xc1] sm:$0xff] }
  0x24   :  { %491 = vst.msk [vmem:[#allocation4 + $0x88] sm:$0xff] %vm27_vm0, %v3600_v41  ;;  %v3617_v47 = vld [vmem:[#allocation2 + $0xd0] sm:$0xff]  ;;  %171 = vst.msk [vmem:[#allocation4 + $0xb0] sm:$0xff] %vm27_vm0, %v3608_v45  ;;  %v3625_v49 = vld [vmem:[#allocation2 + $0xe0] sm:$0xff]  ;;  %406 = vrot.lane.b32.xlu0 %v3540_v26, %s3334_s16 }
  0x25   :  { %492 = vst.msk [vmem:[#allocation4 + $0x98] sm:$0xff] %vm27_vm0, %v3606_v44  ;;  %v3623_v48 = vld [vmem:[#allocation2 + $0xd1] sm:$0xff]  ;;  %172 = vst.msk [vmem:[#allocation4 + $0xc0] sm:$0xff] %vm27_vm0, %v3617_v47  ;;  %v3634_v50 = vld [vmem:[#allocation2 + $0xe1] sm:$0xff] }
  0x26   :  { %493 = vst.msk [vmem:[#allocation4 + $0xa8] sm:$0xff] %vm27_vm0, %v3615_v46  ;;  %v3636_v51 = vld [vmem:[#allocation2 + $0xf0] sm:$0xff]  ;;  %173 = vst.msk [vmem:[#allocation4 + $0xd0] sm:$0xff] %vm27_vm0, %v3625_v49  ;;  %v3644_v53 = vld [vmem:[#allocation2 + $0x100] sm:$0xff] }
  0x27   :  { %494 = vst.msk [vmem:[#allocation4 + $0xb8] sm:$0xff] %vm27_vm0, %v3623_v48  ;;  %v3642_v52 = vld [vmem:[#allocation2 + $0xf1] sm:$0xff]  ;;  %174 = vst.msk [vmem:[#allocation4 + $0xe0] sm:$0xff] %vm27_vm0, %v3636_v51  ;;  %v3650_v54 = vld [vmem:[#allocation2 + $0x101] sm:$0xff] }
  0x28   :  { %495 = vst.msk [vmem:[#allocation4 + $0xc8] sm:$0xff] %vm27_vm0, %v3634_v50  ;;  %175 = vst.msk [vmem:[#allocation4 + $0xf0] sm:$0xff] %vm27_vm0, %v3644_v53  ;;  %v276_v58 = vld [vmem:[#allocation2 + $0x32] sm:$0xff]  ;;  %v500_v60 = vld [vmem:[#allocation4 + $0x8] sm:$0xff] }
  0x29   :  { %496 = vst.msk [vmem:[#allocation4 + $0xd8] sm:$0xff] %vm27_vm0, %v3642_v52  ;;  %497 = vst.msk [vmem:[#allocation4 + $0xe8] sm:$0xff] %vm27_vm0, %v3650_v54  ;;  %311 = vrot.lane.b32.xlu0 %v276_v58, %s3336_s20  ;;  %v277_v61 = vld [vmem:[#allocation2 + $0x42] sm:$0xff]  ;;  %2792 = vmatprep.mubr.msk.f32.mxu0 %vm27_vm0, %v500_v60 }
  0x2a   :  { %160 = vst.msk [vmem:[#allocation4] sm:$0xff] %vm27_vm0, %v144_v57 }
  0x2b   :  { %12 = vsyncpa [#allocation7], 0  ;;  %623 = vmatpush1.msra.mxu0 %v538_v59  ;;  %v537_v62 = vld [vmem:[%s4960_s1 + $0x30] sm:$0xff]  ;;  %313 = vrot.lane.b32.xlu1 %v277_v61, %s3336_s20  ;;  %v536_v63 = vld [vmem:[%s4960_s1 + $0x28] sm:$0xff]  ;;  %vm256_vm2 = vcmask 523520   ;;  %vm353_vm3 = vcmask 785920  }
  0x2c   :  { %624 = vmatprep.subr.mxu0 %v3333_v1  ;;  %v535_v0 = vld [vmem:[%s4960_s1 + $0x20] sm:$0xff]  ;;  %v278_v2 = vld [vmem:[#allocation2 + $0x52] sm:$0xff]  ;;  %v532_v8 = vld [vmem:[%s4960_s1 + $0x8] sm:$0xff]  ;;  %vm450_vm4 = vcmask 1048320   ;;  %vm3337_vm5 = vmmov 0   ;;  %vm69_vm6 = vcmask 130048  }
  0x2d   :  { %216 = vrot.lane.b32.xlu0 %v3554_v30, %s3335_s17  ;;  %625 = vmatpush1.msra.mxu0 %v537_v62  ;;  %v534_v3 = vld [vmem:[%s4960_s1 + $0x18] sm:$0xff]  ;;  %v474_v4 = vld [vmem:[#allocation2 + $0x81] sm:$0xff]  ;;  %v533_v5 = vld [vmem:[%s4960_s1 + $0x10] sm:$0xff]  ;;  %70 = vst.msk [vmem:[#allocation3] sm:$0xff] %vm69_vm6, %v3333_v1  ;;  %vm74_vm7 = vcmask 122880   ;;  %vm1098_vm8 = vcmask 261248  }
  0x2e   :  { %626 = vmatprep.subr.mxu0 %v3333_v1  ;;  %490 = vst.msk [vmem:[#allocation4 + $0x78] sm:$0xff] %vm27_vm0, %v474_v4  ;;  %v152_v6 = vld [vmem:[#allocation2 + $0x90] sm:$0xff]  ;;  %v279_v7 = vld [vmem:[#allocation2 + $0x62] sm:$0xff]  ;;  %v550_v10 = vld [vmem:[%s4960_s1 + $0x98] sm:$0xff]  ;;  %3028 = vmatprep.mubr.msk.f32.mxu1 %vm3337_vm5, %v3333_v1  ;;  %vm1195_vm9 = vcmask 392448   ;;  %s3340_s29 = smov 48  }
  0x2f   :  { %627 = vmatpush1.msra.mxu0 %v536_v63  ;;  %218 = vrot.lane.b32.xlu1 %v3565_v32, %s3335_s17  ;;  %168 = vst.msk [vmem:[#allocation4 + $0x80] sm:$0xff] %vm27_vm0, %v152_v6  ;;  %v531_v9 = vld [vmem:[%s4960_s1] sm:$0xff]  ;;  %v280_v11 = vld [vmem:[#allocation2 + $0x72] sm:$0xff]  ;;  %v548_v16 = vld [vmem:[%s4960_s1 + $0x88] sm:$0xff]  ;;  %vm1292_vm10 = vcmask 523648   ;;  %vm1389_vm11 = vcmask 654848  }
  0x30   :  { %628 = vmatprep.subr.mxu0 %v3333_v1  ;;  %v377_v12 = vld [vmem:[#allocation2 + $0x80] sm:$0xff]  ;;  %v549_v13 = vld [vmem:[%s4960_s1 + $0x90] sm:$0xff]  ;;  %v512_v59 = vld [vmem:[#allocation4 + $0x68] sm:$0xff]  ;;  %71 = vst.msk [vmem:[#allocation3 + $0x8] sm:$0xff] %vm69_vm6, %v3333_v1  ;;  %vm1439_vm12 = vcmask 654336  }
  0x31   :  { %410 = vrot.lane.b32.xlu0 %v3556_v31, %s3334_s16  ;;  %629 = vmatpush1.msra.mxu0 %v535_v0  ;;  %v184_v14 = vld [vmem:[#allocation2 + $0x91] sm:$0xff]  ;;  %v547_v17 = vld [vmem:[%s4960_s1 + $0x80] sm:$0xff]  ;;  %v516_v6 = vld [vmem:[#allocation4 + $0x88] sm:$0xff]  ;;  %72 = vst.msk [vmem:[#allocation3 + $0x90] sm:$0xff] %vm69_vm6, %v3333_v1 }
  0x32   :  { %630 = vmatprep.subr.mxu0 %v3333_v1  ;;  %v281_v15 = vld [vmem:[#allocation2 + $0x92] sm:$0xff]  ;;  %v282_v18 = vld [vmem:[#allocation2 + $0xa2] sm:$0xff]  ;;  %73 = vst.msk [vmem:[#allocation3 + $0x98] sm:$0xff] %vm69_vm6, %v3333_v1 }
  0x33   :  { %412 = vrot.lane.b32.xlu1 %v3567_v33, %s3334_s16  ;;  %631 = vmatpush1.msra.mxu0 %v534_v3  ;;  %v283_v19 = vld [vmem:[#allocation2 + $0xb2] sm:$0xff]  ;;  %v284_v20 = vld [vmem:[#allocation2 + $0xc2] sm:$0xff]  ;;  %93 = vst.msk [vmem:[#allocation3 + $0x9] sm:$0x1] %vm74_vm7, %v3333_v1  ;;  %75 = vst.msk [vmem:[#allocation3] sm:$0x1] %vm74_vm7, %v3333_v1 }
  0x34   :  { %632 = vmatprep.subr.mxu0 %v3333_v1  ;;  %v285_v21 = vld [vmem:[#allocation2 + $0xd2] sm:$0xff]  ;;  %v286_v22 = vld [vmem:[#allocation2 + $0xe2] sm:$0xff]  ;;  %76 = vst.msk [vmem:[#allocation3 + $0x10] sm:$0x1] %vm74_vm7, %v3333_v1  ;;  %77 = vst.msk [vmem:[#allocation3 + $0x20] sm:$0x1] %vm74_vm7, %v3333_v1 }
  0x35   :  { %315 = vrot.lane.b32.xlu0 %v278_v2, %s3336_s20  ;;  %633 = vmatpush1.msra.mxu0 %v533_v5  ;;  %v482_v23 = vld [vmem:[#allocation2 + $0x111] sm:$0xff]  ;;  %v288_v25 = vld [vmem:[#allocation2 + $0x102] sm:$0xff]  ;;  %78 = vst.msk [vmem:[#allocation3 + $0x30] sm:$0x1] %vm74_vm7, %v3333_v1  ;;  %79 = vst.msk [vmem:[#allocation3 + $0x40] sm:$0x1] %vm74_vm7, %v3333_v1 }
  0x36   :  { %634 = vmatprep.subr.mxu0 %v3333_v1  ;;  %498 = vst.msk [vmem:[#allocation4 + $0xf8] sm:$0xff] %vm27_vm0, %v482_v23  ;;  %v287_v24 = vld [vmem:[#allocation2 + $0xf2] sm:$0xff] }
  0x37   :  { %317 = vrot.lane.b32.xlu1 %v279_v7, %s3336_s20  ;;  %635 = vmatpush1.msra.mxu0 %v532_v8  ;;  %v385_v26 = vld [vmem:[#allocation2 + $0x110] sm:$0xff]  ;;  %v514_v63 = vld [vmem:[#allocation4 + $0x78] sm:$0xff]  ;;  %80 = vst.msk [vmem:[#allocation3 + $0x50] sm:$0x1] %vm74_vm7, %v3333_v1  ;;  %81 = vst.msk [vmem:[#allocation3 + $0x60] sm:$0x1] %vm74_vm7, %v3333_v1 }
  0x38   :  { %636 = vmatprep.subr.mxu0 %v3333_v1  ;;  %82 = vst.msk [vmem:[#allocation3 + $0x70] sm:$0x1] %vm74_vm7, %v3333_v1  ;;  %83 = vst.msk [vmem:[#allocation3 + $0x80] sm:$0x1] %vm74_vm7, %v3333_v1 }
  0x39   :  { %220 = vrot.lane.b32.xlu0 %v3576_v36, %s3335_s17  ;;  %637 = vmatpush1.msra.mxu0 %v531_v9  ;;  %84 = vst.msk [vmem:[#allocation3 + $0x90] sm:$0x1] %vm74_vm7, %v3333_v1  ;;  %85 = vst.msk [vmem:[#allocation3 + $0xa0] sm:$0x1] %vm74_vm7, %v3333_v1 }
  0x3a   :  { %662 = vmatprep.subr.mxu0 %v3333_v1  ;;  %86 = vst.msk [vmem:[#allocation3 + $0xb0] sm:$0x1] %vm74_vm7, %v3333_v1  ;;  %87 = vst.msk [vmem:[#allocation3 + $0xc0] sm:$0x1] %vm74_vm7, %v3333_v1 }
  0x3b   :  { %222 = vrot.lane.b32.xlu1 %v3584_v38, %s3335_s17  ;;  %663 = vmatpush2.msra.mxu0 %v550_v10  ;;  %v518_v10 = vld [vmem:[#allocation4 + $0x98] sm:$0xff]  ;;  %88 = vst.msk [vmem:[#allocation3 + $0xd0] sm:$0x1] %vm74_vm7, %v3333_v1  ;;  %89 = vst.msk [vmem:[#allocation3 + $0xe0] sm:$0x1] %vm74_vm7, %v3333_v1 }
  0x3c   :  { %664 = vmatprep.subr.mxu0 %v3333_v1  ;;  %90 = vst.msk [vmem:[#allocation3 + $0xf0] sm:$0x1] %vm74_vm7, %v3333_v1  ;;  %91 = vst.msk [vmem:[#allocation3 + $0x100] sm:$0x1] %vm74_vm7, %v3333_v1 }
  0x3d   :  { %414 = vrot.lane.b32.xlu0 %v3578_v37, %s3334_s16  ;;  %665 = vmatpush2.msra.mxu0 %v549_v13  ;;  %v502_v37 = vld [vmem:[#allocation4 + $0x18] sm:$0xff]  ;;  %92 = vst.msk [vmem:[#allocation3 + $0x110] sm:$0x1] %vm74_vm7, %v3333_v1  ;;  %94 = vst.msk [vmem:[#allocation3 + $0x19] sm:$0x1] %vm74_vm7, %v3333_v1 }
  0x3e   :  { %666 = vmatprep.subr.mxu0 %v3333_v1  ;;  %95 = vst.msk [vmem:[#allocation3 + $0x29] sm:$0x1] %vm74_vm7, %v3333_v1  ;;  %96 = vst.msk [vmem:[#allocation3 + $0x39] sm:$0x1] %vm74_vm7, %v3333_v1 }
  0x3f   :  { %416 = vrot.lane.b32.xlu1 %v377_v12, %s3334_s16  ;;  %667 = vmatpush2.msra.mxu0 %v548_v16  ;;  %v520_v16 = vld [vmem:[#allocation4 + $0xa8] sm:$0xff]  ;;  %97 = vst.msk [vmem:[#allocation3 + $0x49] sm:$0x1] %vm74_vm7, %v3333_v1  ;;  %98 = vst.msk [vmem:[#allocation3 + $0x59] sm:$0x1] %vm74_vm7, %v3333_v1 }
  0x40   :  { %668 = vmatprep.subr.mxu0 %v3333_v1  ;;  %99 = vst.msk [vmem:[#allocation3 + $0x69] sm:$0x1] %vm74_vm7, %v3333_v1  ;;  %100 = vst.msk [vmem:[#allocation3 + $0x79] sm:$0x1] %vm74_vm7, %v3333_v1 }
  0x41   :  { %319 = vrot.lane.b32.xlu0 %v280_v11, %s3336_s20  ;;  %669 = vmatpush2.msra.mxu0 %v547_v17  ;;  %102 = vst.msk [vmem:[#allocation3 + $0x99] sm:$0x1] %vm74_vm7, %v3333_v1  ;;  %103 = vst.msk [vmem:[#allocation3 + $0xa9] sm:$0x1] %vm74_vm7, %v3333_v1 }
  0x42   :  { %3110 = vmatprep.subr.mxu0 %v3333_v1  ;;  %104 = vst.msk [vmem:[#allocation3 + $0xb9] sm:$0x1] %vm74_vm7, %v3333_v1  ;;  %105 = vst.msk [vmem:[#allocation3 + $0xc9] sm:$0x1] %vm74_vm7, %v3333_v1 }
  0x43   :  { %321 = vrot.lane.b32.xlu1 %v281_v15, %s3336_s20  ;;  %106 = vst.msk [vmem:[#allocation3 + $0xd9] sm:$0x1] %vm74_vm7, %v3333_v1  ;;  %107 = vst.msk [vmem:[#allocation3 + $0xe9] sm:$0x1] %vm74_vm7, %v3333_v1 }
  0x44   :  { %108 = vst.msk [vmem:[#allocation3 + $0xf9] sm:$0x1] %vm74_vm7, %v3333_v1  ;;  %109 = vst.msk [vmem:[#allocation3 + $0x109] sm:$0x1] %vm74_vm7, %v3333_v1 }
  0x45   :  { %224 = vrot.lane.b32.xlu0 %v184_v14, %s3335_s17 }
  0x47   :  { %226 = vrot.lane.b32.xlu1 %v3600_v41, %s3335_s17  ;;  %v504_v41 = vld [vmem:[#allocation4 + $0x28] sm:$0xff] }
  0x49   :  { %418 = vrot.lane.b32.xlu0 %v3591_v39, %s3334_s16 }
  0x4b   :  { %420 = vrot.lane.b32.xlu1 %v3602_v42, %s3334_s16 }
  0x4d   :  { %323 = vrot.lane.b32.xlu0 %v282_v18, %s3336_s20 }
  0x4f   :  { %325 = vrot.lane.b32.xlu1 %v283_v19, %s3336_s20 }
  0x51   :  { %228 = vrot.lane.b32.xlu0 %v3606_v44, %s3335_s17 }
  0x53   :  { %230 = vrot.lane.b32.xlu1 %v3615_v46, %s3335_s17  ;;  %v506_v46 = vld [vmem:[#allocation4 + $0x38] sm:$0xff] }
  0x55   :  { %422 = vrot.lane.b32.xlu0 %v3608_v45, %s3334_s16 }
  0x57   :  { %424 = vrot.lane.b32.xlu1 %v3617_v47, %s3334_s16 }
  0x59   :  { %327 = vrot.lane.b32.xlu0 %v284_v20, %s3336_s20  ;;  %v522_v20 = vld [vmem:[#allocation4 + $0xb8] sm:$0xff] }
  0x5b   :  { %329 = vrot.lane.b32.xlu1 %v285_v21, %s3336_s20 }
  0x5d   :  { %232 = vrot.lane.b32.xlu0 %v3623_v48, %s3335_s17 }
  0x5f   :  { %234 = vrot.lane.b32.xlu1 %v3634_v50, %s3335_s17 }
  0x61   :  { %426 = vrot.lane.b32.xlu0 %v3625_v49, %s3334_s16  ;;  %v508_v49 = vld [vmem:[#allocation4 + $0x48] sm:$0xff] }
  0x63   :  { %428 = vrot.lane.b32.xlu1 %v3636_v51, %s3334_s16 }
  0x65   :  { %331 = vrot.lane.b32.xlu0 %v286_v22, %s3336_s20 }
  0x67   :  { %333 = vrot.lane.b32.xlu1 %v287_v24, %s3336_s20 }
  0x69   :  { %236 = vrot.lane.b32.xlu0 %v3642_v52, %s3335_s17 }
  0x6b   :  { %238 = vrot.lane.b32.xlu1 %v3650_v54, %s3335_s17 }
  0x6d   :  { %430 = vrot.lane.b32.xlu0 %v3644_v53, %s3334_s16  ;;  %v510_v53 = vld [vmem:[#allocation4 + $0x58] sm:$0xff] }
  0x6f   :  { %432 = vrot.lane.b32.xlu1 %v385_v26, %s3334_s16  ;;  %v524_v26 = vld [vmem:[#allocation4 + $0xc8] sm:$0xff] }
  0x71   :  { %335 = vrot.lane.b32.xlu0 %v288_v25, %s3336_s20 }
  0x7d   :  { %v403_v27 = vpop.permute.xlu1 %402 }
  0x7e   :  { %v209_v28 = vpop.permute.xlu0 %208 }
  0x7f   :  { %257 = vst.msk [vmem:[#allocation4] sm:$0xff] %vm256_vm2, %v209_v28 }
  0x81   :  { %v211_v29 = vpop.permute.xlu1 %210 }
  0x82   :  { %258 = vst.msk [vmem:[#allocation4 + $0x10] sm:$0xff] %vm256_vm2, %v211_v29 }
  0x85   :  { %v405_v32 = vpop.permute.xlu1 %404 }
  0x86   :  { %v308_v30 = vpop.permute.xlu0 %307 }
  0x87   :  { %355 = vst.msk [vmem:[#allocation4 + $0x10] sm:$0xff] %vm353_vm3, %v308_v30  ;;  %v526_v30 = vld [vmem:[#allocation4 + $0xd8] sm:$0xff] }
  0x88   :  { %452 = vst.msk [vmem:[#allocation4 + $0x10] sm:$0xff] %vm450_vm4, %v405_v32 }
  0x89   :  { %v310_v34 = vpop.permute.xlu1 %309 }
  0x8e   :  { %v306_v31 = vpop.permute.xlu0 %305 }
  0x8f   :  { %354 = vst.msk [vmem:[#allocation4] sm:$0xff] %vm353_vm3, %v306_v31  ;;  %v501_v42 = vld [vmem:[#allocation4 + $0x10] sm:$0xff] }
  0x90   :  { %451 = vst.msk [vmem:[#allocation4] sm:$0xff] %vm450_vm4, %v403_v27  ;;  %v215_v36 = vpop.permute.xlu1 %214 }
  0x91   :  { %260 = vst.msk [vmem:[#allocation4 + $0x30] sm:$0xff] %vm256_vm2, %v215_v36  ;;  %v528_v36 = vld [vmem:[#allocation4 + $0xe8] sm:$0xff] }
  0x92   :  { %v213_v33 = vpop.permute.xlu0 %212 }
  0x93   :  { %259 = vst.msk [vmem:[#allocation4 + $0x20] sm:$0xff] %vm256_vm2, %v213_v33 }
  0x94   :  { %356 = vst.msk [vmem:[#allocation4 + $0x20] sm:$0xff] %vm353_vm3, %v310_v34  ;;  %v409_v40 = vpop.permute.xlu1 %408 }
  0x96   :  { %v407_v35 = vpop.permute.xlu0 %406 }
  0x97   :  { %453 = vst.msk [vmem:[#allocation4 + $0x20] sm:$0xff] %vm450_vm4, %v407_v35  ;;  %v499_v38 = vld [vmem:[#allocation4] sm:$0xff] }
  0x98   :  { %671 = vmatmul.mubr.f32.vlgmr.msra.gmra.mxu0 %v499_v38 }
  0x99   :  { %2793 = vmatprep.mubr.msk.f32.mxu0 %vm27_vm0, %v502_v37 }
  0x9b   :  { %v312_v39 = vpop.permute.xlu0 %311 }
  0x9c   :  { %357 = vst.msk [vmem:[#allocation4 + $0x30] sm:$0xff] %vm353_vm3, %v312_v39  ;;  %676 = vmatmul.mubr.f32.gmra.mxu0 %v501_v42 }
  0x9d   :  { %454 = vst.msk [vmem:[#allocation4 + $0x30] sm:$0xff] %vm450_vm4, %v409_v40  ;;  %2794 = vmatprep.mubr.msk.f32.mxu0 %vm27_vm0, %v504_v41  ;;  %v314_v44 = vpop.permute.xlu1 %313  ;;  %v530_v40 = vld [vmem:[#allocation4 + $0xf8] sm:$0xff] }
  0x9e   :  { %v503_v45 = vld [vmem:[#allocation4 + $0x20] sm:$0xff] }
  0x9f   :  { %v217_v43 = vpop.permute.xlu0 %216 }
  0xa0   :  { %261 = vst.msk [vmem:[#allocation4 + $0x40] sm:$0xff] %vm256_vm2, %v217_v43  ;;  %681 = vmatmul.mubr.f32.gmra.mxu0 %v503_v45 }
  0xa1   :  { %358 = vst.msk [vmem:[#allocation4 + $0x40] sm:$0xff] %vm353_vm3, %v314_v44  ;;  %2795 = vmatprep.mubr.msk.f32.mxu0 %vm27_vm0, %v506_v46  ;;  %v219_v48 = vpop.permute.xlu1 %218 }
  0xa2   :  { %262 = vst.msk [vmem:[#allocation4 + $0x50] sm:$0xff] %vm256_vm2, %v219_v48 }
  0xa3   :  { %v411_v47 = vpop.permute.xlu0 %410 }
  0xa4   :  { %455 = vst.msk [vmem:[#allocation4 + $0x40] sm:$0xff] %vm450_vm4, %v411_v47  ;;  %v505_v50 = vld [vmem:[#allocation4 + $0x30] sm:$0xff] }
  0xa5   :  { %686 = vmatmul.mubr.f32.gmra.mxu0 %v505_v50  ;;  %v413_v52 = vpop.permute.xlu1 %412 }
  0xa6   :  { %2796 = vmatprep.mubr.msk.f32.mxu0 %vm27_vm0, %v508_v49 }
  0xa7   :  { %v316_v51 = vpop.permute.xlu0 %315 }
  0xa8   :  { %359 = vst.msk [vmem:[#allocation4 + $0x50] sm:$0xff] %vm353_vm3, %v316_v51 }
  0xa9   :  { %456 = vst.msk [vmem:[#allocation4 + $0x50] sm:$0xff] %vm450_vm4, %v413_v52  ;;  %v318_v55 = vpop.permute.xlu1 %317 }
  0xab   :  { %v221_v54 = vpop.permute.xlu0 %220  ;;  %v507_v56 = vld [vmem:[#allocation4 + $0x40] sm:$0xff] }
  0xac   :  { %263 = vst.msk [vmem:[#allocation4 + $0x60] sm:$0xff] %vm256_vm2, %v221_v54  ;;  %691 = vmatmul.mubr.f32.gmra.mxu0 %v507_v56 }
  0xad   :  { %360 = vst.msk [vmem:[#allocation4 + $0x60] sm:$0xff] %vm353_vm3, %v318_v55  ;;  %2797 = vmatprep.mubr.msk.f32.mxu0 %vm27_vm0, %v510_v53  ;;  %v223_v58 = vpop.permute.xlu1 %222 }
  0xae   :  { %264 = vst.msk [vmem:[#allocation4 + $0x70] sm:$0xff] %vm256_vm2, %v223_v58 }
  0xaf   :  { %v415_v57 = vpop.permute.xlu0 %414 }
  0xb0   :  { %457 = vst.msk [vmem:[#allocation4 + $0x60] sm:$0xff] %vm450_vm4, %v415_v57  ;;  %v509_v60 = vld [vmem:[#allocation4 + $0x50] sm:$0xff] }
  0xb1   :  { %696 = vmatmul.mubr.f32.gmra.mxu0 %v509_v60  ;;  %v417_v62 = vpop.permute.xlu1 %416 }
  0xb2   :  { %2798 = vmatprep.mubr.msk.f32.mxu0 %vm27_vm0, %v512_v59 }
  0xb3   :  { %v320_v61 = vpop.permute.xlu0 %319 }
  0xb4   :  { %361 = vst.msk [vmem:[#allocation4 + $0x70] sm:$0xff] %vm353_vm3, %v320_v61 }
  0xb5   :  { %458 = vst.msk [vmem:[#allocation4 + $0x70] sm:$0xff] %vm450_vm4, %v417_v62  ;;  %v322_v2 = vpop.permute.xlu1 %321 }
  0xb7   :  { %v225_v0 = vpop.permute.xlu0 %224  ;;  %v511_v3 = vld [vmem:[#allocation4 + $0x60] sm:$0xff] }
  0xb8   :  { %265 = vst.msk [vmem:[#allocation4 + $0x80] sm:$0xff] %vm256_vm2, %v225_v0  ;;  %701 = vmatmul.mubr.f32.gmra.mxu0 %v511_v3 }
  0xb9   :  { %362 = vst.msk [vmem:[#allocation4 + $0x80] sm:$0xff] %vm353_vm3, %v322_v2  ;;  %2799 = vmatprep.mubr.msk.f32.mxu0 %vm27_vm0, %v514_v63  ;;  %v227_v5 = vpop.permute.xlu1 %226 }
  0xba   :  { %266 = vst.msk [vmem:[#allocation4 + $0x90] sm:$0xff] %vm256_vm2, %v227_v5 }
  0xbb   :  { %v419_v4 = vpop.permute.xlu0 %418 }
  0xbc   :  { %459 = vst.msk [vmem:[#allocation4 + $0x80] sm:$0xff] %vm450_vm4, %v419_v4  ;;  %v513_v7 = vld [vmem:[#allocation4 + $0x70] sm:$0xff] }
  0xbd   :  { %706 = vmatmul.mubr.f32.gmra.mxu0 %v513_v7  ;;  %v421_v9 = vpop.permute.xlu1 %420 }
  0xbe   :  { %2800 = vmatprep.mubr.msk.f32.mxu0 %vm27_vm0, %v516_v6 }
  0xbf   :  { %v324_v8 = vpop.permute.xlu0 %323 }
  0xc0   :  { %363 = vst.msk [vmem:[#allocation4 + $0x90] sm:$0xff] %vm353_vm3, %v324_v8 }
  0xc1   :  { %460 = vst.msk [vmem:[#allocation4 + $0x90] sm:$0xff] %vm450_vm4, %v421_v9  ;;  %v326_v12 = vpop.permute.xlu1 %325 }
  0xc3   :  { %v229_v11 = vpop.permute.xlu0 %228  ;;  %v515_v13 = vld [vmem:[#allocation4 + $0x80] sm:$0xff] }
  0xc4   :  { %267 = vst.msk [vmem:[#allocation4 + $0xa0] sm:$0xff] %vm256_vm2, %v229_v11  ;;  %711 = vmatmul.mubr.f32.gmra.mxu0 %v515_v13 }
  0xc5   :  { %364 = vst.msk [vmem:[#allocation4 + $0xa0] sm:$0xff] %vm353_vm3, %v326_v12  ;;  %2801 = vmatprep.mubr.msk.f32.mxu0 %vm27_vm0, %v518_v10  ;;  %v231_v15 = vpop.permute.xlu1 %230  ;;  %v2791_v10 = vld [vmem:[%s4961_s2] ss:$0 sm:$0xff]  ;;  %s3339_s2 = smov 16  }
  0xc6   :  { %268 = vst.msk [vmem:[#allocation4 + $0xb0] sm:$0xff] %vm256_vm2, %v231_v15 }
  0xc7   :  { %v423_v14 = vpop.permute.xlu0 %422 }
  0xc8   :  { %461 = vst.msk [vmem:[#allocation4 + $0xa0] sm:$0xff] %vm450_vm4, %v423_v14  ;;  %v517_v17 = vld [vmem:[#allocation4 + $0x90] sm:$0xff] }
  0xc9   :  { %716 = vmatmul.mubr.f32.gmra.mxu0 %v517_v17  ;;  %v425_v19 = vpop.permute.xlu1 %424 }
  0xca   :  { %2802 = vmatprep.mubr.msk.f32.mxu0 %vm27_vm0, %v520_v16 }
  0xcb   :  { %v328_v18 = vpop.permute.xlu0 %327 }
  0xcc   :  { %365 = vst.msk [vmem:[#allocation4 + $0xb0] sm:$0xff] %vm353_vm3, %v328_v18 }
  0xcd   :  { %462 = vst.msk [vmem:[#allocation4 + $0xb0] sm:$0xff] %vm450_vm4, %v425_v19  ;;  %v330_v22 = vpop.permute.xlu1 %329 }
  0xcf   :  { %v233_v21 = vpop.permute.xlu0 %232  ;;  %v519_v23 = vld [vmem:[#allocation4 + $0xa0] sm:$0xff] }
  0xd0   :  { %269 = vst.msk [vmem:[#allocation4 + $0xc0] sm:$0xff] %vm256_vm2, %v233_v21  ;;  %721 = vmatmul.mubr.f32.gmra.mxu0 %v519_v23 }
  0xd1   :  { %366 = vst.msk [vmem:[#allocation4 + $0xc0] sm:$0xff] %vm353_vm3, %v330_v22  ;;  %2803 = vmatprep.mubr.msk.f32.mxu0 %vm27_vm0, %v522_v20  ;;  %v235_v25 = vpop.permute.xlu1 %234 }
  0xd2   :  { %270 = vst.msk [vmem:[#allocation4 + $0xd0] sm:$0xff] %vm256_vm2, %v235_v25 }
  0xd3   :  { %v427_v24 = vpop.permute.xlu0 %426 }
  0xd4   :  { %463 = vst.msk [vmem:[#allocation4 + $0xc0] sm:$0xff] %vm450_vm4, %v427_v24  ;;  %v521_v27 = vld [vmem:[#allocation4 + $0xb0] sm:$0xff] }
  0xd5   :  { %726 = vmatmul.mubr.f32.gmra.mxu0 %v521_v27  ;;  %v429_v29 = vpop.permute.xlu1 %428 }
  0xd6   :  { %2804 = vmatprep.mubr.msk.f32.mxu0 %vm27_vm0, %v524_v26 }
  0xd7   :  { %v332_v28 = vpop.permute.xlu0 %331 }
  0xd8   :  { %367 = vst.msk [vmem:[#allocation4 + $0xd0] sm:$0xff] %vm353_vm3, %v332_v28 }
  0xd9   :  { %464 = vst.msk [vmem:[#allocation4 + $0xd0] sm:$0xff] %vm450_vm4, %v429_v29  ;;  %v334_v32 = vpop.permute.xlu1 %333 }
  0xdb   :  { %v237_v31 = vpop.permute.xlu0 %236  ;;  %v523_v33 = vld [vmem:[#allocation4 + $0xc0] sm:$0xff] }
  0xdc   :  { %271 = vst.msk [vmem:[#allocation4 + $0xe0] sm:$0xff] %vm256_vm2, %v237_v31  ;;  %731 = vmatmul.mubr.f32.gmra.mxu0 %v523_v33 }
  0xdd   :  { %368 = vst.msk [vmem:[#allocation4 + $0xe0] sm:$0xff] %vm353_vm3, %v334_v32  ;;  %2805 = vmatprep.mubr.msk.f32.mxu0 %vm27_vm0, %v526_v30  ;;  %v239_v35 = vpop.permute.xlu1 %238  ;;  %v3338_v30 = vmov 1.0  }
  0xde   :  { %272 = vst.msk [vmem:[#allocation4 + $0xf0] sm:$0xff] %vm256_vm2, %v239_v35 }
  0xdf   :  { %v431_v34 = vpop.permute.xlu0 %430 }
  0xe0   :  { %465 = vst.msk [vmem:[#allocation4 + $0xe0] sm:$0xff] %vm450_vm4, %v431_v34  ;;  %v525_v37 = vld [vmem:[#allocation4 + $0xd0] sm:$0xff] }
  0xe1   :  { %736 = vmatmul.mubr.f32.gmra.mxu0 %v525_v37  ;;  %v433_v39 = vpop.permute.xlu1 %432 }
  0xe2   :  { %2806 = vmatprep.mubr.msk.f32.mxu0 %vm27_vm0, %v528_v36 }
  0xe3   :  { %v336_v38 = vpop.permute.xlu0 %335 }
  0xe4   :  { %369 = vst.msk [vmem:[#allocation4 + $0xf0] sm:$0xff] %vm353_vm3, %v336_v38 }
  0xe5   :  { %466 = vst.msk [vmem:[#allocation4 + $0xf0] sm:$0xff] %vm450_vm4, %v433_v39 }
  0xe7   :  { %v527_v41 = vld [vmem:[#allocation4 + $0xe0] sm:$0xff] }
  0xe8   :  { %741 = vmatmul.mubr.f32.gmra.mxu0 %v527_v41 }
  0xe9   :  { %2807 = vmatprep.mubr.msk.f32.mxu0 %vm27_vm0, %v530_v40 }
  0xec   :  { %v529_v42 = vld [vmem:[#allocation4 + $0xf0] sm:$0xff] }
  0xed   :  { %746 = vmatmul.mubr.f32.gmra.mxu0 %v529_v42 }
  0xee   :  { %3142 = vmatprep.mubr.msk.f32.mxu0 %vm3337_vm5, %v3333_v1 }
 0x158   :  { %v3850_v43 = vpop.f32.mrf.mxu0 }
 0x159   :  { %v3920_v28 = vadd.f32 %v2791_v10, %v3850_v43 }
 0x15a   :  { %v674_v44 = vpop.f32.mrf.mxu0 }
 0x15c   :  { %v3852_v45 = vpop.f32.mrf.mxu0 }
 0x15d   :  { %v3915_v27 = vadd.f32 %v2791_v10, %v3852_v45  ;;  %v821_v45 = vmul.f32 %v3920_v28, %v3920_v28 }
 0x15e   :  { %v679_v46 = vpop.f32.mrf.mxu0 }
 0x15f   :  { %v822_v44 = vmul.f32 %v3915_v27, %v3915_v27  ;;  %v1018_v46 = vld [vmem:[#allocation3 + $0x1] sm:$0xff] }
 0x160   :  { %v3854_v47 = vpop.f32.mrf.mxu0  ;;  %1050 = vrot.lane.b32.xlu0 %v1018_v46, %s3339_s2 }
 0x161   :  { %v3910_v26 = vadd.f32 %v2791_v10, %v3854_v47  ;;  %v1026_v47 = vld [vmem:[#allocation3 + $0x91] sm:$0xff] }
 0x162   :  { %v684_v48 = vpop.f32.mrf.mxu0  ;;  %1066 = vrot.lane.b32.xlu1 %v1026_v47, %s3339_s2 }
 0x163   :  { %v823_v43 = vmul.f32 %v3910_v26, %v3910_v26  ;;  %v1115_v48 = vld [vmem:[#allocation3 + $0x2] sm:$0xff] }
 0x164   :  { %1147 = vrot.lane.b32.xlu0 %v1115_v48, %s3335_s17 }
 0x165   :  { %v687_v49 = vpop.f32.mrf.mxu0 }
 0x166   :  { %v3905_v25 = vadd.f32 %v2791_v10, %v687_v49  ;;  %v1123_v49 = vld [vmem:[#allocation3 + $0x92] sm:$0xff] }
 0x167   :  { %v689_v50 = vpop.f32.mrf.mxu0 }
 0x168   :  { %v824_v42 = vmul.f32 %v3905_v25, %v3905_v25  ;;  %1163 = vrot.lane.b32.xlu0 %v1123_v49, %s3335_s17 }
 0x16c   :  { %v692_v51 = vpop.f32.mrf.mxu0 }
 0x16d   :  { %v3901_v24 = vadd.f32 %v2791_v10, %v692_v51 }
 0x16e   :  { %v694_v52 = vpop.f32.mrf.mxu0 }
 0x16f   :  { %v825_v41 = vmul.f32 %v3901_v24, %v3901_v24 }
 0x171   :  { %v697_v53 = vpop.f32.mrf.mxu0 }
 0x172   :  { %v3897_v23 = vadd.f32 %v2791_v10, %v697_v53 }
 0x173   :  { %v699_v54 = vpop.f32.mrf.mxu0 }
 0x174   :  { %v826_v40 = vmul.f32 %v3897_v23, %v3897_v23 }
 0x178   :  { %v702_v55 = vpop.f32.mrf.mxu0 }
 0x179   :  { %v3893_v22 = vadd.f32 %v2791_v10, %v702_v55 }
 0x17a   :  { %v704_v56 = vpop.f32.mrf.mxu0 }
 0x17b   :  { %v827_v39 = vmul.f32 %v3893_v22, %v3893_v22  ;;  %v911_v56 = vlaneseq }
 0x17d   :  { %v707_v57 = vpop.f32.mrf.mxu0 }
 0x17e   :  { %v3889_v21 = vadd.f32 %v2791_v10, %v707_v57 }
 0x17f   :  { %v709_v58 = vpop.f32.mrf.mxu0 }
 0x180   :  { %v828_v38 = vmul.f32 %v3889_v21, %v3889_v21 }
 0x184   :  { %v712_v59 = vpop.f32.mrf.mxu0 }
 0x185   :  { %v3885_v20 = vadd.f32 %v2791_v10, %v712_v59 }
 0x186   :  { %v714_v60 = vpop.f32.mrf.mxu0 }
 0x187   :  { %v829_v37 = vmul.f32 %v3885_v20, %v3885_v20  ;;  %v912_v60 = vshrl.u32 %v911_v56, 7 }
 0x189   :  { %v717_v61 = vpop.f32.mrf.mxu0 }
 0x18a   :  { %v3881_v19 = vadd.f32 %v2791_v10, %v717_v61  ;;  %v986_v61 = vld [vmem:[#allocation3] sm:$0xff] }
 0x18b   :  { %v719_v62 = vpop.f32.mrf.mxu0  ;;  %1002 = vst.msk [vmem:[#allocation5] sm:$0xff] %vm69_vm6, %v986_v61 }
 0x18c   :  { %v830_v36 = vmul.f32 %v3881_v19, %v3881_v19 }
 0x190   :  { %v722_v63 = vpop.f32.mrf.mxu0 }
 0x191   :  { %v3877_v18 = vadd.f32 %v2791_v10, %v722_v63  ;;  %v4058_v63 = vsub.s32 0, %v912_v60 }
 0x192   :  { %v724_v0 = vpop.f32.mrf.mxu0 }
 0x193   :  { %v831_v35 = vmul.f32 %v3877_v18, %v3877_v18 }
 0x195   :  { %v727_v2 = vpop.f32.mrf.mxu0 }
 0x196   :  { %v3873_v17 = vadd.f32 %v2791_v10, %v727_v2 }
 0x197   :  { %v729_v3 = vpop.f32.mrf.mxu0 }
 0x198   :  { %v832_v34 = vmul.f32 %v3873_v17, %v3873_v17  ;;  %v994_v3 = vld [vmem:[#allocation3 + $0x90] sm:$0xff] }
 0x199   :  { %1010 = vst.msk [vmem:[#allocation5 + $0x40] sm:$0xff] %vm69_vm6, %v994_v3 }
 0x19c   :  { %v732_v4 = vpop.f32.mrf.mxu0 }
 0x19d   :  { %v3869_v16 = vadd.f32 %v2791_v10, %v732_v4 }
 0x19e   :  { %v734_v5 = vpop.f32.mrf.mxu0 }
 0x19f   :  { %v833_v33 = vmul.f32 %v3869_v16, %v3869_v16  ;;  %v1431_v5 = vld [vmem:[%s4962_s3 + $0x48] sm:$0xff] }
 0x1a1   :  { %v737_v6 = vpop.f32.mrf.mxu0 }
 0x1a2   :  { %v3865_v15 = vadd.f32 %v2791_v10, %v737_v6 }
 0x1a3   :  { %v739_v7 = vpop.f32.mrf.mxu0 }
 0x1a4   :  { %v834_v32 = vmul.f32 %v3865_v15, %v3865_v15 }
 0x1a8   :  { %v742_v8 = vpop.f32.mrf.mxu0 }
 0x1a9   :  { %v3861_v14 = vadd.f32 %v2791_v10, %v742_v8 }
 0x1aa   :  { %v744_v9 = vpop.f32.mrf.mxu0 }
 0x1ab   :  { %v835_v31 = vmul.f32 %v3861_v14, %v3861_v14 }
 0x1ad   :  { %v747_v11 = vpop.f32.mrf.mxu0 }
 0x1ae   :  { %v3859_v12 = vadd.f32 %v2791_v10, %v747_v11 }
 0x1af   :  { %v749_v13 = vpop.f32.mrf.mxu0 }
 0x1b0   :  { %2997 = vmatpush3.msra.mxu1 %v3859_v12  ;;  %v836_v29 = vmul.f32 %v3859_v12, %v3859_v12  ;;  %v1430_v13 = vld [vmem:[%s4962_s3 + $0x40] sm:$0xff] }
 0x1b1   :  { %2998 = vmatprep.subr.mxu1 %v3333_v1 }
 0x1b2   :  { %2999 = vmatpush3.msra.mxu1 %v3861_v14 }
 0x1b3   :  { %3000 = vmatprep.subr.mxu1 %v3333_v1 }
 0x1b4   :  { %3001 = vmatpush3.msra.mxu1 %v3865_v15 }
 0x1b5   :  { %3002 = vmatprep.subr.mxu1 %v3333_v1 }
 0x1b6   :  { %3003 = vmatpush3.msra.mxu1 %v3869_v16 }
 0x1b7   :  { %3004 = vmatprep.subr.mxu1 %v3333_v1 }
 0x1b8   :  { %3005 = vmatpush3.msra.mxu1 %v3873_v17 }
 0x1b9   :  { %3006 = vmatprep.subr.mxu1 %v3333_v1 }
 0x1ba   :  { %3007 = vmatpush3.msra.mxu1 %v3877_v18 }
 0x1bb   :  { %3008 = vmatprep.subr.mxu1 %v3333_v1 }
 0x1bc   :  { %3009 = vmatpush3.msra.mxu1 %v3881_v19 }
 0x1bd   :  { %3010 = vmatprep.subr.mxu1 %v3333_v1 }
 0x1be   :  { %3011 = vmatpush3.msra.mxu1 %v3885_v20 }
 0x1bf   :  { %3012 = vmatprep.subr.mxu1 %v3333_v1 }
 0x1c0   :  { %3013 = vmatpush3.msra.mxu1 %v3889_v21 }
 0x1c1   :  { %3014 = vmatprep.subr.mxu1 %v3333_v1 }
 0x1c2   :  { %3015 = vmatpush3.msra.mxu1 %v3893_v22 }
 0x1c3   :  { %3016 = vmatprep.subr.mxu1 %v3333_v1 }
 0x1c4   :  { %3017 = vmatpush3.msra.mxu1 %v3897_v23 }
 0x1c5   :  { %3018 = vmatprep.subr.mxu1 %v3333_v1 }
 0x1c6   :  { %3019 = vmatpush3.msra.mxu1 %v3901_v24 }
 0x1c7   :  { %3020 = vmatprep.subr.mxu1 %v3333_v1 }
 0x1c8   :  { %3021 = vmatpush3.msra.mxu1 %v3905_v25 }
 0x1c9   :  { %3022 = vmatprep.subr.mxu1 %v3333_v1 }
 0x1ca   :  { %3023 = vmatpush3.msra.mxu1 %v3910_v26 }
 0x1cb   :  { %3024 = vmatprep.subr.mxu1 %v3333_v1 }
 0x1cc   :  { %3025 = vmatpush3.msra.mxu1 %v3915_v27 }
 0x1cd   :  { %3026 = vmatprep.subr.mxu1 %v3333_v1 }
 0x1ce   :  { %3027 = vmatpush3.msra.mxu1 %v3920_v28 }
 0x1cf   :  { %3029 = vmatmul.mubr.f32.vlgmr.msra.gmra.mxu1 %v3338_v30  ;;  %3031 = vmatprep.subr.mxu1 %v3333_v1 }
 0x1d0   :  { %3032 = vmatpush3.msra.mxu1 %v836_v29  ;;  %3063 = vmatprep.mubr.msk.f32.mxu1 %vm3337_vm5, %v3333_v1 }
 0x1d1   :  { %3033 = vmatprep.subr.mxu1 %v3333_v1 }
 0x1d2   :  { %3034 = vmatpush3.msra.mxu1 %v835_v31  ;;  %v1051_v62 = vpop.permute.xlu0 %1050 }
 0x1d3   :  { %3035 = vmatprep.subr.mxu1 %v3333_v1  ;;  %1099 = vst.msk [vmem:[#allocation5] sm:$0xff] %vm1098_vm8, %v1051_v62 }
 0x1d4   :  { %3036 = vmatpush3.msra.mxu1 %v834_v32  ;;  %v1067_v4 = vpop.permute.xlu1 %1066 }
 0x1d5   :  { %3037 = vmatprep.subr.mxu1 %v3333_v1  ;;  %1107 = vst.msk [vmem:[#allocation5 + $0x40] sm:$0xff] %vm1098_vm8, %v1067_v4 }
 0x1d6   :  { %3038 = vmatpush3.msra.mxu1 %v833_v33  ;;  %v1148_v0 = vpop.permute.xlu0 %1147 }
 0x1d7   :  { %3039 = vmatprep.subr.mxu1 %v3333_v1  ;;  %1196 = vst.msk [vmem:[#allocation5] sm:$0xff] %vm1195_vm9, %v1148_v0  ;;  %v1425_v0 = vld [vmem:[%s4962_s3 + $0x18] sm:$0xff] }
 0x1d8   :  { %3040 = vmatpush3.msra.mxu1 %v832_v34 }
 0x1d9   :  { %3041 = vmatprep.subr.mxu1 %v3333_v1 }
 0x1da   :  { %3042 = vmatpush3.msra.mxu1 %v831_v35  ;;  %v1164_v6 = vpop.permute.xlu0 %1163 }
 0x1db   :  { %3043 = vmatprep.subr.mxu1 %v3333_v1  ;;  %1204 = vst.msk [vmem:[#allocation5 + $0x40] sm:$0xff] %vm1195_vm9, %v1164_v6 }
 0x1dc   :  { %3044 = vmatpush3.msra.mxu1 %v830_v36 }
 0x1dd   :  { %3045 = vmatprep.subr.mxu1 %v3333_v1 }
 0x1de   :  { %3046 = vmatpush3.msra.mxu1 %v829_v37 }
 0x1df   :  { %3047 = vmatprep.subr.mxu1 %v3333_v1 }
 0x1e0   :  { %3048 = vmatpush3.msra.mxu1 %v828_v38 }
 0x1e1   :  { %3049 = vmatprep.subr.mxu1 %v3333_v1 }
 0x1e2   :  { %3050 = vmatpush3.msra.mxu1 %v827_v39 }
 0x1e3   :  { %3051 = vmatprep.subr.mxu1 %v3333_v1 }
 0x1e4   :  { %3052 = vmatpush3.msra.mxu1 %v826_v40 }
 0x1e5   :  { %3053 = vmatprep.subr.mxu1 %v3333_v1 }
 0x1e6   :  { %3054 = vmatpush3.msra.mxu1 %v825_v41 }
 0x1e7   :  { %3055 = vmatprep.subr.mxu1 %v3333_v1 }
 0x1e8   :  { %3056 = vmatpush3.msra.mxu1 %v824_v42 }
 0x1e9   :  { %3057 = vmatprep.subr.mxu1 %v3333_v1 }
 0x1ea   :  { %3058 = vmatpush3.msra.mxu1 %v823_v43 }
 0x1eb   :  { %3059 = vmatprep.subr.mxu1 %v3333_v1 }
 0x1ec   :  { %3060 = vmatpush3.msra.mxu1 %v822_v44 }
 0x1ed   :  { %3061 = vmatprep.subr.mxu1 %v3333_v1 }
 0x1ee   :  { %3062 = vmatpush3.msra.mxu1 %v821_v45  ;;  %v1427_v45 = vld [vmem:[%s4962_s3 + $0x28] sm:$0xff] }
 0x1ef   :  { %3064 = vmatmul.mubr.f32.vlgmr.msra.gmra.mxu1 %v3338_v30  ;;  %3066 = vmatprep.subr.mxu1 %v1431_v5 }
 0x1f0   :  { %3067 = vmatpush3.msra.mxu1 %v1431_v5 }
 0x1f1   :  { %3068 = vmatprep.subr.mxu1 %v1430_v13 }
 0x1f2   :  { %3069 = vmatpush3.msra.mxu1 %v1430_v13 }
 0x28f   :  { %v817_v50 = vpop.f32.mrf.mxu1 }
 0x290   :  { %v907_v52 = vmul.f32 0.0078125, %v817_v50  ;;  %v1426_v50 = vld [vmem:[%s4962_s3 + $0x20] sm:$0xff] }
 0x291   :  { %v3030_v51 = vpop.f32.mrf.mxu1 }
 0x292   :  { %v909_v54 = vmul.f32 %v907_v52, %v907_v52  ;;  %v4062_v2 = vrot.slane %v907_v52, %v4058_v63 }
 0x294   :  { %v915_v7 = vsub.f32 %v3920_v28, %v4062_v2  ;;  %v916_v8 = vsub.f32 %v3915_v27, %v4062_v2  ;;  %v917_v9 = vsub.f32 %v3910_v26, %v4062_v2  ;;  %v918_v10 = vsub.f32 %v3905_v25, %v4062_v2 }
 0x295   :  { %v919_v11 = vsub.f32 %v3901_v24, %v4062_v2  ;;  %v920_v28 = vsub.f32 %v3897_v23, %v4062_v2  ;;  %v921_v27 = vsub.f32 %v3893_v22, %v4062_v2  ;;  %v922_v26 = vsub.f32 %v3889_v21, %v4062_v2 }
 0x296   :  { %v923_v25 = vsub.f32 %v3885_v20, %v4062_v2  ;;  %v924_v31 = vsub.f32 %v3881_v19, %v4062_v2  ;;  %v925_v32 = vsub.f32 %v3877_v18, %v4062_v2  ;;  %v926_v23 = vsub.f32 %v3873_v17, %v4062_v2  ;;  %v1429_v19 = vld [vmem:[%s4962_s3 + $0x38] sm:$0xff] }
 0x297   :  { %v927_v22 = vsub.f32 %v3869_v16, %v4062_v2  ;;  %v928_v21 = vsub.f32 %v3865_v15, %v4062_v2  ;;  %v929_v20 = vsub.f32 %v3861_v14, %v4062_v2  ;;  %v930_v18 = vsub.f32 %v3859_v12, %v4062_v2  ;;  %3070 = vmatprep.subr.mxu1 %v1429_v19  ;;  %v1428_v16 = vld [vmem:[%s4962_s3 + $0x30] sm:$0xff] }
 0x298   :  { %3071 = vmatpush3.msra.mxu1 %v1429_v19  ;;  %v1424_v2 = vld [vmem:[%s4962_s3 + $0x10] sm:$0xff] }
 0x299   :  { %3072 = vmatprep.subr.mxu1 %v1428_v16 }
 0x29a   :  { %3073 = vmatpush3.msra.mxu1 %v1428_v16 }
 0x29b   :  { %3074 = vmatprep.subr.mxu1 %v1427_v45 }
 0x29c   :  { %3075 = vmatpush3.msra.mxu1 %v1427_v45 }
 0x29d   :  { %3076 = vmatprep.subr.mxu1 %v1426_v50 }
 0x29e   :  { %3077 = vmatpush3.msra.mxu1 %v1426_v50 }
 0x29f   :  { %3078 = vmatprep.subr.mxu1 %v1425_v0 }
 0x2a0   :  { %3079 = vmatpush3.msra.mxu1 %v1425_v0 }
 0x2a1   :  { %3080 = vmatprep.subr.mxu1 %v1424_v2 }
 0x2a2   :  { %3081 = vmatpush3.msra.mxu1 %v1424_v2 }
 0x2af   :  { %v903_v53 = vpop.f32.mrf.mxu1 }
 0x2b0   :  { %v908_v55 = vmul.f32 0.0078125, %v903_v53 }
 0x2b1   :  { %v3065_v57 = vpop.f32.mrf.mxu1 }
 0x2b2   :  { %v910_v58 = vsub.f32 %v908_v55, %v909_v54 }
 0x2b4   :  { %v931_v59 = vadd.f32 1e-05, %v910_v58 }
 0x2b6   :  { %3305 = vrsqrt.f32 %v931_v59 }
 0x2c3   :  { %v3306_v29 = vpop.eup %3305 }
 0x2c4   :  { %v936_v24 = vrot.slane %v3306_v29, %v4058_v63 }
 0x2c6   :  { %v937_v33 = vmul.f32 %v936_v24, %v915_v7  ;;  %v938_v34 = vmul.f32 %v936_v24, %v916_v8  ;;  %v939_v17 = vmul.f32 %v936_v24, %v917_v9  ;;  %v940_v35 = vmul.f32 %v936_v24, %v918_v10 }
 0x2c7   :  { %v941_v15 = vmul.f32 %v936_v24, %v919_v11  ;;  %v942_v36 = vmul.f32 %v936_v24, %v920_v28  ;;  %v943_v37 = vmul.f32 %v936_v24, %v921_v27  ;;  %v944_v14 = vmul.f32 %v936_v24, %v922_v26 }
 0x2c8   :  { %v953_v38 = vmax.f32 %v937_v33, 0.0  ;;  %v954_v39 = vmax.f32 %v938_v34, 0.0  ;;  %v955_v40 = vmax.f32 %v939_v17, 0.0  ;;  %v956_v41 = vmax.f32 %v940_v35, 0.0 }
 0x2c9   :  { %v957_v12 = vmax.f32 %v941_v15, 0.0  ;;  %v958_v42 = vmax.f32 %v942_v36, 0.0  ;;  %v959_v43 = vmax.f32 %v943_v37, 0.0  ;;  %v960_v44 = vmax.f32 %v944_v14, 0.0 }
 0x2ca   :  { %970 = vst.msk [vmem:[#allocation3 + $0x11] sm:$0xff] %vm69_vm6, %v953_v38  ;;  %971 = vst.msk [vmem:[#allocation3 + $0x21] sm:$0xff] %vm69_vm6, %v954_v39  ;;  %v945_v46 = vmul.f32 %v936_v24, %v923_v25  ;;  %v946_v47 = vmul.f32 %v936_v24, %v924_v31  ;;  %v947_v48 = vmul.f32 %v936_v24, %v925_v32 }
 0x2cb   :  { %972 = vst.msk [vmem:[#allocation3 + $0x31] sm:$0xff] %vm69_vm6, %v955_v40  ;;  %973 = vst.msk [vmem:[#allocation3 + $0x41] sm:$0xff] %vm69_vm6, %v956_v41  ;;  %v948_v49 = vmul.f32 %v936_v24, %v926_v23  ;;  %v949_v51 = vmul.f32 %v936_v24, %v927_v22  ;;  %v950_v52 = vmul.f32 %v936_v24, %v928_v21  ;;  %v1423_v23 = vld [vmem:[%s4962_s3 + $0x8] sm:$0xff]  ;;  %v1422_v21 = vld [vmem:[%s4962_s3] sm:$0xff] }
 0x2cc   :  { %974 = vst.msk [vmem:[#allocation3 + $0x51] sm:$0xff] %vm69_vm6, %v957_v12  ;;  %975 = vst.msk [vmem:[#allocation3 + $0x61] sm:$0xff] %vm69_vm6, %v958_v42  ;;  %v951_v53 = vmul.f32 %v936_v24, %v929_v20  ;;  %v952_v54 = vmul.f32 %v936_v24, %v930_v18  ;;  %v961_v55 = vmax.f32 %v945_v46, 0.0  ;;  %v962_v56 = vmax.f32 %v946_v47, 0.0  ;;  %3082 = vmatprep.subr.mxu1 %v1423_v23 }
 0x2cd   :  { %976 = vst.msk [vmem:[#allocation3 + $0x71] sm:$0xff] %vm69_vm6, %v959_v43  ;;  %977 = vst.msk [vmem:[#allocation3 + $0x81] sm:$0xff] %vm69_vm6, %v960_v44  ;;  %v963_v57 = vmax.f32 %v947_v48, 0.0  ;;  %v964_v58 = vmax.f32 %v948_v49, 0.0  ;;  %v965_v59 = vmax.f32 %v949_v51, 0.0  ;;  %v966_v60 = vmax.f32 %v950_v52, 0.0  ;;  %3083 = vmatpush3.msra.mxu1 %v1423_v23 }
 0x2ce   :  { %v967_v61 = vmax.f32 %v951_v53, 0.0  ;;  %v968_v62 = vmax.f32 %v952_v54, 0.0  ;;  %978 = vst.msk [vmem:[#allocation3 + $0xa1] sm:$0xff] %vm69_vm6, %v961_v55  ;;  %979 = vst.msk [vmem:[#allocation3 + $0xb1] sm:$0xff] %vm69_vm6, %v962_v56  ;;  %3084 = vmatprep.subr.mxu1 %v1422_v21 }
 0x2cf   :  { %980 = vst.msk [vmem:[#allocation3 + $0xc1] sm:$0xff] %vm69_vm6, %v963_v57  ;;  %981 = vst.msk [vmem:[#allocation3 + $0xd1] sm:$0xff] %vm69_vm6, %v964_v58  ;;  %3085 = vmatpush3.msra.mxu1 %v1422_v21 }
 0x2d0   :  { %982 = vst.msk [vmem:[#allocation3 + $0xe1] sm:$0xff] %vm69_vm6, %v965_v59  ;;  %983 = vst.msk [vmem:[#allocation3 + $0xf1] sm:$0xff] %vm69_vm6, %v966_v60  ;;  %3145 = vmatprep.subr.mxu1 %v3333_v1 }
 0x2d1   :  { %984 = vst.msk [vmem:[#allocation3 + $0x101] sm:$0xff] %vm69_vm6, %v967_v61  ;;  %985 = vst.msk [vmem:[#allocation3 + $0x111] sm:$0xff] %vm69_vm6, %v968_v62  ;;  %v1212_v3 = vld [vmem:[#allocation3 + $0x10] sm:$0xff]  ;;  %v1213_v5 = vld [vmem:[#allocation3 + $0x20] sm:$0xff] }
 0x2d2   :  { %v1019_v4 = vld [vmem:[#allocation3 + $0x11] sm:$0xff]  ;;  %1244 = vrot.lane.b32.xlu0 %v1212_v3, %s3340_s29  ;;  %1003 = vst.msk [vmem:[#allocation5 + $0x8] sm:$0xff] %vm69_vm6, %v1212_v3  ;;  %1004 = vst.msk [vmem:[#allocation5 + $0x10] sm:$0xff] %vm69_vm6, %v1213_v5  ;;  %v1215_v7 = vld [vmem:[#allocation3 + $0x40] sm:$0xff] }
 0x2d3   :  { %1052 = vrot.lane.b32.xlu1 %v1019_v4, %s3339_s2  ;;  %v1214_v6 = vld [vmem:[#allocation3 + $0x30] sm:$0xff]  ;;  %1006 = vst.msk [vmem:[#allocation5 + $0x20] sm:$0xff] %vm69_vm6, %v1215_v7  ;;  %v1217_v10 = vld [vmem:[#allocation3 + $0x60] sm:$0xff] }
 0x2d4   :  { %1005 = vst.msk [vmem:[#allocation5 + $0x18] sm:$0xff] %vm69_vm6, %v1214_v6  ;;  %v1116_v8 = vld [vmem:[#allocation3 + $0x12] sm:$0xff]  ;;  %1008 = vst.msk [vmem:[#allocation5 + $0x30] sm:$0xff] %vm69_vm6, %v1217_v10  ;;  %v1310_v29 = vld [vmem:[#allocation3 + $0x21] sm:$0xff] }
 0x2d5   :  { %v1216_v9 = vld [vmem:[#allocation3 + $0x50] sm:$0xff]  ;;  %v1220_v13 = vld [vmem:[#allocation3 + $0xa0] sm:$0xff] }
 0x2d6   :  { %1341 = vrot.lane.b32.xlu0 %v1019_v4, %s3336_s20  ;;  %1007 = vst.msk [vmem:[#allocation5 + $0x28] sm:$0xff] %vm69_vm6, %v1216_v9  ;;  %v1218_v11 = vld [vmem:[#allocation3 + $0x70] sm:$0xff]  ;;  %1011 = vst.msk [vmem:[#allocation5 + $0x48] sm:$0xff] %vm69_vm6, %v1220_v13  ;;  %v4157_v27 = vld [vmem:[#allocation3 + $0xc0] sm:$0xff] }
 0x2d7   :  { %1149 = vrot.lane.b32.xlu1 %v1116_v8, %s3335_s17  ;;  %1009 = vst.msk [vmem:[#allocation5 + $0x38] sm:$0xff] %vm69_vm6, %v1218_v11  ;;  %v4155_v28 = vld [vmem:[#allocation3 + $0xb0] sm:$0xff]  ;;  %1013 = vst.msk [vmem:[#allocation5 + $0x58] sm:$0xff] %vm69_vm6, %v4157_v27  ;;  %v4165_v25 = vld [vmem:[#allocation3 + $0xe0] sm:$0xff] }
 0x2d8   :  { %1012 = vst.msk [vmem:[#allocation5 + $0x50] sm:$0xff] %vm69_vm6, %v4155_v28  ;;  %v4163_v26 = vld [vmem:[#allocation3 + $0xd0] sm:$0xff]  ;;  %v1117_v24 = vld [vmem:[#allocation3 + $0x22] sm:$0xff]  ;;  %1015 = vst.msk [vmem:[#allocation5 + $0x68] sm:$0xff] %vm69_vm6, %v4165_v25 }
 0x2d9   :  { %1014 = vst.msk [vmem:[#allocation5 + $0x60] sm:$0xff] %vm69_vm6, %v4163_v26  ;;  %v4173_v31 = vld [vmem:[#allocation3 + $0xf0] sm:$0xff]  ;;  %v4175_v32 = vld [vmem:[#allocation3 + $0x100] sm:$0xff] }
 0x2da   :  { %1343 = vrot.lane.b32.xlu0 %v1310_v29, %s3336_s20  ;;  %1016 = vst.msk [vmem:[#allocation5 + $0x70] sm:$0xff] %vm69_vm6, %v4173_v31  ;;  %1017 = vst.msk [vmem:[#allocation5 + $0x78] sm:$0xff] %vm69_vm6, %v4175_v32  ;;  %v1021_v22 = vld [vmem:[#allocation3 + $0x31] sm:$0xff]  ;;  %v1312_v19 = vld [vmem:[#allocation3 + $0x41] sm:$0xff] }
 0x2db   :  { %1246 = vrot.lane.b32.xlu1 %v1213_v5, %s3340_s29  ;;  %v1118_v20 = vld [vmem:[#allocation3 + $0x32] sm:$0xff]  ;;  %v1119_v18 = vld [vmem:[#allocation3 + $0x42] sm:$0xff] }
 0x2dc   :  { %v1023_v33 = vld [vmem:[#allocation3 + $0x51] sm:$0xff]  ;;  %v1314_v17 = vld [vmem:[#allocation3 + $0x61] sm:$0xff] }
 0x2dd   :  { %v1120_v34 = vld [vmem:[#allocation3 + $0x52] sm:$0xff]  ;;  %v1121_v35 = vld [vmem:[#allocation3 + $0x62] sm:$0xff] }
 0x2de   :  { %1151 = vrot.lane.b32.xlu0 %v1117_v24, %s3335_s17  ;;  %v1025_v16 = vld [vmem:[#allocation3 + $0x71] sm:$0xff]  ;;  %v1316_v36 = vld [vmem:[#allocation3 + $0x81] sm:$0xff] }
 0x2df   :  { %1054 = vrot.lane.b32.xlu1 %v1310_v29, %s3339_s2  ;;  %v1122_v15 = vld [vmem:[#allocation3 + $0x72] sm:$0xff]  ;;  %v1219_v37 = vld [vmem:[#allocation3 + $0x80] sm:$0xff] }
 0x2e0   :  { %v1027_v14 = vld [vmem:[#allocation3 + $0xa1] sm:$0xff]  ;;  %v1318_v39 = vld [vmem:[#allocation3 + $0xb1] sm:$0xff] }
 0x2e1   :  { %v1124_v38 = vld [vmem:[#allocation3 + $0xa2] sm:$0xff]  ;;  %v1125_v40 = vld [vmem:[#allocation3 + $0xb2] sm:$0xff] }
 0x2e2   :  { %1248 = vrot.lane.b32.xlu0 %v1214_v6, %s3340_s29  ;;  %v1029_v41 = vld [vmem:[#allocation3 + $0xc1] sm:$0xff]  ;;  %v1320_v42 = vld [vmem:[#allocation3 + $0xd1] sm:$0xff] }
 0x2e3   :  { %1056 = vrot.lane.b32.xlu1 %v1021_v22, %s3339_s2  ;;  %v1126_v12 = vld [vmem:[#allocation3 + $0xc2] sm:$0xff]  ;;  %v1127_v43 = vld [vmem:[#allocation3 + $0xd2] sm:$0xff] }
 0x2e4   :  { %v1031_v44 = vld [vmem:[#allocation3 + $0xe1] sm:$0xff]  ;;  %v1322_v46 = vld [vmem:[#allocation3 + $0xf1] sm:$0xff] }
 0x2e5   :  { %v1128_v45 = vld [vmem:[#allocation3 + $0xe2] sm:$0xff]  ;;  %v1129_v47 = vld [vmem:[#allocation3 + $0xf2] sm:$0xff] }
 0x2e6   :  { %1345 = vrot.lane.b32.xlu0 %v1021_v22, %s3336_s20  ;;  %v1033_v48 = vld [vmem:[#allocation3 + $0x101] sm:$0xff]  ;;  %v1227_v52 = vld [vmem:[#allocation3 + $0x110] sm:$0xff] }
 0x2e7   :  { %1153 = vrot.lane.b32.xlu1 %v1118_v20, %s3335_s17  ;;  %v1130_v49 = vld [vmem:[#allocation3 + $0x102] sm:$0xff]  ;;  %v1324_v55 = vld [vmem:[#allocation3 + $0x111] sm:$0xff] }
 0x2ea   :  { %1347 = vrot.lane.b32.xlu0 %v1312_v19, %s3336_s20 }
 0x2eb   :  { %1250 = vrot.lane.b32.xlu1 %v1215_v7, %s3340_s29 }
 0x2ee   :  { %1155 = vrot.lane.b32.xlu0 %v1119_v18, %s3335_s17 }
 0x2ef   :  { %1058 = vrot.lane.b32.xlu1 %v1312_v19, %s3339_s2 }
 0x2f2   :  { %1252 = vrot.lane.b32.xlu0 %v1216_v9, %s3340_s29 }
 0x2f3   :  { %1060 = vrot.lane.b32.xlu1 %v1023_v33, %s3339_s2 }
 0x2f6   :  { %1349 = vrot.lane.b32.xlu0 %v1023_v33, %s3336_s20 }
 0x2f7   :  { %1157 = vrot.lane.b32.xlu1 %v1120_v34, %s3335_s17 }
 0x2fa   :  { %1351 = vrot.lane.b32.xlu0 %v1314_v17, %s3336_s20 }
 0x2fb   :  { %1254 = vrot.lane.b32.xlu1 %v1217_v10, %s3340_s29 }
 0x2fe   :  { %1159 = vrot.lane.b32.xlu0 %v1121_v35, %s3335_s17 }
 0x2ff   :  { %1062 = vrot.lane.b32.xlu1 %v1314_v17, %s3339_s2 }
 0x302   :  { %1256 = vrot.lane.b32.xlu0 %v1218_v11, %s3340_s29 }
 0x303   :  { %1064 = vrot.lane.b32.xlu1 %v1025_v16, %s3339_s2 }
 0x306   :  { %1353 = vrot.lane.b32.xlu0 %v1025_v16, %s3336_s20 }
 0x307   :  { %1161 = vrot.lane.b32.xlu1 %v1122_v15, %s3335_s17 }
 0x30a   :  { %1355 = vrot.lane.b32.xlu0 %v1316_v36, %s3336_s20 }
 0x30b   :  { %1258 = vrot.lane.b32.xlu1 %v1219_v37, %s3340_s29 }
 0x30e   :  { %1260 = vrot.lane.b32.xlu0 %v1220_v13, %s3340_s29 }
 0x30f   :  { %1068 = vrot.lane.b32.xlu1 %v1027_v14, %s3339_s2 }
 0x312   :  { %1357 = vrot.lane.b32.xlu0 %v1027_v14, %s3336_s20 }
 0x313   :  { %1165 = vrot.lane.b32.xlu1 %v1124_v38, %s3335_s17 }
 0x316   :  { %1359 = vrot.lane.b32.xlu0 %v1318_v39, %s3336_s20 }
 0x317   :  { %1262 = vrot.lane.b32.xlu1 %v4155_v28, %s3340_s29 }
 0x31a   :  { %1167 = vrot.lane.b32.xlu0 %v1125_v40, %s3335_s17 }
 0x31b   :  { %1070 = vrot.lane.b32.xlu1 %v1318_v39, %s3339_s2 }
 0x31e   :  { %1264 = vrot.lane.b32.xlu0 %v4157_v27, %s3340_s29 }
 0x31f   :  { %1072 = vrot.lane.b32.xlu1 %v1029_v41, %s3339_s2 }
 0x322   :  { %1361 = vrot.lane.b32.xlu0 %v1029_v41, %s3336_s20 }
 0x323   :  { %1169 = vrot.lane.b32.xlu1 %v1126_v12, %s3335_s17 }
 0x326   :  { %1363 = vrot.lane.b32.xlu0 %v1320_v42, %s3336_s20 }
 0x327   :  { %1266 = vrot.lane.b32.xlu1 %v4163_v26, %s3340_s29 }
 0x32a   :  { %1171 = vrot.lane.b32.xlu0 %v1127_v43, %s3335_s17 }
 0x32b   :  { %1074 = vrot.lane.b32.xlu1 %v1320_v42, %s3339_s2 }
 0x32e   :  { %1268 = vrot.lane.b32.xlu0 %v4165_v25, %s3340_s29 }
 0x32f   :  { %1076 = vrot.lane.b32.xlu1 %v1031_v44, %s3339_s2 }
 0x332   :  { %1365 = vrot.lane.b32.xlu0 %v1031_v44, %s3336_s20 }
 0x333   :  { %1173 = vrot.lane.b32.xlu1 %v1128_v45, %s3335_s17 }
 0x336   :  { %1367 = vrot.lane.b32.xlu0 %v1322_v46, %s3336_s20 }
 0x337   :  { %1270 = vrot.lane.b32.xlu1 %v4173_v31, %s3340_s29 }
 0x33a   :  { %1175 = vrot.lane.b32.xlu0 %v1129_v47, %s3335_s17 }
 0x33b   :  { %1078 = vrot.lane.b32.xlu1 %v1322_v46, %s3339_s2 }
 0x33e   :  { %1272 = vrot.lane.b32.xlu0 %v4175_v32, %s3340_s29 }
 0x33f   :  { %1080 = vrot.lane.b32.xlu1 %v1033_v48, %s3339_s2 }
 0x342   :  { %1369 = vrot.lane.b32.xlu0 %v1033_v48, %s3336_s20 }
 0x343   :  { %1177 = vrot.lane.b32.xlu1 %v1130_v49, %s3335_s17 }
 0x344   :  { %v1245_v50 = vpop.permute.xlu0 %1244 }
 0x345   :  { %v1053_v51 = vpop.permute.xlu1 %1052  ;;  %1293 = vst.msk [vmem:[#allocation5] sm:$0xff] %vm1292_vm10, %v1245_v50 }
 0x346   :  { %1100 = vst.msk [vmem:[#allocation5 + $0x8] sm:$0xff] %vm1098_vm8, %v1053_v51 }
 0x347   :  { %1274 = vrot.lane.b32.xlu1 %v1227_v52, %s3340_s29 }
 0x348   :  { %v1342_v53 = vpop.permute.xlu0 %1341 }
 0x349   :  { %v1150_v54 = vpop.permute.xlu1 %1149  ;;  %1390 = vst.msk [vmem:[#allocation5] sm:$0xff] %vm1389_vm11, %v1342_v53 }
 0x34a   :  { %1197 = vst.msk [vmem:[#allocation5 + $0x8] sm:$0xff] %vm1195_vm9, %v1150_v54 }
 0x34b   :  { %1371 = vrot.lane.b32.xlu1 %v1324_v55, %s3336_s20 }
 0x34c   :  { %v1344_v56 = vpop.permute.xlu0 %1343 }
 0x34d   :  { %v1247_v57 = vpop.permute.xlu1 %1246 }
 0x34e   :  { %1294 = vst.msk [vmem:[#allocation5 + $0x8] sm:$0xff] %vm1292_vm10, %v1247_v57 }
 0x34f   :  { %1391 = vst.msk [vmem:[#allocation5 + $0x8] sm:$0xff] %vm1389_vm11, %v1344_v56 }
 0x350   :  { %v1152_v58 = vpop.permute.xlu0 %1151  ;;  %v1406_v60 = vld [vmem:[#allocation5] sm:$0xff] }
 0x351   :  { %v1055_v59 = vpop.permute.xlu1 %1054  ;;  %3086 = vmatprep.mubr.msk.f32.mxu1 %vm1439_vm12, %v1406_v60 }
 0x352   :  { %1101 = vst.msk [vmem:[#allocation5 + $0x10] sm:$0xff] %vm1098_vm8, %v1055_v59 }
 0x353   :  { %1198 = vst.msk [vmem:[#allocation5 + $0x10] sm:$0xff] %vm1195_vm9, %v1152_v58 }
 0x354   :  { %v1249_v61 = vpop.permute.xlu0 %1248 }
 0x355   :  { %v1057_v62 = vpop.permute.xlu1 %1056  ;;  %1295 = vst.msk [vmem:[#allocation5 + $0x10] sm:$0xff] %vm1292_vm10, %v1249_v61 }
 0x356   :  { %1102 = vst.msk [vmem:[#allocation5 + $0x18] sm:$0xff] %vm1098_vm8, %v1057_v62  ;;  %v1407_v0 = vld [vmem:[#allocation5 + $0x8] sm:$0xff] }
 0x357   :  { %3087 = vmatmul.mubr.msk.f32.vlgmr.msra.gmra.mxu1 %vm1439_vm12, %v1407_v0 }
 0x358   :  { %v1346_v2 = vpop.permute.xlu0 %1345 }
 0x359   :  { %v1154_v3 = vpop.permute.xlu1 %1153  ;;  %1392 = vst.msk [vmem:[#allocation5 + $0x10] sm:$0xff] %vm1389_vm11, %v1346_v2 }
 0x35a   :  { %1199 = vst.msk [vmem:[#allocation5 + $0x18] sm:$0xff] %vm1195_vm9, %v1154_v3 }
 0x35c   :  { %v1348_v4 = vpop.permute.xlu0 %1347 }
 0x35d   :  { %v1251_v5 = vpop.permute.xlu1 %1250 }
 0x35e   :  { %1296 = vst.msk [vmem:[#allocation5 + $0x18] sm:$0xff] %vm1292_vm10, %v1251_v5 }
 0x35f   :  { %1393 = vst.msk [vmem:[#allocation5 + $0x18] sm:$0xff] %vm1389_vm11, %v1348_v4 }
 0x360   :  { %v1156_v6 = vpop.permute.xlu0 %1155  ;;  %v1408_v8 = vld [vmem:[#allocation5 + $0x10] sm:$0xff] }
 0x361   :  { %v1059_v7 = vpop.permute.xlu1 %1058  ;;  %3089 = vmatprep.mubr.msk.f32.mxu1 %vm1439_vm12, %v1408_v8 }
 0x362   :  { %1103 = vst.msk [vmem:[#allocation5 + $0x20] sm:$0xff] %vm1098_vm8, %v1059_v7 }
 0x363   :  { %1200 = vst.msk [vmem:[#allocation5 + $0x20] sm:$0xff] %vm1195_vm9, %v1156_v6 }
 0x364   :  { %v1253_v9 = vpop.permute.xlu0 %1252 }
 0x365   :  { %v1061_v10 = vpop.permute.xlu1 %1060  ;;  %1297 = vst.msk [vmem:[#allocation5 + $0x20] sm:$0xff] %vm1292_vm10, %v1253_v9 }
 0x366   :  { %1104 = vst.msk [vmem:[#allocation5 + $0x28] sm:$0xff] %vm1098_vm8, %v1061_v10  ;;  %v1409_v11 = vld [vmem:[#allocation5 + $0x18] sm:$0xff] }
 0x367   :  { %3090 = vmatmul.mubr.msk.f32.gmra.mxu1 %vm1439_vm12, %v1409_v11 }
 0x368   :  { %v1350_v13 = vpop.permute.xlu0 %1349 }
 0x369   :  { %v1158_v29 = vpop.permute.xlu1 %1157  ;;  %1394 = vst.msk [vmem:[#allocation5 + $0x20] sm:$0xff] %vm1389_vm11, %v1350_v13 }
 0x36a   :  { %1201 = vst.msk [vmem:[#allocation5 + $0x28] sm:$0xff] %vm1195_vm9, %v1158_v29 }
 0x36c   :  { %v1352_v28 = vpop.permute.xlu0 %1351 }
 0x36d   :  { %v1255_v27 = vpop.permute.xlu1 %1254 }
 0x36e   :  { %1298 = vst.msk [vmem:[#allocation5 + $0x28] sm:$0xff] %vm1292_vm10, %v1255_v27 }
 0x36f   :  { %1395 = vst.msk [vmem:[#allocation5 + $0x28] sm:$0xff] %vm1389_vm11, %v1352_v28 }
 0x370   :  { %v1160_v26 = vpop.permute.xlu0 %1159  ;;  %v1410_v24 = vld [vmem:[#allocation5 + $0x20] sm:$0xff] }
 0x371   :  { %v1063_v25 = vpop.permute.xlu1 %1062  ;;  %3092 = vmatprep.mubr.msk.f32.mxu1 %vm1439_vm12, %v1410_v24 }
 0x372   :  { %1105 = vst.msk [vmem:[#allocation5 + $0x30] sm:$0xff] %vm1098_vm8, %v1063_v25 }
 0x373   :  { %1202 = vst.msk [vmem:[#allocation5 + $0x30] sm:$0xff] %vm1195_vm9, %v1160_v26 }
 0x374   :  { %v1257_v31 = vpop.permute.xlu0 %1256 }
 0x375   :  { %v1065_v32 = vpop.permute.xlu1 %1064  ;;  %1299 = vst.msk [vmem:[#allocation5 + $0x30] sm:$0xff] %vm1292_vm10, %v1257_v31  ;;  %v4337_v31 = vld [vmem:[%s4963_s4] ss:$0 sm:$0xff] }
 0x376   :  { %1106 = vst.msk [vmem:[#allocation5 + $0x38] sm:$0xff] %vm1098_vm8, %v1065_v32  ;;  %v1411_v23 = vld [vmem:[#allocation5 + $0x28] sm:$0xff] }
 0x377   :  { %3093 = vmatmul.mubr.msk.f32.gmra.mxu1 %vm1439_vm12, %v1411_v23 }
 0x378   :  { %v1354_v22 = vpop.permute.xlu0 %1353 }
 0x379   :  { %v1162_v21 = vpop.permute.xlu1 %1161  ;;  %1396 = vst.msk [vmem:[#allocation5 + $0x30] sm:$0xff] %vm1389_vm11, %v1354_v22 }
 0x37a   :  { %1203 = vst.msk [vmem:[#allocation5 + $0x38] sm:$0xff] %vm1195_vm9, %v1162_v21 }
 0x37c   :  { %v1356_v20 = vpop.permute.xlu0 %1355 }
 0x37d   :  { %v1259_v19 = vpop.permute.xlu1 %1258 }
 0x37e   :  { %1300 = vst.msk [vmem:[#allocation5 + $0x38] sm:$0xff] %vm1292_vm10, %v1259_v19 }
 0x37f   :  { %1397 = vst.msk [vmem:[#allocation5 + $0x38] sm:$0xff] %vm1389_vm11, %v1356_v20 }
 0x380   :  { %v1261_v18 = vpop.permute.xlu0 %1260  ;;  %v1412_v34 = vld [vmem:[#allocation5 + $0x30] sm:$0xff] }
 0x381   :  { %v1069_v33 = vpop.permute.xlu1 %1068  ;;  %1301 = vst.msk [vmem:[#allocation5 + $0x40] sm:$0xff] %vm1292_vm10, %v1261_v18  ;;  %3095 = vmatprep.mubr.msk.f32.mxu1 %vm1439_vm12, %v1412_v34 }
 0x382   :  { %1108 = vst.msk [vmem:[#allocation5 + $0x48] sm:$0xff] %vm1098_vm8, %v1069_v33 }
 0x384   :  { %v1358_v17 = vpop.permute.xlu0 %1357 }
 0x385   :  { %v1166_v35 = vpop.permute.xlu1 %1165  ;;  %1398 = vst.msk [vmem:[#allocation5 + $0x40] sm:$0xff] %vm1389_vm11, %v1358_v17 }
 0x386   :  { %1205 = vst.msk [vmem:[#allocation5 + $0x48] sm:$0xff] %vm1195_vm9, %v1166_v35  ;;  %v1413_v16 = vld [vmem:[#allocation5 + $0x38] sm:$0xff] }
 0x387   :  { %3096 = vmatmul.mubr.msk.f32.gmra.mxu1 %vm1439_vm12, %v1413_v16 }
 0x388   :  { %v1360_v15 = vpop.permute.xlu0 %1359 }
 0x389   :  { %v1263_v36 = vpop.permute.xlu1 %1262 }
 0x38a   :  { %1302 = vst.msk [vmem:[#allocation5 + $0x48] sm:$0xff] %vm1292_vm10, %v1263_v36 }
 0x38b   :  { %1399 = vst.msk [vmem:[#allocation5 + $0x48] sm:$0xff] %vm1389_vm11, %v1360_v15 }
 0x38c   :  { %v1168_v37 = vpop.permute.xlu0 %1167  ;;  %v1414_v38 = vld [vmem:[#allocation5 + $0x40] sm:$0xff] }
 0x38d   :  { %v1071_v14 = vpop.permute.xlu1 %1070  ;;  %3098 = vmatprep.mubr.msk.f32.mxu1 %vm1439_vm12, %v1414_v38 }
 0x38e   :  { %1109 = vst.msk [vmem:[#allocation5 + $0x50] sm:$0xff] %vm1098_vm8, %v1071_v14 }
 0x38f   :  { %1206 = vst.msk [vmem:[#allocation5 + $0x50] sm:$0xff] %vm1195_vm9, %v1168_v37 }
 0x390   :  { %v1265_v39 = vpop.permute.xlu0 %1264 }
 0x391   :  { %v1073_v40 = vpop.permute.xlu1 %1072  ;;  %1303 = vst.msk [vmem:[#allocation5 + $0x50] sm:$0xff] %vm1292_vm10, %v1265_v39 }
 0x392   :  { %1110 = vst.msk [vmem:[#allocation5 + $0x58] sm:$0xff] %vm1098_vm8, %v1073_v40  ;;  %v1415_v41 = vld [vmem:[#allocation5 + $0x48] sm:$0xff] }
 0x393   :  { %3099 = vmatmul.mubr.msk.f32.gmra.mxu1 %vm1439_vm12, %v1415_v41 }
 0x394   :  { %v1362_v12 = vpop.permute.xlu0 %1361 }
 0x395   :  { %v1170_v42 = vpop.permute.xlu1 %1169  ;;  %1400 = vst.msk [vmem:[#allocation5 + $0x50] sm:$0xff] %vm1389_vm11, %v1362_v12 }
 0x396   :  { %1207 = vst.msk [vmem:[#allocation5 + $0x58] sm:$0xff] %vm1195_vm9, %v1170_v42 }
 0x398   :  { %v1364_v43 = vpop.permute.xlu0 %1363 }
 0x399   :  { %v1267_v44 = vpop.permute.xlu1 %1266 }
 0x39a   :  { %1304 = vst.msk [vmem:[#allocation5 + $0x58] sm:$0xff] %vm1292_vm10, %v1267_v44 }
 0x39b   :  { %1401 = vst.msk [vmem:[#allocation5 + $0x58] sm:$0xff] %vm1389_vm11, %v1364_v43 }
 0x39c   :  { %v1172_v45 = vpop.permute.xlu0 %1171  ;;  %v1416_v47 = vld [vmem:[#allocation5 + $0x50] sm:$0xff] }
 0x39d   :  { %v1075_v46 = vpop.permute.xlu1 %1074  ;;  %3101 = vmatprep.mubr.msk.f32.mxu1 %vm1439_vm12, %v1416_v47 }
 0x39e   :  { %1111 = vst.msk [vmem:[#allocation5 + $0x60] sm:$0xff] %vm1098_vm8, %v1075_v46 }
 0x39f   :  { %1208 = vst.msk [vmem:[#allocation5 + $0x60] sm:$0xff] %vm1195_vm9, %v1172_v45 }
 0x3a0   :  { %v1269_v48 = vpop.permute.xlu0 %1268 }
 0x3a1   :  { %v1077_v49 = vpop.permute.xlu1 %1076  ;;  %1305 = vst.msk [vmem:[#allocation5 + $0x60] sm:$0xff] %vm1292_vm10, %v1269_v48 }
 0x3a2   :  { %1112 = vst.msk [vmem:[#allocation5 + $0x68] sm:$0xff] %vm1098_vm8, %v1077_v49  ;;  %v1417_v50 = vld [vmem:[#allocation5 + $0x58] sm:$0xff] }
 0x3a3   :  { %3102 = vmatmul.mubr.msk.f32.gmra.mxu1 %vm1439_vm12, %v1417_v50 }
 0x3a4   :  { %v1366_v51 = vpop.permute.xlu0 %1365 }
 0x3a5   :  { %v1174_v52 = vpop.permute.xlu1 %1173  ;;  %1402 = vst.msk [vmem:[#allocation5 + $0x60] sm:$0xff] %vm1389_vm11, %v1366_v51 }
 0x3a6   :  { %1209 = vst.msk [vmem:[#allocation5 + $0x68] sm:$0xff] %vm1195_vm9, %v1174_v52 }
 0x3a8   :  { %v1368_v53 = vpop.permute.xlu0 %1367 }
 0x3a9   :  { %v1271_v54 = vpop.permute.xlu1 %1270 }
 0x3aa   :  { %1306 = vst.msk [vmem:[#allocation5 + $0x68] sm:$0xff] %vm1292_vm10, %v1271_v54 }
 0x3ab   :  { %1403 = vst.msk [vmem:[#allocation5 + $0x68] sm:$0xff] %vm1389_vm11, %v1368_v53 }
 0x3ac   :  { %v1176_v55 = vpop.permute.xlu0 %1175  ;;  %v1418_v57 = vld [vmem:[#allocation5 + $0x60] sm:$0xff] }
 0x3ad   :  { %v1079_v56 = vpop.permute.xlu1 %1078  ;;  %3104 = vmatprep.mubr.msk.f32.mxu1 %vm1439_vm12, %v1418_v57  ;;  %v1995_v57 = vld [vmem:[#allocation3 + $0x2] sm:$0xff] }
 0x3ae   :  { %1113 = vst.msk [vmem:[#allocation5 + $0x70] sm:$0xff] %vm1098_vm8, %v1079_v56  ;;  %v1907_v56 = vld [vmem:[#allocation3 + $0x91] sm:$0xff] }
 0x3af   :  { %1210 = vst.msk [vmem:[#allocation5 + $0x70] sm:$0xff] %vm1195_vm9, %v1176_v55  ;;  %v1899_v55 = vld [vmem:[#allocation3 + $0x1] sm:$0xff]  ;;  %1947 = vrot.lane.b32.xlu1 %v1907_v56, %s3339_s2 }
 0x3b0   :  { %v1273_v58 = vpop.permute.xlu0 %1272  ;;  %1931 = vrot.lane.b32.xlu0 %v1899_v55, %s3339_s2 }
 0x3b1   :  { %v1081_v59 = vpop.permute.xlu1 %1080  ;;  %1307 = vst.msk [vmem:[#allocation5 + $0x70] sm:$0xff] %vm1292_vm10, %v1273_v58  ;;  %v2003_v58 = vld [vmem:[#allocation3 + $0x92] sm:$0xff] }
 0x3b2   :  { %1114 = vst.msk [vmem:[#allocation5 + $0x78] sm:$0xff] %vm1098_vm8, %v1081_v59  ;;  %v1419_v60 = vld [vmem:[#allocation5 + $0x68] sm:$0xff] }
 0x3b3   :  { %3105 = vmatmul.mubr.msk.f32.gmra.mxu1 %vm1439_vm12, %v1419_v60 }
 0x3b4   :  { %v1370_v61 = vpop.permute.xlu0 %1369  ;;  %2027 = vrot.lane.b32.xlu0 %v1995_v57, %s3335_s17  ;;  %v2303_v57 = vld [vmem:[%s4964_s5 + $0x20] sm:$0xff] }
 0x3b5   :  { %v1178_v62 = vpop.permute.xlu1 %1177  ;;  %1404 = vst.msk [vmem:[#allocation5 + $0x70] sm:$0xff] %vm1389_vm11, %v1370_v61 }
 0x3b6   :  { %1211 = vst.msk [vmem:[#allocation5 + $0x78] sm:$0xff] %vm1195_vm9, %v1178_v62 }
 0x3b8   :  { %2043 = vrot.lane.b32.xlu0 %v2003_v58, %s3335_s17 }
 0x3b9   :  { %v1275_v0 = vpop.permute.xlu1 %1274 }
 0x3ba   :  { %1308 = vst.msk [vmem:[#allocation5 + $0x78] sm:$0xff] %vm1292_vm10, %v1275_v0 }
 0x3bc   :  { %v1420_v3 = vld [vmem:[#allocation5 + $0x70] sm:$0xff] }
 0x3bd   :  { %v1372_v2 = vpop.permute.xlu1 %1371  ;;  %3107 = vmatprep.mubr.msk.f32.mxu1 %vm1439_vm12, %v1420_v3 }
 0x3be   :  { %1405 = vst.msk [vmem:[#allocation5 + $0x78] sm:$0xff] %vm1389_vm11, %v1372_v2 }
 0x3c5   :  { %v1421_v4 = vld [vmem:[#allocation5 + $0x78] sm:$0xff] }
 0x3c6   :  { %3108 = vmatmul.mubr.msk.f32.gmra.mxu1 %vm1439_vm12, %v1421_v4 }
 0x3c7   :  { %3177 = vmatprep.mubr.msk.f32.mxu1 %vm3337_vm5, %v3333_v1 }
 0x417   :  { %v4324_v5 = vpop.f32.mrf.mxu1 }
 0x418   :  { %v4445_v49 = vadd.f32 %v4324_v5, %v4337_v31 }
 0x419   :  { %v4326_v6 = vpop.f32.mrf.mxu1 }
 0x41a   :  { %v4454_v51 = vadd.f32 %v4337_v31, %v4326_v6  ;;  %v1704_v53 = vmul.f32 %v4445_v49, %v4445_v49  ;;  %v1867_v6 = vld [vmem:[#allocation3] sm:$0xff] }
 0x41b   :  { %1883 = vst.msk [vmem:[#allocation5] sm:$0xff] %vm69_vm6, %v1867_v6 }
 0x41c   :  { %v1703_v54 = vmul.f32 %v4454_v51, %v4454_v51 }
 0x427   :  { %v4328_v7 = vpop.f32.mrf.mxu1 }
 0x428   :  { %v4427_v45 = vadd.f32 %v4328_v7, %v4337_v31  ;;  %v1932_v7 = vpop.permute.xlu0 %1931 }
 0x429   :  { %v4330_v8 = vpop.f32.mrf.mxu1  ;;  %1979 = vst.msk [vmem:[#allocation5] sm:$0xff] %vm1098_vm8, %v1932_v7 }
 0x42a   :  { %v4436_v47 = vadd.f32 %v4337_v31, %v4330_v8  ;;  %v1706_v50 = vmul.f32 %v4427_v45, %v4427_v45 }
 0x42c   :  { %v1705_v52 = vmul.f32 %v4436_v47, %v4436_v47  ;;  %v2028_v8 = vpop.permute.xlu0 %2027 }
 0x42d   :  { %2075 = vst.msk [vmem:[#allocation5] sm:$0xff] %vm1195_vm9, %v2028_v8  ;;  %v2302_v8 = vld [vmem:[%s4964_s5 + $0x18] sm:$0xff] }
 0x437   :  { %v3094_v9 = vpop.f32.mrf.mxu1 }
 0x438   :  { %v4409_v12 = vadd.f32 %v3094_v9, %v4337_v31 }
 0x439   :  { %v4332_v10 = vpop.f32.mrf.mxu1 }
 0x43a   :  { %v4418_v43 = vadd.f32 %v4337_v31, %v4332_v10  ;;  %v1708_v46 = vmul.f32 %v4409_v12, %v4409_v12  ;;  %v1875_v10 = vld [vmem:[#allocation3 + $0x90] sm:$0xff] }
 0x43b   :  { %1891 = vst.msk [vmem:[#allocation5 + $0x40] sm:$0xff] %vm69_vm6, %v1875_v10 }
 0x43c   :  { %v1707_v48 = vmul.f32 %v4418_v43, %v4418_v43 }
 0x447   :  { %v3097_v11 = vpop.f32.mrf.mxu1 }
 0x448   :  { %v4393_v38 = vadd.f32 %v3097_v11, %v4337_v31  ;;  %v1948_v11 = vpop.permute.xlu1 %1947 }
 0x449   :  { %v1584_v13 = vpop.f32.mrf.mxu1  ;;  %1987 = vst.msk [vmem:[#allocation5 + $0x40] sm:$0xff] %vm1098_vm8, %v1948_v11 }
 0x44a   :  { %v4401_v40 = vadd.f32 %v4337_v31, %v1584_v13  ;;  %v1710_v42 = vmul.f32 %v4393_v38, %v4393_v38  ;;  %v2308_v13 = vld [vmem:[%s4964_s5 + $0x48] sm:$0xff] }
 0x44c   :  { %v1709_v44 = vmul.f32 %v4401_v40, %v4401_v40 }
 0x453   :  { %v3100_v29 = vpop.f32.mrf.mxu1 }
 0x454   :  { %v4377_v15 = vadd.f32 %v3100_v29, %v4337_v31  ;;  %v2044_v29 = vpop.permute.xlu0 %2043 }
 0x455   :  { %v1594_v28 = vpop.f32.mrf.mxu1  ;;  %2083 = vst.msk [vmem:[#allocation5 + $0x40] sm:$0xff] %vm1195_vm9, %v2044_v29 }
 0x456   :  { %v4385_v37 = vadd.f32 %v4337_v31, %v1594_v28  ;;  %v1712_v39 = vmul.f32 %v4377_v15, %v4377_v15 }
 0x458   :  { %v1711_v41 = vmul.f32 %v4385_v37, %v4385_v37 }
 0x463   :  { %v3103_v27 = vpop.f32.mrf.mxu1 }
 0x464   :  { %v4361_v34 = vadd.f32 %v3103_v27, %v4337_v31 }
 0x465   :  { %v1604_v26 = vpop.f32.mrf.mxu1 }
 0x466   :  { %v4369_v35 = vadd.f32 %v4337_v31, %v1604_v26  ;;  %v1714_v36 = vmul.f32 %v4361_v34, %v4361_v34 }
 0x468   :  { %v1713_v14 = vmul.f32 %v4369_v35, %v4369_v35 }
 0x473   :  { %v3106_v25 = vpop.f32.mrf.mxu1 }
 0x474   :  { %v4343_v21 = vadd.f32 %v3106_v25, %v4337_v31 }
 0x475   :  { %v1614_v24 = vpop.f32.mrf.mxu1 }
 0x476   :  { %v4353_v18 = vadd.f32 %v4337_v31, %v1614_v24  ;;  %v1716_v17 = vmul.f32 %v4343_v21, %v4343_v21 }
 0x478   :  { %v1715_v16 = vmul.f32 %v4353_v18, %v4353_v18 }
 0x486   :  { %v3109_v32 = vpop.f32.mrf.mxu1 }
 0x487   :  { %v4340_v23 = vadd.f32 %v3109_v32, %v4337_v31 }
 0x488   :  { %v1624_v22 = vpop.f32.mrf.mxu1 }
 0x489   :  { %v1718_v20 = vmul.f32 %v4340_v23, %v4340_v23  ;;  %v4348_v19 = vadd.f32 %v4337_v31, %v1624_v22  ;;  %3111 = vmatpush3.msra.mxu0 %v4340_v23  ;;  %v2307_v31 = vld [vmem:[%s4964_s5 + $0x40] sm:$0xff] }
 0x48a   :  { %3112 = vmatprep.subr.mxu0 %v3333_v1 }
 0x48b   :  { %v1717_v33 = vmul.f32 %v4348_v19, %v4348_v19  ;;  %3113 = vmatpush3.msra.mxu0 %v4348_v19  ;;  %3146 = vmatpush3.msra.mxu1 %v1718_v20 }
 0x48c   :  { %3114 = vmatprep.subr.mxu0 %v3333_v1  ;;  %3147 = vmatprep.subr.mxu1 %v3333_v1 }
 0x48d   :  { %3115 = vmatpush3.msra.mxu0 %v4343_v21  ;;  %3148 = vmatpush3.msra.mxu1 %v1717_v33 }
 0x48e   :  { %3116 = vmatprep.subr.mxu0 %v3333_v1  ;;  %3149 = vmatprep.subr.mxu1 %v3333_v1 }
 0x48f   :  { %3117 = vmatpush3.msra.mxu0 %v4353_v18  ;;  %3150 = vmatpush3.msra.mxu1 %v1716_v17 }
 0x490   :  { %3118 = vmatprep.subr.mxu0 %v3333_v1  ;;  %3151 = vmatprep.subr.mxu1 %v3333_v1 }
 0x491   :  { %3119 = vmatpush3.msra.mxu0 %v4361_v34  ;;  %3152 = vmatpush3.msra.mxu1 %v1715_v16 }
 0x492   :  { %3120 = vmatprep.subr.mxu0 %v3333_v1  ;;  %3153 = vmatprep.subr.mxu1 %v3333_v1 }
 0x493   :  { %3121 = vmatpush3.msra.mxu0 %v4369_v35  ;;  %3154 = vmatpush3.msra.mxu1 %v1714_v36 }
 0x494   :  { %3122 = vmatprep.subr.mxu0 %v3333_v1  ;;  %3155 = vmatprep.subr.mxu1 %v3333_v1 }
 0x495   :  { %3123 = vmatpush3.msra.mxu0 %v4377_v15  ;;  %3156 = vmatpush3.msra.mxu1 %v1713_v14 }
 0x496   :  { %3124 = vmatprep.subr.mxu0 %v3333_v1  ;;  %3157 = vmatprep.subr.mxu1 %v3333_v1 }
 0x497   :  { %3125 = vmatpush3.msra.mxu0 %v4385_v37  ;;  %3158 = vmatpush3.msra.mxu1 %v1712_v39 }
 0x498   :  { %3126 = vmatprep.subr.mxu0 %v3333_v1  ;;  %3159 = vmatprep.subr.mxu1 %v3333_v1 }
 0x499   :  { %3127 = vmatpush3.msra.mxu0 %v4393_v38  ;;  %3160 = vmatpush3.msra.mxu1 %v1711_v41 }
 0x49a   :  { %3128 = vmatprep.subr.mxu0 %v3333_v1  ;;  %3161 = vmatprep.subr.mxu1 %v3333_v1 }
 0x49b   :  { %3129 = vmatpush3.msra.mxu0 %v4401_v40  ;;  %3162 = vmatpush3.msra.mxu1 %v1710_v42 }
 0x49c   :  { %3130 = vmatprep.subr.mxu0 %v3333_v1  ;;  %3163 = vmatprep.subr.mxu1 %v3333_v1 }
 0x49d   :  { %3131 = vmatpush3.msra.mxu0 %v4409_v12  ;;  %3164 = vmatpush3.msra.mxu1 %v1709_v44 }
 0x49e   :  { %3132 = vmatprep.subr.mxu0 %v3333_v1  ;;  %3165 = vmatprep.subr.mxu1 %v3333_v1 }
 0x49f   :  { %3133 = vmatpush3.msra.mxu0 %v4418_v43  ;;  %3166 = vmatpush3.msra.mxu1 %v1708_v46 }
 0x4a0   :  { %3134 = vmatprep.subr.mxu0 %v3333_v1  ;;  %3167 = vmatprep.subr.mxu1 %v3333_v1 }
 0x4a1   :  { %3135 = vmatpush3.msra.mxu0 %v4427_v45  ;;  %3168 = vmatpush3.msra.mxu1 %v1707_v48 }
 0x4a2   :  { %3136 = vmatprep.subr.mxu0 %v3333_v1  ;;  %3169 = vmatprep.subr.mxu1 %v3333_v1 }
 0x4a3   :  { %3137 = vmatpush3.msra.mxu0 %v4436_v47  ;;  %3170 = vmatpush3.msra.mxu1 %v1706_v50 }
 0x4a4   :  { %3138 = vmatprep.subr.mxu0 %v3333_v1  ;;  %3171 = vmatprep.subr.mxu1 %v3333_v1 }
 0x4a5   :  { %3139 = vmatpush3.msra.mxu0 %v4445_v49  ;;  %3172 = vmatpush3.msra.mxu1 %v1705_v52  ;;  %v2304_v52 = vld [vmem:[%s4964_s5 + $0x28] sm:$0xff] }
 0x4a6   :  { %3140 = vmatprep.subr.mxu0 %v3333_v1  ;;  %3173 = vmatprep.subr.mxu1 %v3333_v1 }
 0x4a7   :  { %3141 = vmatpush3.msra.mxu0 %v4454_v51  ;;  %3174 = vmatpush3.msra.mxu1 %v1704_v53 }
 0x4a8   :  { %3143 = vmatmul.mubr.f32.vlgmr.msra.gmra.mxu0 %v3338_v30  ;;  %3175 = vmatprep.subr.mxu1 %v3333_v1 }
 0x4a9   :  { %3176 = vmatpush3.msra.mxu1 %v1703_v54  ;;  %3180 = vmatprep.subr.mxu0 %v2308_v13 }
 0x4aa   :  { %3178 = vmatmul.mubr.f32.vlgmr.msra.gmra.mxu1 %v3338_v30  ;;  %3224 = vmatprep.subr.mxu1 %v3333_v1 }
 0x4ab   :  { %3256 = vmatprep.mubr.msk.f32.mxu1 %vm3337_vm5, %v3333_v1  ;;  %3181 = vmatpush3.msra.mxu0 %v2308_v13 }
 0x4ac   :  { %3182 = vmatprep.subr.mxu0 %v2307_v31 }
 0x4ad   :  { %3183 = vmatpush3.msra.mxu0 %v2307_v31 }
 0x568   :  { %v1699_v59 = vpop.f32.mrf.mxu0 }
 0x569   :  { %v1789_v60 = vmul.f32 0.0078125, %v1699_v59 }
 0x56a   :  { %v1785_v61 = vpop.f32.mrf.mxu1  ;;  %v3144_v62 = vpop.f32.mrf.mxu0 }
 0x56b   :  { %v1791_v0 = vmul.f32 %v1789_v60, %v1789_v60  ;;  %v1790_v2 = vmul.f32 0.0078125, %v1785_v61  ;;  %v4483_v9 = vrot.slane %v1789_v60, %v4058_v63 }
 0x56c   :  { %v3179_v3 = vpop.f32.mrf.mxu1 }
 0x56d   :  { %v1792_v4 = vsub.f32 %v1790_v2, %v1791_v0  ;;  %v1797_v28 = vsub.f32 %v4454_v51, %v4483_v9  ;;  %v1798_v27 = vsub.f32 %v4445_v49, %v4483_v9  ;;  %v1799_v26 = vsub.f32 %v4436_v47, %v4483_v9 }
 0x56e   :  { %v1800_v25 = vsub.f32 %v4427_v45, %v4483_v9  ;;  %v1801_v24 = vsub.f32 %v4418_v43, %v4483_v9  ;;  %v1802_v22 = vsub.f32 %v4409_v12, %v4483_v9  ;;  %v1803_v20 = vsub.f32 %v4401_v40, %v4483_v9 }
 0x56f   :  { %v1813_v5 = vadd.f32 1e-05, %v1792_v4  ;;  %v1804_v33 = vsub.f32 %v4393_v38, %v4483_v9  ;;  %v1805_v17 = vsub.f32 %v4385_v37, %v4483_v9  ;;  %v1806_v36 = vsub.f32 %v4377_v15, %v4483_v9  ;;  %v2306_v15 = vld [vmem:[%s4964_s5 + $0x38] sm:$0xff] }
 0x570   :  { %v1807_v14 = vsub.f32 %v4369_v35, %v4483_v9  ;;  %v1808_v39 = vsub.f32 %v4361_v34, %v4483_v9  ;;  %v1809_v40 = vsub.f32 %v4353_v18, %v4483_v9  ;;  %v1810_v38 = vsub.f32 %v4343_v21, %v4483_v9  ;;  %3184 = vmatprep.subr.mxu0 %v2306_v15  ;;  %v2305_v18 = vld [vmem:[%s4964_s5 + $0x30] sm:$0xff] }
 0x571   :  { %3307 = vrsqrt.f32 %v1813_v5  ;;  %v1811_v37 = vsub.f32 %v4348_v19, %v4483_v9  ;;  %v1812_v35 = vsub.f32 %v4340_v23, %v4483_v9  ;;  %3185 = vmatpush3.msra.mxu0 %v2306_v15  ;;  %v2301_v9 = vld [vmem:[%s4964_s5 + $0x10] sm:$0xff] }
 0x572   :  { %3186 = vmatprep.subr.mxu0 %v2305_v18 }
 0x573   :  { %3187 = vmatpush3.msra.mxu0 %v2305_v18 }
 0x574   :  { %3188 = vmatprep.subr.mxu0 %v2304_v52 }
 0x575   :  { %3189 = vmatpush3.msra.mxu0 %v2304_v52 }
 0x576   :  { %3190 = vmatprep.subr.mxu0 %v2303_v57 }
 0x577   :  { %3191 = vmatpush3.msra.mxu0 %v2303_v57 }
 0x578   :  { %3192 = vmatprep.subr.mxu0 %v2302_v8 }
 0x579   :  { %3193 = vmatpush3.msra.mxu0 %v2302_v8 }
 0x57a   :  { %3194 = vmatprep.subr.mxu0 %v2301_v9 }
 0x57b   :  { %3195 = vmatpush3.msra.mxu0 %v2301_v9 }
 0x57e   :  { %v3308_v32 = vpop.eup %3307 }
 0x57f   :  { %v1818_v16 = vrot.slane %v3308_v32, %v4058_v63 }
 0x581   :  { %v1819_v41 = vmul.f32 %v1818_v16, %v1797_v28  ;;  %v1820_v12 = vmul.f32 %v1818_v16, %v1798_v27  ;;  %v1821_v34 = vmul.f32 %v1818_v16, %v1799_v26  ;;  %v1822_v42 = vmul.f32 %v1818_v16, %v1800_v25 }
 0x582   :  { %v1823_v21 = vmul.f32 %v1818_v16, %v1801_v24  ;;  %v1824_v43 = vmul.f32 %v1818_v16, %v1802_v22  ;;  %v1825_v44 = vmul.f32 %v1818_v16, %v1803_v20  ;;  %v1826_v19 = vmul.f32 %v1818_v16, %v1804_v33 }
 0x583   :  { %v1835_v45 = vmax.f32 %v1819_v41, 0.0  ;;  %v1836_v46 = vmax.f32 %v1820_v12, 0.0  ;;  %v1837_v47 = vmax.f32 %v1821_v34, 0.0  ;;  %v1838_v48 = vmax.f32 %v1822_v42, 0.0 }
 0x584   :  { %v1839_v23 = vmax.f32 %v1823_v21, 0.0  ;;  %v1840_v49 = vmax.f32 %v1824_v43, 0.0  ;;  %v1841_v50 = vmax.f32 %v1825_v44, 0.0  ;;  %v1842_v51 = vmax.f32 %v1826_v19, 0.0 }
 0x585   :  { %1851 = vst.msk [vmem:[#allocation3 + $0x11] sm:$0xff] %vm69_vm6, %v1835_v45  ;;  %1852 = vst.msk [vmem:[#allocation3 + $0x21] sm:$0xff] %vm69_vm6, %v1836_v46  ;;  %v1827_v53 = vmul.f32 %v1818_v16, %v1805_v17  ;;  %v1828_v54 = vmul.f32 %v1818_v16, %v1806_v36  ;;  %v1829_v55 = vmul.f32 %v1818_v16, %v1807_v14 }
 0x586   :  { %1853 = vst.msk [vmem:[#allocation3 + $0x31] sm:$0xff] %vm69_vm6, %v1837_v47  ;;  %1854 = vst.msk [vmem:[#allocation3 + $0x41] sm:$0xff] %vm69_vm6, %v1838_v48  ;;  %v1830_v56 = vmul.f32 %v1818_v16, %v1808_v39  ;;  %v1831_v58 = vmul.f32 %v1818_v16, %v1809_v40  ;;  %v1832_v59 = vmul.f32 %v1818_v16, %v1810_v38  ;;  %v2300_v39 = vld [vmem:[%s4964_s5 + $0x8] sm:$0xff]  ;;  %v2299_v38 = vld [vmem:[%s4964_s5] sm:$0xff] }
 0x587   :  { %1855 = vst.msk [vmem:[#allocation3 + $0x51] sm:$0xff] %vm69_vm6, %v1839_v23  ;;  %1856 = vst.msk [vmem:[#allocation3 + $0x61] sm:$0xff] %vm69_vm6, %v1840_v49  ;;  %v1833_v60 = vmul.f32 %v1818_v16, %v1811_v37  ;;  %v1834_v61 = vmul.f32 %v1818_v16, %v1812_v35  ;;  %v1843_v62 = vmax.f32 %v1827_v53, 0.0  ;;  %v1844_v0 = vmax.f32 %v1828_v54, 0.0  ;;  %3196 = vmatprep.subr.mxu0 %v2300_v39 }
 0x588   :  { %1857 = vst.msk [vmem:[#allocation3 + $0x71] sm:$0xff] %vm69_vm6, %v1841_v50  ;;  %1858 = vst.msk [vmem:[#allocation3 + $0x81] sm:$0xff] %vm69_vm6, %v1842_v51  ;;  %v1845_v2 = vmax.f32 %v1829_v55, 0.0  ;;  %v1846_v3 = vmax.f32 %v1830_v56, 0.0  ;;  %v1847_v4 = vmax.f32 %v1831_v58, 0.0  ;;  %v1848_v5 = vmax.f32 %v1832_v59, 0.0  ;;  %3197 = vmatpush3.msra.mxu0 %v2300_v39 }
 0x589   :  { %v1849_v6 = vmax.f32 %v1833_v60, 0.0  ;;  %v1850_v7 = vmax.f32 %v1834_v61, 0.0  ;;  %1859 = vst.msk [vmem:[#allocation3 + $0xa1] sm:$0xff] %vm69_vm6, %v1843_v62  ;;  %1860 = vst.msk [vmem:[#allocation3 + $0xb1] sm:$0xff] %vm69_vm6, %v1844_v0  ;;  %3198 = vmatprep.subr.mxu0 %v2299_v38 }
 0x58a   :  { %1861 = vst.msk [vmem:[#allocation3 + $0xc1] sm:$0xff] %vm69_vm6, %v1845_v2  ;;  %1862 = vst.msk [vmem:[#allocation3 + $0xd1] sm:$0xff] %vm69_vm6, %v1846_v3  ;;  %3199 = vmatpush3.msra.mxu0 %v2299_v38 }
 0x58b   :  { %1863 = vst.msk [vmem:[#allocation3 + $0xe1] sm:$0xff] %vm69_vm6, %v1847_v4  ;;  %1864 = vst.msk [vmem:[#allocation3 + $0xf1] sm:$0xff] %vm69_vm6, %v1848_v5  ;;  %3259 = vmatprep.subr.mxu0 %v3333_v1 }
 0x58c   :  { %1865 = vst.msk [vmem:[#allocation3 + $0x101] sm:$0xff] %vm69_vm6, %v1849_v6  ;;  %1866 = vst.msk [vmem:[#allocation3 + $0x111] sm:$0xff] %vm69_vm6, %v1850_v7  ;;  %v2091_v10 = vld [vmem:[#allocation3 + $0x10] sm:$0xff]  ;;  %v2092_v13 = vld [vmem:[#allocation3 + $0x20] sm:$0xff] }
 0x58d   :  { %v1900_v11 = vld [vmem:[#allocation3 + $0x11] sm:$0xff]  ;;  %2123 = vrot.lane.b32.xlu0 %v2091_v10, %s3340_s29  ;;  %1884 = vst.msk [vmem:[#allocation5 + $0x8] sm:$0xff] %vm69_vm6, %v2091_v10  ;;  %1885 = vst.msk [vmem:[#allocation5 + $0x10] sm:$0xff] %vm69_vm6, %v2092_v13  ;;  %v2094_v28 = vld [vmem:[#allocation3 + $0x40] sm:$0xff] }
 0x58e   :  { %1933 = vrot.lane.b32.xlu1 %v1900_v11, %s3339_s2  ;;  %v2093_v29 = vld [vmem:[#allocation3 + $0x30] sm:$0xff]  ;;  %1887 = vst.msk [vmem:[#allocation5 + $0x20] sm:$0xff] %vm69_vm6, %v2094_v28  ;;  %v2096_v25 = vld [vmem:[#allocation3 + $0x60] sm:$0xff] }
 0x58f   :  { %1886 = vst.msk [vmem:[#allocation5 + $0x18] sm:$0xff] %vm69_vm6, %v2093_v29  ;;  %v1996_v27 = vld [vmem:[#allocation3 + $0x12] sm:$0xff]  ;;  %1889 = vst.msk [vmem:[#allocation5 + $0x30] sm:$0xff] %vm69_vm6, %v2096_v25  ;;  %v2188_v32 = vld [vmem:[#allocation3 + $0x21] sm:$0xff] }
 0x590   :  { %v2095_v26 = vld [vmem:[#allocation3 + $0x50] sm:$0xff]  ;;  %v2099_v31 = vld [vmem:[#allocation3 + $0xa0] sm:$0xff] }
 0x591   :  { %2219 = vrot.lane.b32.xlu0 %v1900_v11, %s3336_s20  ;;  %1888 = vst.msk [vmem:[#allocation5 + $0x28] sm:$0xff] %vm69_vm6, %v2095_v26  ;;  %v2097_v24 = vld [vmem:[#allocation3 + $0x70] sm:$0xff]  ;;  %1892 = vst.msk [vmem:[#allocation5 + $0x48] sm:$0xff] %vm69_vm6, %v2099_v31  ;;  %v4577_v20 = vld [vmem:[#allocation3 + $0xc0] sm:$0xff] }
 0x592   :  { %2029 = vrot.lane.b32.xlu1 %v1996_v27, %s3335_s17  ;;  %1890 = vst.msk [vmem:[#allocation5 + $0x38] sm:$0xff] %vm69_vm6, %v2097_v24  ;;  %v4575_v22 = vld [vmem:[#allocation3 + $0xb0] sm:$0xff]  ;;  %1894 = vst.msk [vmem:[#allocation5 + $0x58] sm:$0xff] %vm69_vm6, %v4577_v20  ;;  %v4585_v17 = vld [vmem:[#allocation3 + $0xe0] sm:$0xff] }
 0x593   :  { %1893 = vst.msk [vmem:[#allocation5 + $0x50] sm:$0xff] %vm69_vm6, %v4575_v22  ;;  %v4583_v33 = vld [vmem:[#allocation3 + $0xd0] sm:$0xff]  ;;  %v1997_v16 = vld [vmem:[#allocation3 + $0x22] sm:$0xff]  ;;  %1896 = vst.msk [vmem:[#allocation5 + $0x68] sm:$0xff] %vm69_vm6, %v4585_v17 }
 0x594   :  { %1895 = vst.msk [vmem:[#allocation5 + $0x60] sm:$0xff] %vm69_vm6, %v4583_v33  ;;  %v4593_v36 = vld [vmem:[#allocation3 + $0xf0] sm:$0xff]  ;;  %v4595_v14 = vld [vmem:[#allocation3 + $0x100] sm:$0xff] }
 0x595   :  { %2221 = vrot.lane.b32.xlu0 %v2188_v32, %s3336_s20  ;;  %1897 = vst.msk [vmem:[#allocation5 + $0x70] sm:$0xff] %vm69_vm6, %v4593_v36  ;;  %1898 = vst.msk [vmem:[#allocation5 + $0x78] sm:$0xff] %vm69_vm6, %v4595_v14  ;;  %v1902_v40 = vld [vmem:[#allocation3 + $0x31] sm:$0xff]  ;;  %v2190_v15 = vld [vmem:[#allocation3 + $0x41] sm:$0xff] }
 0x596   :  { %2125 = vrot.lane.b32.xlu1 %v2092_v13, %s3340_s29  ;;  %v1998_v37 = vld [vmem:[#allocation3 + $0x32] sm:$0xff]  ;;  %v1999_v35 = vld [vmem:[#allocation3 + $0x42] sm:$0xff] }
 0x597   :  { %v1904_v41 = vld [vmem:[#allocation3 + $0x51] sm:$0xff]  ;;  %v2192_v34 = vld [vmem:[#allocation3 + $0x61] sm:$0xff] }
 0x598   :  { %v2000_v12 = vld [vmem:[#allocation3 + $0x52] sm:$0xff]  ;;  %v2001_v42 = vld [vmem:[#allocation3 + $0x62] sm:$0xff] }
 0x599   :  { %2031 = vrot.lane.b32.xlu0 %v1997_v16, %s3335_s17  ;;  %v1906_v18 = vld [vmem:[#allocation3 + $0x71] sm:$0xff]  ;;  %v2194_v43 = vld [vmem:[#allocation3 + $0x81] sm:$0xff] }
 0x59a   :  { %1935 = vrot.lane.b32.xlu1 %v2188_v32, %s3339_s2  ;;  %v2002_v21 = vld [vmem:[#allocation3 + $0x72] sm:$0xff]  ;;  %v2098_v44 = vld [vmem:[#allocation3 + $0x80] sm:$0xff] }
 0x59b   :  { %v1908_v19 = vld [vmem:[#allocation3 + $0xa1] sm:$0xff]  ;;  %v2196_v46 = vld [vmem:[#allocation3 + $0xb1] sm:$0xff] }
 0x59c   :  { %v2004_v45 = vld [vmem:[#allocation3 + $0xa2] sm:$0xff]  ;;  %v2005_v47 = vld [vmem:[#allocation3 + $0xb2] sm:$0xff] }
 0x59d   :  { %2127 = vrot.lane.b32.xlu0 %v2093_v29, %s3340_s29  ;;  %v1910_v48 = vld [vmem:[#allocation3 + $0xc1] sm:$0xff]  ;;  %v2198_v49 = vld [vmem:[#allocation3 + $0xd1] sm:$0xff] }
 0x59e   :  { %1937 = vrot.lane.b32.xlu1 %v1902_v40, %s3339_s2  ;;  %v2006_v23 = vld [vmem:[#allocation3 + $0xc2] sm:$0xff]  ;;  %v2007_v50 = vld [vmem:[#allocation3 + $0xd2] sm:$0xff] }
 0x59f   :  { %v1912_v51 = vld [vmem:[#allocation3 + $0xe1] sm:$0xff]  ;;  %v2200_v53 = vld [vmem:[#allocation3 + $0xf1] sm:$0xff] }
 0x5a0   :  { %v2008_v52 = vld [vmem:[#allocation3 + $0xe2] sm:$0xff]  ;;  %v2009_v54 = vld [vmem:[#allocation3 + $0xf2] sm:$0xff] }
 0x5a1   :  { %2223 = vrot.lane.b32.xlu0 %v1902_v40, %s3336_s20  ;;  %v1914_v55 = vld [vmem:[#allocation3 + $0x101] sm:$0xff]  ;;  %v2106_v59 = vld [vmem:[#allocation3 + $0x110] sm:$0xff] }
 0x5a2   :  { %2033 = vrot.lane.b32.xlu1 %v1998_v37, %s3335_s17  ;;  %v2010_v56 = vld [vmem:[#allocation3 + $0x102] sm:$0xff]  ;;  %v2202_v62 = vld [vmem:[#allocation3 + $0x111] sm:$0xff] }
 0x5a5   :  { %2225 = vrot.lane.b32.xlu0 %v2190_v15, %s3336_s20 }
 0x5a6   :  { %2129 = vrot.lane.b32.xlu1 %v2094_v28, %s3340_s29 }
 0x5a9   :  { %2035 = vrot.lane.b32.xlu0 %v1999_v35, %s3335_s17 }
 0x5aa   :  { %1939 = vrot.lane.b32.xlu1 %v2190_v15, %s3339_s2 }
 0x5ad   :  { %2131 = vrot.lane.b32.xlu0 %v2095_v26, %s3340_s29 }
 0x5ae   :  { %1941 = vrot.lane.b32.xlu1 %v1904_v41, %s3339_s2 }
 0x5b1   :  { %2227 = vrot.lane.b32.xlu0 %v1904_v41, %s3336_s20 }
 0x5b2   :  { %2037 = vrot.lane.b32.xlu1 %v2000_v12, %s3335_s17 }
 0x5b5   :  { %2229 = vrot.lane.b32.xlu0 %v2192_v34, %s3336_s20 }
 0x5b6   :  { %2133 = vrot.lane.b32.xlu1 %v2096_v25, %s3340_s29 }
 0x5b9   :  { %2039 = vrot.lane.b32.xlu0 %v2001_v42, %s3335_s17 }
 0x5ba   :  { %1943 = vrot.lane.b32.xlu1 %v2192_v34, %s3339_s2 }
 0x5bd   :  { %2135 = vrot.lane.b32.xlu0 %v2097_v24, %s3340_s29 }
 0x5be   :  { %1945 = vrot.lane.b32.xlu1 %v1906_v18, %s3339_s2 }
 0x5c1   :  { %2231 = vrot.lane.b32.xlu0 %v1906_v18, %s3336_s20 }
 0x5c2   :  { %2041 = vrot.lane.b32.xlu1 %v2002_v21, %s3335_s17 }
 0x5c5   :  { %2233 = vrot.lane.b32.xlu0 %v2194_v43, %s3336_s20 }
 0x5c6   :  { %2137 = vrot.lane.b32.xlu1 %v2098_v44, %s3340_s29 }
 0x5c9   :  { %2139 = vrot.lane.b32.xlu0 %v2099_v31, %s3340_s29 }
 0x5ca   :  { %1949 = vrot.lane.b32.xlu1 %v1908_v19, %s3339_s2 }
 0x5cd   :  { %2235 = vrot.lane.b32.xlu0 %v1908_v19, %s3336_s20 }
 0x5ce   :  { %2045 = vrot.lane.b32.xlu1 %v2004_v45, %s3335_s17 }
 0x5d1   :  { %2237 = vrot.lane.b32.xlu0 %v2196_v46, %s3336_s20 }
 0x5d2   :  { %2141 = vrot.lane.b32.xlu1 %v4575_v22, %s3340_s29 }
 0x5d5   :  { %2047 = vrot.lane.b32.xlu0 %v2005_v47, %s3335_s17 }
 0x5d6   :  { %1951 = vrot.lane.b32.xlu1 %v2196_v46, %s3339_s2 }
 0x5d9   :  { %2143 = vrot.lane.b32.xlu0 %v4577_v20, %s3340_s29 }
 0x5da   :  { %1953 = vrot.lane.b32.xlu1 %v1910_v48, %s3339_s2 }
 0x5dd   :  { %2239 = vrot.lane.b32.xlu0 %v1910_v48, %s3336_s20 }
 0x5de   :  { %2049 = vrot.lane.b32.xlu1 %v2006_v23, %s3335_s17 }
 0x5e1   :  { %2241 = vrot.lane.b32.xlu0 %v2198_v49, %s3336_s20 }
 0x5e2   :  { %2145 = vrot.lane.b32.xlu1 %v4583_v33, %s3340_s29 }
 0x5e5   :  { %2051 = vrot.lane.b32.xlu0 %v2007_v50, %s3335_s17 }
 0x5e6   :  { %1955 = vrot.lane.b32.xlu1 %v2198_v49, %s3339_s2 }
 0x5e9   :  { %2147 = vrot.lane.b32.xlu0 %v4585_v17, %s3340_s29 }
 0x5ea   :  { %1957 = vrot.lane.b32.xlu1 %v1912_v51, %s3339_s2 }
 0x5ed   :  { %2243 = vrot.lane.b32.xlu0 %v1912_v51, %s3336_s20 }
 0x5ee   :  { %2053 = vrot.lane.b32.xlu1 %v2008_v52, %s3335_s17 }
 0x5f1   :  { %2245 = vrot.lane.b32.xlu0 %v2200_v53, %s3336_s20 }
 0x5f2   :  { %2149 = vrot.lane.b32.xlu1 %v4593_v36, %s3340_s29 }
 0x5f5   :  { %2055 = vrot.lane.b32.xlu0 %v2009_v54, %s3335_s17 }
 0x5f6   :  { %1959 = vrot.lane.b32.xlu1 %v2200_v53, %s3339_s2 }
 0x5f9   :  { %2151 = vrot.lane.b32.xlu0 %v4595_v14, %s3340_s29 }
 0x5fa   :  { %1961 = vrot.lane.b32.xlu1 %v1914_v55, %s3339_s2 }
 0x5fd   :  { %2247 = vrot.lane.b32.xlu0 %v1914_v55, %s3336_s20 }
 0x5fe   :  { %2057 = vrot.lane.b32.xlu1 %v2010_v56, %s3335_s17 }
 0x5ff   :  { %v2124_v57 = vpop.permute.xlu0 %2123 }
 0x600   :  { %v1934_v58 = vpop.permute.xlu1 %1933  ;;  %2171 = vst.msk [vmem:[#allocation5] sm:$0xff] %vm1292_vm10, %v2124_v57 }
 0x601   :  { %1980 = vst.msk [vmem:[#allocation5 + $0x8] sm:$0xff] %vm1098_vm8, %v1934_v58 }
 0x602   :  { %2153 = vrot.lane.b32.xlu1 %v2106_v59, %s3340_s29  ;;  %s3341_s29 = smov [#allocation6]  }
 0x603   :  { %v2220_v60 = vpop.permute.xlu0 %2219  ;;  %s2780_s1 = sshll.u32 %s3341_s29, 4  ;;  %s2781_s1 = int_to_ptr.vmem [resolvable:$true] %s2780_s1 }
 0x604   :  { %v2030_v61 = vpop.permute.xlu1 %2029  ;;  %2267 = vst.msk [vmem:[#allocation5] sm:$0xff] %vm1389_vm11, %v2220_v60  ;;  %p3316_p1 = scmp.lt.s32.totalorder %s2781_s1, %s2781_s1 }
 0x605   :  { %2076 = vst.msk [vmem:[#allocation5 + $0x8] sm:$0xff] %vm1195_vm9, %v2030_v61 }
 0x606   :  { %2249 = vrot.lane.b32.xlu1 %v2202_v62, %s3336_s20 }
 0x607   :  { %v2222_v0 = vpop.permute.xlu0 %2221 }
 0x608   :  { %v2126_v2 = vpop.permute.xlu1 %2125 }
 0x609   :  { %2172 = vst.msk [vmem:[#allocation5 + $0x8] sm:$0xff] %vm1292_vm10, %v2126_v2 }
 0x60a   :  { %2268 = vst.msk [vmem:[#allocation5 + $0x8] sm:$0xff] %vm1389_vm11, %v2222_v0 }
 0x60b   :  { %v2032_v3 = vpop.permute.xlu0 %2031  ;;  %v2283_v5 = vld [vmem:[#allocation5] sm:$0xff] }
 0x60c   :  { %v1936_v4 = vpop.permute.xlu1 %1935  ;;  %3200 = vmatprep.mubr.msk.f32.mxu0 %vm1439_vm12, %v2283_v5 }
 0x60d   :  { %1981 = vst.msk [vmem:[#allocation5 + $0x10] sm:$0xff] %vm1098_vm8, %v1936_v4 }
 0x60e   :  { %2077 = vst.msk [vmem:[#allocation5 + $0x10] sm:$0xff] %vm1195_vm9, %v2032_v3 }
 0x60f   :  { %v2128_v6 = vpop.permute.xlu0 %2127 }
 0x610   :  { %v1938_v7 = vpop.permute.xlu1 %1937  ;;  %2173 = vst.msk [vmem:[#allocation5 + $0x10] sm:$0xff] %vm1292_vm10, %v2128_v6 }
 0x611   :  { %1982 = vst.msk [vmem:[#allocation5 + $0x18] sm:$0xff] %vm1098_vm8, %v1938_v7  ;;  %v2284_v8 = vld [vmem:[#allocation5 + $0x8] sm:$0xff] }
 0x612   :  { %3201 = vmatmul.mubr.msk.f32.vlgmr.msra.gmra.mxu0 %vm1439_vm12, %v2284_v8 }
 0x613   :  { %v2224_v9 = vpop.permute.xlu0 %2223 }
 0x614   :  { %v2034_v10 = vpop.permute.xlu1 %2033  ;;  %2269 = vst.msk [vmem:[#allocation5 + $0x10] sm:$0xff] %vm1389_vm11, %v2224_v9 }
 0x615   :  { %2078 = vst.msk [vmem:[#allocation5 + $0x18] sm:$0xff] %vm1195_vm9, %v2034_v10 }
 0x617   :  { %v2226_v11 = vpop.permute.xlu0 %2225 }
 0x618   :  { %v2130_v13 = vpop.permute.xlu1 %2129 }
 0x619   :  { %2174 = vst.msk [vmem:[#allocation5 + $0x18] sm:$0xff] %vm1292_vm10, %v2130_v13 }
 0x61a   :  { %2270 = vst.msk [vmem:[#allocation5 + $0x18] sm:$0xff] %vm1389_vm11, %v2226_v11 }
 0x61b   :  { %v2036_v29 = vpop.permute.xlu0 %2035  ;;  %v2285_v27 = vld [vmem:[#allocation5 + $0x10] sm:$0xff] }
 0x61c   :  { %v1940_v28 = vpop.permute.xlu1 %1939  ;;  %3203 = vmatprep.mubr.msk.f32.mxu0 %vm1439_vm12, %v2285_v27 }
 0x61d   :  { %1983 = vst.msk [vmem:[#allocation5 + $0x20] sm:$0xff] %vm1098_vm8, %v1940_v28 }
 0x61e   :  { %2079 = vst.msk [vmem:[#allocation5 + $0x20] sm:$0xff] %vm1195_vm9, %v2036_v29 }
 0x61f   :  { %v2132_v26 = vpop.permute.xlu0 %2131 }
 0x620   :  { %v1942_v25 = vpop.permute.xlu1 %1941  ;;  %2175 = vst.msk [vmem:[#allocation5 + $0x20] sm:$0xff] %vm1292_vm10, %v2132_v26 }
 0x621   :  { %1984 = vst.msk [vmem:[#allocation5 + $0x28] sm:$0xff] %vm1098_vm8, %v1942_v25  ;;  %v2286_v24 = vld [vmem:[#allocation5 + $0x18] sm:$0xff] }
 0x622   :  { %3204 = vmatmul.mubr.msk.f32.gmra.mxu0 %vm1439_vm12, %v2286_v24 }
 0x623   :  { %v2228_v31 = vpop.permute.xlu0 %2227 }
 0x624   :  { %v2038_v32 = vpop.permute.xlu1 %2037  ;;  %2271 = vst.msk [vmem:[#allocation5 + $0x20] sm:$0xff] %vm1389_vm11, %v2228_v31 }
 0x625   :  { %2080 = vst.msk [vmem:[#allocation5 + $0x28] sm:$0xff] %vm1195_vm9, %v2038_v32 }
 0x627   :  { %v2230_v22 = vpop.permute.xlu0 %2229 }
 0x628   :  { %v2134_v20 = vpop.permute.xlu1 %2133 }
 0x629   :  { %2176 = vst.msk [vmem:[#allocation5 + $0x28] sm:$0xff] %vm1292_vm10, %v2134_v20 }
 0x62a   :  { %2272 = vst.msk [vmem:[#allocation5 + $0x28] sm:$0xff] %vm1389_vm11, %v2230_v22 }
 0x62b   :  { %v2040_v33 = vpop.permute.xlu0 %2039  ;;  %v2287_v16 = vld [vmem:[#allocation5 + $0x20] sm:$0xff] }
 0x62c   :  { %v1944_v17 = vpop.permute.xlu1 %1943  ;;  %3206 = vmatprep.mubr.msk.f32.mxu0 %vm1439_vm12, %v2287_v16 }
 0x62d   :  { %1985 = vst.msk [vmem:[#allocation5 + $0x30] sm:$0xff] %vm1098_vm8, %v1944_v17 }
 0x62e   :  { %2081 = vst.msk [vmem:[#allocation5 + $0x30] sm:$0xff] %vm1195_vm9, %v2040_v33 }
 0x62f   :  { %v2136_v36 = vpop.permute.xlu0 %2135 }
 0x630   :  { %v1946_v14 = vpop.permute.xlu1 %1945  ;;  %2177 = vst.msk [vmem:[#allocation5 + $0x30] sm:$0xff] %vm1292_vm10, %v2136_v36  ;;  %v4757_v36 = vld [vmem:[%s4965_s6] ss:$0 sm:$0xff] }
 0x631   :  { %1986 = vst.msk [vmem:[#allocation5 + $0x38] sm:$0xff] %vm1098_vm8, %v1946_v14  ;;  %v2288_v39 = vld [vmem:[#allocation5 + $0x28] sm:$0xff] }
 0x632   :  { %3207 = vmatmul.mubr.msk.f32.gmra.mxu0 %vm1439_vm12, %v2288_v39 }
 0x633   :  { %v2232_v40 = vpop.permute.xlu0 %2231 }
 0x634   :  { %v2042_v38 = vpop.permute.xlu1 %2041  ;;  %2273 = vst.msk [vmem:[#allocation5 + $0x30] sm:$0xff] %vm1389_vm11, %v2232_v40 }
 0x635   :  { %2082 = vst.msk [vmem:[#allocation5 + $0x38] sm:$0xff] %vm1195_vm9, %v2042_v38 }
 0x637   :  { %v2234_v37 = vpop.permute.xlu0 %2233 }
 0x638   :  { %v2138_v15 = vpop.permute.xlu1 %2137 }
 0x639   :  { %2178 = vst.msk [vmem:[#allocation5 + $0x38] sm:$0xff] %vm1292_vm10, %v2138_v15 }
 0x63a   :  { %2274 = vst.msk [vmem:[#allocation5 + $0x38] sm:$0xff] %vm1389_vm11, %v2234_v37 }
 0x63b   :  { %v2140_v35 = vpop.permute.xlu0 %2139  ;;  %v2289_v12 = vld [vmem:[#allocation5 + $0x30] sm:$0xff] }
 0x63c   :  { %v1950_v41 = vpop.permute.xlu1 %1949  ;;  %2179 = vst.msk [vmem:[#allocation5 + $0x40] sm:$0xff] %vm1292_vm10, %v2140_v35  ;;  %3209 = vmatprep.mubr.msk.f32.mxu0 %vm1439_vm12, %v2289_v12 }
 0x63d   :  { %1988 = vst.msk [vmem:[#allocation5 + $0x48] sm:$0xff] %vm1098_vm8, %v1950_v41 }
 0x63f   :  { %v2236_v34 = vpop.permute.xlu0 %2235 }
 0x640   :  { %v2046_v42 = vpop.permute.xlu1 %2045  ;;  %2275 = vst.msk [vmem:[#allocation5 + $0x40] sm:$0xff] %vm1389_vm11, %v2236_v34 }
 0x641   :  { %2084 = vst.msk [vmem:[#allocation5 + $0x48] sm:$0xff] %vm1195_vm9, %v2046_v42  ;;  %v2290_v18 = vld [vmem:[#allocation5 + $0x38] sm:$0xff] }
 0x642   :  { %3210 = vmatmul.mubr.msk.f32.gmra.mxu0 %vm1439_vm12, %v2290_v18 }
 0x643   :  { %v2238_v21 = vpop.permute.xlu0 %2237 }
 0x644   :  { %v2142_v43 = vpop.permute.xlu1 %2141 }
 0x645   :  { %2180 = vst.msk [vmem:[#allocation5 + $0x48] sm:$0xff] %vm1292_vm10, %v2142_v43 }
 0x646   :  { %2276 = vst.msk [vmem:[#allocation5 + $0x48] sm:$0xff] %vm1389_vm11, %v2238_v21 }
 0x647   :  { %v2048_v44 = vpop.permute.xlu0 %2047  ;;  %v2291_v45 = vld [vmem:[#allocation5 + $0x40] sm:$0xff] }
 0x648   :  { %v1952_v19 = vpop.permute.xlu1 %1951  ;;  %3212 = vmatprep.mubr.msk.f32.mxu0 %vm1439_vm12, %v2291_v45 }
 0x649   :  { %1989 = vst.msk [vmem:[#allocation5 + $0x50] sm:$0xff] %vm1098_vm8, %v1952_v19 }
 0x64a   :  { %2085 = vst.msk [vmem:[#allocation5 + $0x50] sm:$0xff] %vm1195_vm9, %v2048_v44 }
 0x64b   :  { %v2144_v46 = vpop.permute.xlu0 %2143 }
 0x64c   :  { %v1954_v47 = vpop.permute.xlu1 %1953  ;;  %2181 = vst.msk [vmem:[#allocation5 + $0x50] sm:$0xff] %vm1292_vm10, %v2144_v46 }
 0x64d   :  { %1990 = vst.msk [vmem:[#allocation5 + $0x58] sm:$0xff] %vm1098_vm8, %v1954_v47  ;;  %v2292_v48 = vld [vmem:[#allocation5 + $0x48] sm:$0xff] }
 0x64e   :  { %3213 = vmatmul.mubr.msk.f32.gmra.mxu0 %vm1439_vm12, %v2292_v48 }
 0x64f   :  { %v2240_v23 = vpop.permute.xlu0 %2239 }
 0x650   :  { %v2050_v49 = vpop.permute.xlu1 %2049  ;;  %2277 = vst.msk [vmem:[#allocation5 + $0x50] sm:$0xff] %vm1389_vm11, %v2240_v23 }
 0x651   :  { %2086 = vst.msk [vmem:[#allocation5 + $0x58] sm:$0xff] %vm1195_vm9, %v2050_v49 }
 0x653   :  { %v2242_v50 = vpop.permute.xlu0 %2241 }
 0x654   :  { %v2146_v51 = vpop.permute.xlu1 %2145 }
 0x655   :  { %2182 = vst.msk [vmem:[#allocation5 + $0x58] sm:$0xff] %vm1292_vm10, %v2146_v51 }
 0x656   :  { %2278 = vst.msk [vmem:[#allocation5 + $0x58] sm:$0xff] %vm1389_vm11, %v2242_v50 }
 0x657   :  { %v2052_v52 = vpop.permute.xlu0 %2051  ;;  %v2293_v54 = vld [vmem:[#allocation5 + $0x50] sm:$0xff] }
 0x658   :  { %v1956_v53 = vpop.permute.xlu1 %1955  ;;  %3215 = vmatprep.mubr.msk.f32.mxu0 %vm1439_vm12, %v2293_v54 }
 0x659   :  { %1991 = vst.msk [vmem:[#allocation5 + $0x60] sm:$0xff] %vm1098_vm8, %v1956_v53 }
 0x65a   :  { %2087 = vst.msk [vmem:[#allocation5 + $0x60] sm:$0xff] %vm1195_vm9, %v2052_v52 }
 0x65b   :  { %v2148_v55 = vpop.permute.xlu0 %2147 }
 0x65c   :  { %v1958_v56 = vpop.permute.xlu1 %1957  ;;  %2183 = vst.msk [vmem:[#allocation5 + $0x60] sm:$0xff] %vm1292_vm10, %v2148_v55 }
 0x65d   :  { %1992 = vst.msk [vmem:[#allocation5 + $0x68] sm:$0xff] %vm1098_vm8, %v1958_v56  ;;  %v2294_v57 = vld [vmem:[#allocation5 + $0x58] sm:$0xff] }
 0x65e   :  { %3216 = vmatmul.mubr.msk.f32.gmra.mxu0 %vm1439_vm12, %v2294_v57 }
 0x65f   :  { %v2244_v58 = vpop.permute.xlu0 %2243 }
 0x660   :  { %v2054_v59 = vpop.permute.xlu1 %2053  ;;  %2279 = vst.msk [vmem:[#allocation5 + $0x60] sm:$0xff] %vm1389_vm11, %v2244_v58 }
 0x661   :  { %2088 = vst.msk [vmem:[#allocation5 + $0x68] sm:$0xff] %vm1195_vm9, %v2054_v59 }
 0x663   :  { %v2246_v60 = vpop.permute.xlu0 %2245 }
 0x664   :  { %v2150_v61 = vpop.permute.xlu1 %2149 }
 0x665   :  { %2184 = vst.msk [vmem:[#allocation5 + $0x68] sm:$0xff] %vm1292_vm10, %v2150_v61 }
 0x666   :  { %2280 = vst.msk [vmem:[#allocation5 + $0x68] sm:$0xff] %vm1389_vm11, %v2246_v60 }
 0x667   :  { %v2056_v62 = vpop.permute.xlu0 %2055  ;;  %v2295_v2 = vld [vmem:[#allocation5 + $0x60] sm:$0xff] }
 0x668   :  { %v1960_v0 = vpop.permute.xlu1 %1959  ;;  %3218 = vmatprep.mubr.msk.f32.mxu0 %vm1439_vm12, %v2295_v2 }
 0x669   :  { %1993 = vst.msk [vmem:[#allocation5 + $0x70] sm:$0xff] %vm1098_vm8, %v1960_v0 }
 0x66a   :  { %2089 = vst.msk [vmem:[#allocation5 + $0x70] sm:$0xff] %vm1195_vm9, %v2056_v62 }
 0x66b   :  { %v2152_v3 = vpop.permute.xlu0 %2151 }
 0x66c   :  { %v1962_v4 = vpop.permute.xlu1 %1961  ;;  %2185 = vst.msk [vmem:[#allocation5 + $0x70] sm:$0xff] %vm1292_vm10, %v2152_v3 }
 0x66d   :  { %1994 = vst.msk [vmem:[#allocation5 + $0x78] sm:$0xff] %vm1098_vm8, %v1962_v4  ;;  %v2296_v5 = vld [vmem:[#allocation5 + $0x68] sm:$0xff] }
 0x66e   :  { %3219 = vmatmul.mubr.msk.f32.gmra.mxu0 %vm1439_vm12, %v2296_v5 }
 0x66f   :  { %v2248_v6 = vpop.permute.xlu0 %2247 }
 0x670   :  { %v2058_v7 = vpop.permute.xlu1 %2057  ;;  %2281 = vst.msk [vmem:[#allocation5 + $0x70] sm:$0xff] %vm1389_vm11, %v2248_v6 }
 0x671   :  { %2090 = vst.msk [vmem:[#allocation5 + $0x78] sm:$0xff] %vm1195_vm9, %v2058_v7 }
 0x674   :  { %v2154_v8 = vpop.permute.xlu1 %2153 }
 0x675   :  { %2186 = vst.msk [vmem:[#allocation5 + $0x78] sm:$0xff] %vm1292_vm10, %v2154_v8 }
 0x677   :  { %v2297_v10 = vld [vmem:[#allocation5 + $0x70] sm:$0xff] }
 0x678   :  { %v2250_v9 = vpop.permute.xlu1 %2249  ;;  %3221 = vmatprep.mubr.msk.f32.mxu0 %vm1439_vm12, %v2297_v10 }
 0x679   :  { %2282 = vst.msk [vmem:[#allocation5 + $0x78] sm:$0xff] %vm1389_vm11, %v2250_v9 }
 0x680   :  { %v2298_v11 = vld [vmem:[#allocation5 + $0x78] sm:$0xff] }
 0x681   :  { %3222 = vmatmul.mubr.msk.f32.gmra.mxu0 %vm1439_vm12, %v2298_v11 }
 0x682   :  { %3291 = vmatprep.mubr.msk.f32.mxu0 %vm3337_vm5, %v3333_v1 }
 0x6d2   :  { %v4744_v13 = vpop.f32.mrf.mxu0 }
 0x6d3   :  { %v2436_v56 = vadd.f32 %v4744_v13, %v4757_v36 }
 0x6d4   :  { %v4746_v29 = vpop.f32.mrf.mxu0 }
 0x6d5   :  { %v2431_v58 = vadd.f32 %v4757_v36, %v4746_v29  ;;  %v2580_v60 = vmul.f32 %v2436_v56, %v2436_v56 }
 0x6d7   :  { %v2579_v61 = vmul.f32 %v2431_v58, %v2431_v58 }
 0x6e2   :  { %v4748_v28 = vpop.f32.mrf.mxu0 }
 0x6e3   :  { %v4847_v52 = vadd.f32 %v4748_v28, %v4757_v36 }
 0x6e4   :  { %v4750_v27 = vpop.f32.mrf.mxu0 }
 0x6e5   :  { %v2441_v54 = vadd.f32 %v4757_v36, %v4750_v27  ;;  %v2582_v57 = vmul.f32 %v4847_v52, %v4847_v52 }
 0x6e7   :  { %v2581_v59 = vmul.f32 %v2441_v54, %v2441_v54 }
 0x6f2   :  { %v3208_v26 = vpop.f32.mrf.mxu0 }
 0x6f3   :  { %v4829_v23 = vadd.f32 %v3208_v26, %v4757_v36 }
 0x6f4   :  { %v4752_v25 = vpop.f32.mrf.mxu0 }
 0x6f5   :  { %v4838_v50 = vadd.f32 %v4757_v36, %v4752_v25  ;;  %v2584_v53 = vmul.f32 %v4829_v23, %v4829_v23 }
 0x6f7   :  { %v2583_v55 = vmul.f32 %v4838_v50, %v4838_v50 }
 0x702   :  { %v3211_v24 = vpop.f32.mrf.mxu0 }
 0x703   :  { %v4813_v45 = vadd.f32 %v3211_v24, %v4757_v36 }
 0x704   :  { %v2460_v31 = vpop.f32.mrf.mxu0 }
 0x705   :  { %v4821_v47 = vadd.f32 %v4757_v36, %v2460_v31  ;;  %v2586_v49 = vmul.f32 %v4813_v45, %v4813_v45 }
 0x707   :  { %v2585_v51 = vmul.f32 %v4821_v47, %v4821_v47 }
 0x70e   :  { %v3214_v32 = vpop.f32.mrf.mxu0 }
 0x70f   :  { %v4797_v21 = vadd.f32 %v3214_v32, %v4757_v36 }
 0x710   :  { %v2470_v22 = vpop.f32.mrf.mxu0 }
 0x711   :  { %v4805_v44 = vadd.f32 %v4757_v36, %v2470_v22  ;;  %v2588_v46 = vmul.f32 %v4797_v21, %v4797_v21 }
 0x713   :  { %v2587_v48 = vmul.f32 %v4805_v44, %v4805_v44 }
 0x71e   :  { %v3217_v20 = vpop.f32.mrf.mxu0 }
 0x71f   :  { %v4781_v12 = vadd.f32 %v3217_v20, %v4757_v36 }
 0x720   :  { %v2480_v33 = vpop.f32.mrf.mxu0 }
 0x721   :  { %v4789_v42 = vadd.f32 %v4757_v36, %v2480_v33  ;;  %v2590_v43 = vmul.f32 %v4781_v12, %v4781_v12 }
 0x723   :  { %v2589_v19 = vmul.f32 %v4789_v42, %v4789_v42 }
 0x72e   :  { %v3220_v17 = vpop.f32.mrf.mxu0 }
 0x72f   :  { %v4763_v38 = vadd.f32 %v3220_v17, %v4757_v36 }
 0x730   :  { %v2490_v16 = vpop.f32.mrf.mxu0 }
 0x731   :  { %v4773_v35 = vadd.f32 %v4757_v36, %v2490_v16  ;;  %v2592_v34 = vmul.f32 %v4763_v38, %v4763_v38 }
 0x733   :  { %v2591_v18 = vmul.f32 %v4773_v35, %v4773_v35 }
 0x741   :  { %v3223_v14 = vpop.f32.mrf.mxu0 }
 0x742   :  { %v4760_v39 = vadd.f32 %v3223_v14, %v4757_v36 }
 0x743   :  { %v2500_v40 = vpop.f32.mrf.mxu0 }
 0x744   :  { %v2594_v37 = vmul.f32 %v4760_v39, %v4760_v39  ;;  %v4768_v15 = vadd.f32 %v4757_v36, %v2500_v40  ;;  %3225 = vmatpush3.msra.mxu1 %v4760_v39 }
 0x745   :  { %3226 = vmatprep.subr.mxu1 %v3333_v1 }
 0x746   :  { %v2593_v41 = vmul.f32 %v4768_v15, %v4768_v15  ;;  %3227 = vmatpush3.msra.mxu1 %v4768_v15  ;;  %3260 = vmatpush3.msra.mxu0 %v2594_v37 }
 0x747   :  { %3228 = vmatprep.subr.mxu1 %v3333_v1  ;;  %3261 = vmatprep.subr.mxu0 %v3333_v1 }
 0x748   :  { %3229 = vmatpush3.msra.mxu1 %v4763_v38  ;;  %3262 = vmatpush3.msra.mxu0 %v2593_v41 }
 0x749   :  { %3230 = vmatprep.subr.mxu1 %v3333_v1  ;;  %3263 = vmatprep.subr.mxu0 %v3333_v1 }
 0x74a   :  { %3231 = vmatpush3.msra.mxu1 %v4773_v35  ;;  %3264 = vmatpush3.msra.mxu0 %v2592_v34 }
 0x74b   :  { %3232 = vmatprep.subr.mxu1 %v3333_v1  ;;  %3265 = vmatprep.subr.mxu0 %v3333_v1 }
 0x74c   :  { %3233 = vmatpush3.msra.mxu1 %v4781_v12  ;;  %3266 = vmatpush3.msra.mxu0 %v2591_v18 }
 0x74d   :  { %3234 = vmatprep.subr.mxu1 %v3333_v1  ;;  %3267 = vmatprep.subr.mxu0 %v3333_v1 }
 0x74e   :  { %3235 = vmatpush3.msra.mxu1 %v4789_v42  ;;  %3268 = vmatpush3.msra.mxu0 %v2590_v43 }
 0x74f   :  { %3236 = vmatprep.subr.mxu1 %v3333_v1  ;;  %3269 = vmatprep.subr.mxu0 %v3333_v1 }
 0x750   :  { %3237 = vmatpush3.msra.mxu1 %v4797_v21  ;;  %3270 = vmatpush3.msra.mxu0 %v2589_v19 }
 0x751   :  { %3238 = vmatprep.subr.mxu1 %v3333_v1  ;;  %3271 = vmatprep.subr.mxu0 %v3333_v1 }
 0x752   :  { %3239 = vmatpush3.msra.mxu1 %v4805_v44  ;;  %3272 = vmatpush3.msra.mxu0 %v2588_v46  ;;  %v2730_v46 = vld [vmem:[%s4959_s0 + $0x18] sm:$0xff] }
 0x753   :  { %3240 = vmatprep.subr.mxu1 %v3333_v1  ;;  %3273 = vmatprep.subr.mxu0 %v3333_v1 }
 0x754   :  { %3241 = vmatpush3.msra.mxu1 %v4813_v45  ;;  %3274 = vmatpush3.msra.mxu0 %v2587_v48 }
 0x755   :  { %3242 = vmatprep.subr.mxu1 %v3333_v1  ;;  %3275 = vmatprep.subr.mxu0 %v3333_v1 }
 0x756   :  { %3243 = vmatpush3.msra.mxu1 %v4821_v47  ;;  %3276 = vmatpush3.msra.mxu0 %v2586_v49 }
 0x757   :  { %3244 = vmatprep.subr.mxu1 %v3333_v1  ;;  %3277 = vmatprep.subr.mxu0 %v3333_v1 }
 0x758   :  { %3245 = vmatpush3.msra.mxu1 %v4829_v23  ;;  %3278 = vmatpush3.msra.mxu0 %v2585_v51  ;;  %v2732_v51 = vld [vmem:[%s4959_s0 + $0x28] sm:$0xff] }
 0x759   :  { %3246 = vmatprep.subr.mxu1 %v3333_v1  ;;  %3279 = vmatprep.subr.mxu0 %v3333_v1 }
 0x75a   :  { %3247 = vmatpush3.msra.mxu1 %v4838_v50  ;;  %3280 = vmatpush3.msra.mxu0 %v2584_v53  ;;  %v2734_v53 = vld [vmem:[%s4959_s0 + $0x38] sm:$0xff] }
 0x75b   :  { %3248 = vmatprep.subr.mxu1 %v3333_v1  ;;  %3281 = vmatprep.subr.mxu0 %v3333_v1 }
 0x75c   :  { %3249 = vmatpush3.msra.mxu1 %v4847_v52  ;;  %3282 = vmatpush3.msra.mxu0 %v2583_v55 }
 0x75d   :  { %3250 = vmatprep.subr.mxu1 %v3333_v1  ;;  %3283 = vmatprep.subr.mxu0 %v3333_v1 }
 0x75e   :  { %3251 = vmatpush3.msra.mxu1 %v2441_v54  ;;  %3284 = vmatpush3.msra.mxu0 %v2582_v57 }
 0x75f   :  { %3252 = vmatprep.subr.mxu1 %v3333_v1  ;;  %3285 = vmatprep.subr.mxu0 %v3333_v1 }
 0x760   :  { %3253 = vmatpush3.msra.mxu1 %v2436_v56  ;;  %3286 = vmatpush3.msra.mxu0 %v2581_v59 }
 0x761   :  { %3254 = vmatprep.subr.mxu1 %v3333_v1  ;;  %3287 = vmatprep.subr.mxu0 %v3333_v1 }
 0x762   :  { %3255 = vmatpush3.msra.mxu1 %v2431_v58  ;;  %3288 = vmatpush3.msra.mxu0 %v2580_v60 }
 0x763   :  { %3257 = vmatmul.mubr.f32.vlgmr.msra.gmra.mxu1 %v3338_v30  ;;  %3289 = vmatprep.subr.mxu0 %v3333_v1 }
 0x764   :  { %3290 = vmatpush3.msra.mxu0 %v2579_v61 }
 0x765   :  { %3292 = vmatmul.mubr.f32.vlgmr.msra.gmra.mxu0 %v3338_v30 }
 0x823   :  { %v2575_v62 = vpop.f32.mrf.mxu1 }
 0x824   :  { %v2665_v0 = vmul.f32 0.0078125, %v2575_v62 }
 0x825   :  { %v2661_v2 = vpop.f32.mrf.mxu0  ;;  %v3258_v3 = vpop.f32.mrf.mxu1 }
 0x826   :  { %v2667_v4 = vmul.f32 %v2665_v0, %v2665_v0  ;;  %v2666_v5 = vmul.f32 0.0078125, %v2661_v2  ;;  %v2672_v9 = vrot.slane %v2665_v0, %v4058_v63  ;;  %v2736_v0 = vld [vmem:[%s4959_s0 + $0x48] sm:$0xff]  ;;  %v2737_v2 = vld [vmem:[%s4959_s0 + $0x50] sm:$0xff] }
 0x827   :  { %v3293_v6 = vpop.f32.mrf.mxu0 }
 0x828   :  { %v2668_v7 = vsub.f32 %v2666_v5, %v2667_v4  ;;  %v2673_v10 = vsub.f32 %v2431_v58, %v2672_v9  ;;  %v2674_v11 = vsub.f32 %v2436_v56, %v2672_v9  ;;  %v2675_v13 = vsub.f32 %v2441_v54, %v2672_v9  ;;  %v2735_v58 = vld [vmem:[%s4959_s0 + $0x40] sm:$0xff] }
 0x829   :  { %v2676_v1 = vsub.f32 %v4847_v52, %v2672_v9  ;;  %v2677_v29 = vsub.f32 %v4838_v50, %v2672_v9  ;;  %v2678_v28 = vsub.f32 %v4829_v23, %v2672_v9  ;;  %v2679_v27 = vsub.f32 %v4821_v47, %v2672_v9  ;;  %v2731_v50 = vld [vmem:[%s4959_s0 + $0x20] sm:$0xff]  ;;  %v2733_v52 = vld [vmem:[%s4959_s0 + $0x30] sm:$0xff] }
 0x82a   :  { %v2689_v8 = vadd.f32 1e-05, %v2668_v7  ;;  %v2680_v26 = vsub.f32 %v4813_v45, %v2672_v9  ;;  %v2681_v25 = vsub.f32 %v4805_v44, %v2672_v9  ;;  %v2682_v31 = vsub.f32 %v4797_v21, %v2672_v9  ;;  %v2729_v45 = vld [vmem:[%s4959_s0 + $0x10] sm:$0xff]  ;;  %v2738_v7 = vld [vmem:[%s4959_s0 + $0x58] sm:$0xff] }
 0x82b   :  { %v2683_v32 = vsub.f32 %v4789_v42, %v2672_v9  ;;  %v2684_v22 = vsub.f32 %v4781_v12, %v2672_v9  ;;  %v2685_v20 = vsub.f32 %v4773_v35, %v2672_v9  ;;  %v2686_v33 = vsub.f32 %v4763_v38, %v2672_v9 }
 0x82c   :  { %3309 = vrsqrt.f32 %v2689_v8  ;;  %v2687_v17 = vsub.f32 %v4768_v15, %v2672_v9  ;;  %v2688_v16 = vsub.f32 %v4760_v39, %v2672_v9  ;;  %v2727_v39 = vld [vmem:[%s4959_s0] sm:$0xff]  ;;  %v2728_v15 = vld [vmem:[%s4959_s0 + $0x8] sm:$0xff] }
 0x82d   :  { %v2739_v8 = vld [vmem:[%s4959_s0 + $0x60] sm:$0xff]  ;;  %v2740_v9 = vld [vmem:[%s4959_s0 + $0x68] sm:$0xff] }
 0x839   :  { %v3310_v30 = vpop.eup %3309 }
 0x83a   :  { %v2694_v24 = vrot.slane %v3310_v30, %v4058_v63 }
 0x83c   :  { %v2695_v36 = vmul.f32 %v2694_v24, %v2673_v10  ;;  %v2696_v14 = vmul.f32 %v2694_v24, %v2674_v11  ;;  %v2697_v40 = vmul.f32 %v2694_v24, %v2675_v13  ;;  %v2698_v37 = vmul.f32 %v2694_v24, %v2676_v1  ;;  %v2741_v10 = vld [vmem:[%s4959_s0 + $0x70] sm:$0xff]  ;;  %v2742_v11 = vld [vmem:[%s4959_s0 + $0x78] sm:$0xff]  ;;  %s3311_s0 = scalar_lea.vmem %s2781_s1, 2048 }
 0x83d   :  { %v2699_v41 = vmul.f32 %v2694_v24, %v2677_v29  ;;  %v2700_v63 = vmul.f32 %v2694_v24, %v2678_v28  ;;  %v2701_v34 = vmul.f32 %v2694_v24, %v2679_v27  ;;  %v2702_v18 = vmul.f32 %v2694_v24, %v2680_v26  ;;  %p3312_p0 = scmp.ne.s32.totalorder %s2781_s1, %s3311_s0  ;;  %p3317_p2 = scmp.lt.s32.totalorder %s3311_s0, %s3311_s0 }
 0x83e   :  { %v2703_v21 = vmul.f32 %v2694_v24, %v2681_v25  ;;  %v2704_v42 = vmul.f32 %v2694_v24, %v2682_v31  ;;  %v2705_v43 = vmul.f32 %v2694_v24, %v2683_v32  ;;  %v2706_v12 = vmul.f32 %v2694_v24, %v2684_v22 }
 0x83f   :  { %v2707_v44 = vmul.f32 %v2694_v24, %v2685_v20  ;;  %v2708_v35 = vmul.f32 %v2694_v24, %v2686_v33  ;;  %v2709_v19 = vmul.f32 %v2694_v24, %v2687_v17  ;;  %v2710_v38 = vmul.f32 %v2694_v24, %v2688_v16  ;;  %p3318_p3 = por %p3317_p2, %p3316_p1 }
 0x840   :  { %v2711_v47 = vmax.f32 %v2695_v36, 0.0  ;;  %v2712_v48 = vmax.f32 %v2696_v14, 0.0  ;;  %v2713_v23 = vmax.f32 %v2697_v40, 0.0  ;;  %v2714_v49 = vmax.f32 %v2698_v37, 0.0 }
 0x841   :  { %v2715_v54 = vmax.f32 %v2699_v41, 0.0  ;;  %v2716_v55 = vmax.f32 %v2700_v63, 0.0  ;;  %v2717_v56 = vmax.f32 %v2701_v34, 0.0  ;;  %v2718_v57 = vmax.f32 %v2702_v18, 0.0  ;;  %p3319_p4 = pnand %p3318_p3, %p3312_p0 }
 0x842   :  { %v2719_v59 = vmax.f32 %v2703_v21, 0.0  ;;  %v2720_v60 = vmax.f32 %v2704_v42, 0.0  ;;  %v2721_v61 = vmax.f32 %v2705_v43, 0.0  ;;  %v2722_v62 = vmax.f32 %v2706_v12, 0.0 }
 0x843   :  { %v2723_v3 = vmax.f32 %v2707_v44, 0.0  ;;  %v2724_v4 = vmax.f32 %v2708_v35, 0.0  ;;  %v2725_v5 = vmax.f32 %v2709_v19, 0.0  ;;  %v2726_v6 = vmax.f32 %v2710_v38, 0.0 }
 0x844   :  { %v2743_v13 = vadd.f32 %v2727_v39, %v2711_v47  ;;  %v2744_v1 = vadd.f32 %v2728_v15, %v2712_v48  ;;  %v2745_v29 = vadd.f32 %v2729_v45, %v2713_v23  ;;  %v2746_v30 = vadd.f32 %v2730_v46, %v2714_v49 }
 0x845   :  { %v2747_v28 = vadd.f32 %v2731_v50, %v2715_v54  ;;  %v2748_v27 = vadd.f32 %v2732_v51, %v2716_v55  ;;  %v2749_v26 = vadd.f32 %v2733_v52, %v2717_v56  ;;  %v2750_v25 = vadd.f32 %v2734_v53, %v2718_v57 }
 0x846   :  { %v2751_v24 = vadd.f32 %v2735_v58, %v2719_v59  ;;  %v2752_v31 = vadd.f32 %v2736_v0, %v2720_v60  ;;  %v2753_v32 = vadd.f32 %v2737_v2, %v2721_v61  ;;  %v2754_v22 = vadd.f32 %v2738_v7, %v2722_v62  ;;  %2759 = vst.msk [vmem:[#allocation6] sm:$0xff] %vm27_vm0, %v2743_v13 }
 0x847   :  { %2760 = vst.msk [vmem:[#allocation6 + $0x8] sm:$0xff] %vm27_vm0, %v2744_v1  ;;  %2761 = vst.msk [vmem:[#allocation6 + $0x10] sm:$0xff] %vm27_vm0, %v2745_v29  ;;  %v2755_v20 = vadd.f32 %v2739_v8, %v2723_v3  ;;  %v2756_v33 = vadd.f32 %v2740_v9, %v2724_v4  ;;  %v2757_v17 = vadd.f32 %v2741_v10, %v2725_v5 }
 0x848   :  { %2762 = vst.msk [vmem:[#allocation6 + $0x18] sm:$0xff] %vm27_vm0, %v2746_v30  ;;  %v2758_v16 = vadd.f32 %v2742_v11, %v2726_v6  ;;  %2763 = vst.msk [vmem:[#allocation6 + $0x20] sm:$0xff] %vm27_vm0, %v2747_v28 }
 0x849   :  { %2764 = vst.msk [vmem:[#allocation6 + $0x28] sm:$0xff] %vm27_vm0, %v2748_v27  ;;  %2765 = vst.msk [vmem:[#allocation6 + $0x30] sm:$0xff] %vm27_vm0, %v2749_v26 }
 0x84a   :  { %2766 = vst.msk [vmem:[#allocation6 + $0x38] sm:$0xff] %vm27_vm0, %v2750_v25  ;;  %2767 = vst.msk [vmem:[#allocation6 + $0x40] sm:$0xff] %vm27_vm0, %v2751_v24 }
 0x84b   :  { %2768 = vst.msk [vmem:[#allocation6 + $0x48] sm:$0xff] %vm27_vm0, %v2752_v31  ;;  %2769 = vst.msk [vmem:[#allocation6 + $0x50] sm:$0xff] %vm27_vm0, %v2753_v32 }
 0x84c   :  { %2770 = vst.msk [vmem:[#allocation6 + $0x58] sm:$0xff] %vm27_vm0, %v2754_v22  ;;  %2771 = vst.msk [vmem:[#allocation6 + $0x60] sm:$0xff] %vm27_vm0, %v2755_v20 }
 0x84d   :  { %2772 = vst.msk [vmem:[#allocation6 + $0x68] sm:$0xff] %vm27_vm0, %v2756_v33  ;;  %2773 = vst.msk [vmem:[#allocation6 + $0x70] sm:$0xff] %vm27_vm0, %v2757_v17 }
 0x84e   :  { %2774 = vst.msk [vmem:[#allocation6 + $0x78] sm:$0xff] %vm27_vm0, %v2758_v16 }
 0x84f   :  { %3322 = shalt.err (!%p3319_p4)
}
 0x850   :  { %s3342_s3 = smov 128   ;;  %s3343_s16 = smov 8  }
 0x851   :  { %2786 = dma.vmem_to_hbm [thread:$0]  %s2781_s1, 2048, %s4966_s7, [#allocation7], %s3342_s3, %s3342_s3, %s3343_s16  }
 0x852   :  { %3331 = dma.done.wait [#allocation7], 2048  }
 0x853   :  { %3332 = vsyncadd [#allocation7], 4294965248 }
 0x854   :  { %2790 = vsyncpa [#allocation7], 1 }

</bundles_post_ra>
